<compile_context>
chip_gen: v6e
topology: v6e:2x2x1
jax: 0.10.0
libtpu: 0.0.40
codegen_flags: <defaults>
</compile_context>

<pallas_src>
import math
import functools

import jax
import jax.numpy as jnp
import numpy as np
from jax import lax
from jax.experimental import pallas as pl
from jax.experimental.pallas import tpu as pltpu

LN_EPS = 1e-5  # PyTorch nn.LayerNorm default eps


def _layernorm(x, gamma, beta):
    mu = jnp.mean(x, axis=-1, keepdims=True)
    var = jnp.mean((x - mu) ** 2, axis=-1, keepdims=True)
    return (x - mu) * lax.rsqrt(var + LN_EPS) * gamma + beta


def _gelu_tanh(x):
    # exact tanh-approx GELU used by FeedForwardNetworks.gelu
    return 0.5 * x * (1.0 + jnp.tanh(math.sqrt(2.0 / math.pi) * (x + 0.044715 * x ** 3)))


def _vmem_limit_bytes():
    # Generation-aware scoped-VMEM limit (v5e/v6e: 128 MiB physical, v7x: 64 MiB).
    try:
        cap = pltpu.get_tpu_info().vmem_capacity_bytes
        return int(min(cap * 3 // 4, 100 * 1024 * 1024))
    except Exception:
        return 64 * 1024 * 1024


# --------------------------------------------------------------------------------------
# Fused kernel: all transformer layers + final LayerNorm + reward head.
#   grid = (B // Bb, n_layers); residual stream lives in a (Bb*T, C) f32 VMEM scratch
#   across the layer axis; per-layer bf16 weights are streamed via the layer grid coord.
# --------------------------------------------------------------------------------------
def gpt_stack_kernel(x_ref,
                     ln1g_ref, ln1b_ref, wqkv_ref, bqkv_ref, wo_ref, bo_ref,
                     ln2g_ref, ln2b_ref, w1_ref, b1_ref, w2_ref, b2_ref,
                     lnfg_ref, lnfb_ref, wcomb_ref,
                     o_ref, acc_ref, *, n_heads, batch_block):
    layer = pl.program_id(1)
    Bb = batch_block
    M, C = acc_ref.shape                 # M = Bb * T
    T = M // Bb
    H = n_heads
    Dh = C // H

    @pl.when(layer == 0)
    def _():
        # load a fresh residual stream for this batch block: (Bb, T, C) -> (Bb*T, C)
        acc_ref[...] = x_ref[...].reshape(M, C)

    x = acc_ref[...]                     # (M, C) f32 residual stream

    # ---- ln1 + masked multi-head self-attention (one wide QKV matmul, Bb*H-batched) ----
    xn = _layernorm(x, ln1g_ref[0], ln1b_ref[0]).astype(jnp.bfloat16)
    # single (M, C) @ (C, 3C) projection on the MXU; 1/sqrt(Dh) pre-folded into Q columns
    qkv = jnp.dot(xn, wqkv_ref[0], preferred_element_type=jnp.float32) + bqkv_ref[0]  # (M, 3C)

    def split_heads(col0):
        # static 128-lane-aligned slices + layout-trivial leading-dim reshapes/stack
        heads = [qkv[:, col0 + h * Dh: col0 + (h + 1) * Dh].reshape(Bb, T, Dh)
                 for h in range(H)]
        return jnp.stack(heads, axis=0).reshape(H * Bb, T, Dh).astype(jnp.bfloat16)

    q = split_heads(0)                   # (H*Bb, T, Dh) bf16 (already scaled)
    k = split_heads(C)
    v = split_heads(2 * C)

    s = jnp.einsum('bqd,bkd->bqk', q, k, preferred_element_type=jnp.float32)  # (H*Bb, T, T)
    qpos = lax.broadcasted_iota(jnp.int32, (T, T), 0)
    kpos = lax.broadcasted_iota(jnp.int32, (T, T), 1)
    # finite sentinel: causal rows always have >=1 unmasked key
    s = jnp.where((kpos <= qpos)[None, :, :], s, -1e30)
    s = s - jnp.max(s, axis=-1, keepdims=True)
    p = jnp.exp(s)
    p = p * pl.reciprocal(jnp.sum(p, axis=-1, keepdims=True), approx=True)

    ctx = jnp.einsum('bqk,bkd->bqd', p.astype(jnp.bfloat16), v,
                     preferred_element_type=jnp.float32)          # (H*Bb, T, Dh)
    ctx = ctx.reshape(H, Bb, T, Dh)
    # re-assemble heads along the lane dim (128-aligned) and fuse the head reduction
    # into a single (M, C) @ (C, C) output-projection matmul (MXU accumulator does the sum)
    ctx2d = jnp.concatenate([ctx[h] for h in range(H)], axis=-1)   # (Bb, T, C)
    ctx2d = ctx2d.reshape(M, C).astype(jnp.bfloat16)
    x = x + jnp.dot(ctx2d, wo_ref[0], preferred_element_type=jnp.float32) + bo_ref[0]

    # ---- ln2 + feed-forward ----
    xn2 = _layernorm(x, ln2g_ref[0], ln2b_ref[0]).astype(jnp.bfloat16)
    h1 = jnp.dot(xn2, w1_ref[0], preferred_element_type=jnp.float32) + b1_ref[0]
    h1 = _gelu_tanh(h1).astype(jnp.bfloat16)
    x = x + jnp.dot(h1, w2_ref[0], preferred_element_type=jnp.float32) + b2_ref[0]

    acc_ref[...] = x

    # ---- fused reward head on the last layer: ln_f -> mean_T -> w_comb ----
    @pl.when(layer == pl.num_programs(1) - 1)
    def _():
        xf = _layernorm(x, lnfg_ref[...], lnfb_ref[...])           # (M, C)
        pooled = jnp.mean(xf.reshape(Bb, T, C), axis=1)            # (Bb, C)
        # N=1 head as VPU multiply + lane reduce (avoids an N=1 MXU matmul)
        o_ref[0] = jnp.sum(pooled * wcomb_ref[...], axis=-1, keepdims=True)  # (Bb, 1)


def gpt_reward_forward(fast, token_ids, *, n_heads, batch_block):
    B, T = token_ids.shape
    C = fast['tok_emb'].shape[1]
    L = fast['w_qkv'].shape[0]
    Bb = batch_block
    assert B % Bb == 0, "batch must be divisible by the batch block"

    # token + positional embedding (input_dropout is identity in eval mode) -- plain JAX glue
    x = fast['tok_emb'][token_ids] + fast['pos_emb'][:T][None, :, :]

    layer_weights = [fast['ln1_g'], fast['ln1_b'], fast['w_qkv'], fast['b_qkv'],
                     fast['w_o'], fast['b_o'], fast['ln2_g'], fast['ln2_b'],
                     fast['w_fc1'], fast['b_fc1'], fast['w_fc2'], fast['b_fc2']]

    def layer_spec(arr):
        nd = arr.ndim
        return pl.BlockSpec((1,) + tuple(arr.shape[1:]),
                            lambda b, l, _nd=nd: (l,) + (0,) * (_nd - 1))

    const_spec = pl.BlockSpec((1, C), lambda b, l: (0, 0))

    in_specs = ([pl.BlockSpec((Bb, T, C), lambda b, l: (b, 0, 0))]
                + [layer_spec(w) for w in layer_weights]
                + [const_spec, const_spec, const_spec])

    out = pl.pallas_call(
        functools.partial(gpt_stack_kernel, n_heads=n_heads, batch_block=Bb),
        out_shape=jax.ShapeDtypeStruct((B // Bb, Bb, 1), jnp.float32),
        grid=(B // Bb, L),
        in_specs=in_specs,
        out_specs=pl.BlockSpec((1, Bb, 1), lambda b, l: (b, 0, 0)),
        scratch_shapes=[pltpu.VMEM((Bb * T, C), jnp.float32)],
        compiler_params=pltpu.CompilerParams(
            dimension_semantics=("parallel", "arbitrary"),
            vmem_limit_bytes=_vmem_limit_bytes()),
    )(x, *layer_weights, fast['ln_f_g'], fast['ln_f_b'], fast['w_comb'])

    return out.reshape(B, 1)


# --------------------------------------------------------------------------------------
# Parameters (f32 masters, PyTorch-equivalent) + one-time fast-layout prep
# --------------------------------------------------------------------------------------
def init_params(key, vocab, seq_len, C, n_layers):
    L = n_layers
    k = iter(jax.random.split(key, 16))

    def nrm(shape, scale=0.02):
        return (scale * jax.random.normal(next(k), shape)).astype(jnp.float32)

    return {
        'tok_emb': nrm((vocab, C)),
        'pos_emb': nrm((seq_len, C)),
        'ln1_g': jnp.ones((L, 1, C), jnp.float32), 'ln1_b': jnp.zeros((L, 1, C), jnp.float32),
        'w_qkv': nrm((L, C, 3 * C)), 'b_qkv': nrm((L, 1, 3 * C)),
        'w_o':   nrm((L, C, C)),     'b_o':   nrm((L, 1, C)),
        'ln2_g': jnp.ones((L, 1, C), jnp.float32), 'ln2_b': jnp.zeros((L, 1, C), jnp.float32),
        'w_fc1': nrm((L, C, 4 * C)), 'b_fc1': nrm((L, 1, 4 * C)),
        'w_fc2': nrm((L, 4 * C, C)), 'b_fc2': nrm((L, 1, C)),
        'ln_f_g': jnp.ones((1, C), jnp.float32), 'ln_f_b': jnp.zeros((1, C), jnp.float32),
        'w_lm': nrm((C, vocab)),       # lm_head (no bias)
        'w_val': nrm((vocab, 1)),      # value_head (no bias); requires vocab == C
    }


def prepare_fast_params(params, n_heads):
    """One-time wrapper-side layout plumbing (free): bf16 weights, attention scale
    folded into the Q columns, lm_head @ value_head fused into one (1, C) row."""
    L, C, _ = params['w_qkv'].shape
    Dh = C // n_heads
    scale = 1.0 / math.sqrt(Dh)
    col_scale = jnp.concatenate([jnp.full((C,), scale, jnp.float32),
                                 jnp.ones((2 * C,), jnp.float32)])   # scale Q cols only
    bf16 = jnp.bfloat16
    return {
        'tok_emb': params['tok_emb'], 'pos_emb': params['pos_emb'],
        'ln1_g': params['ln1_g'], 'ln1_b': params['ln1_b'],
        'w_qkv': (params['w_qkv'] * col_scale).astype(bf16),     # (L, C, 3C)
        'b_qkv': params['b_qkv'] * col_scale,                    # (L, 1, 3C) f32
        'w_o': params['w_o'].astype(bf16), 'b_o': params['b_o'],
        'ln2_g': params['ln2_g'], 'ln2_b': params['ln2_b'],
        'w_fc1': params['w_fc1'].astype(bf16), 'b_fc1': params['b_fc1'],
        'w_fc2': params['w_fc2'].astype(bf16), 'b_fc2': params['b_fc2'],
        'ln_f_g': params['ln_f_g'], 'ln_f_b': params['ln_f_b'],
        # lm_head @ value_head fused once, outside any kernel (requires vocab == C)
        'w_comb': (params['w_lm'] @ params['w_val']).T.astype(jnp.float32),   # (1, C)
    }


# --------------------------------------------------------------------------------------
# pure-JAX f32 reference (original, unfused math) for the correctness check
# --------------------------------------------------------------------------------------
def reference_forward(params, token_ids, n_heads):
    B, T = token_ids.shape
    x = params['tok_emb'][token_ids] + params['pos_emb'][:T][None]
    C = x.shape[-1]
    H = n_heads
    Dh = C // H
    L = params['w_qkv'].shape[0]
    for li in range(L):
        xn = _layernorm(x, params['ln1_g'][li], params['ln1_b'][li])
        qkv = xn @ params['w_qkv'][li] + params['b_qkv'][li]
        q, k, v = jnp.split(qkv, 3, axis=-1)
        q = q.reshape(B, T, H, Dh).transpose(0, 2, 1, 3)
        k = k.reshape(B, T, H, Dh).transpose(0, 2, 1, 3)
        v = v.reshape(B, T, H, Dh).transpose(0, 2, 1, 3)
        s = (q @ k.transpose(0, 1, 3, 2)) / math.sqrt(Dh)
        mask = jnp.tril(jnp.ones((T, T)))
        s = jnp.where(mask == 0, -jnp.inf, s)
        p = jax.nn.softmax(s, axis=-1)
        ctx = (p @ v).transpose(0, 2, 1, 3).reshape(B, T, C)
        x = x + (ctx @ params['w_o'][li] + params['b_o'][li])
        xn2 = _layernorm(x, params['ln2_g'][li], params['ln2_b'][li])
        h1 = _gelu_tanh(xn2 @ params['w_fc1'][li] + params['b_fc1'][li])
        x = x + (h1 @ params['w_fc2'][li] + params['b_fc2'][li])
    xn = _layernorm(x, params['ln_f_g'], params['ln_f_b'])
    logits = xn @ params['w_lm']           # lm_head
    val = logits @ params['w_val']         # value_head (vocab == C required)
    return val.mean(axis=1)                # (B, 1)


if __name__ == "__main__":
    # lane-dense toy config (C and head_dim multiples of 128); vocab == embedding_dim (see NOTE)
    B, T = 4, 16
    C = 256           # embedding_dim
    V = 256           # vocab_size == embedding_dim
    H = 2             # n_heads -> head_dim = 128
    L = 2             # n_layers
    SEQ = 16          # sequence_length (== T here)
    Bb = 2            # batch rows per grid step -> B//Bb = 2 blocks (even, feeds both v7x TCs)

    key = jax.random.PRNGKey(0)
    pkey, dkey = jax.random.split(key)
    params = init_params(pkey, V, SEQ, C, L)
    token_ids = jax.random.randint(dkey, (B, T), 0, V, dtype=jnp.int32)

    fast = prepare_fast_params(params, n_heads=H)

    fwd = jax.jit(functools.partial(gpt_reward_forward, n_heads=H, batch_block=Bb))
    out = jax.block_until_ready(fwd(fast, token_ids))
    assert out.shape == (B, 1)

    ref = reference_forward(params, token_ids, H)
    np.testing.assert_allclose(np.asarray(out), np.asarray(ref), atol=1e-2, rtol=1e-2)

    print("KERNEL_OK")
</pallas_src>

<mosaic_0001>
module attributes {stable_mosaic.version = 11 : i64} {
  func.func @gpt_stack_kernel(%arg0: i32, %arg1: i32, %arg2: memref<2x16x256xf32, #tpu.memory_space<vmem>>, %arg3: memref<1x1x256xf32, #tpu.memory_space<vmem>>, %arg4: memref<1x1x256xf32, #tpu.memory_space<vmem>>, %arg5: memref<1x256x768xbf16, #tpu.memory_space<vmem>>, %arg6: memref<1x1x768xf32, #tpu.memory_space<vmem>>, %arg7: memref<1x256x256xbf16, #tpu.memory_space<vmem>>, %arg8: memref<1x1x256xf32, #tpu.memory_space<vmem>>, %arg9: memref<1x1x256xf32, #tpu.memory_space<vmem>>, %arg10: memref<1x1x256xf32, #tpu.memory_space<vmem>>, %arg11: memref<1x256x1024xbf16, #tpu.memory_space<vmem>>, %arg12: memref<1x1x1024xf32, #tpu.memory_space<vmem>>, %arg13: memref<1x1024x256xbf16, #tpu.memory_space<vmem>>, %arg14: memref<1x1x256xf32, #tpu.memory_space<vmem>>, %arg15: memref<1x256xf32, #tpu.memory_space<vmem>>, %arg16: memref<1x256xf32, #tpu.memory_space<vmem>>, %arg17: memref<1x256xf32, #tpu.memory_space<vmem>>, %arg18: memref<1x2x1xf32, #tpu.memory_space<vmem>>, %arg19: memref<32x256xf32, #tpu.memory_space<vmem>>) attributes {dimension_semantics = [#tpu.dimension_semantics<parallel>, #tpu.dimension_semantics<arbitrary>], iteration_bounds = array<i64: 2, 2>, scalar_prefetch = 0 : i64, scratch_operands = 1 : i64, tpu.core_type = #tpu.core_type<tc>, window_params = [{transform_indices = @transform_0, window_bounds = array<i64: 2, 16, 256>}, {transform_indices = @transform_1, window_bounds = array<i64: 1, 1, 256>}, {transform_indices = @transform_2, window_bounds = array<i64: 1, 1, 256>}, {transform_indices = @transform_3, window_bounds = array<i64: 1, 256, 768>}, {transform_indices = @transform_4, window_bounds = array<i64: 1, 1, 768>}, {transform_indices = @transform_5, window_bounds = array<i64: 1, 256, 256>}, {transform_indices = @transform_6, window_bounds = array<i64: 1, 1, 256>}, {transform_indices = @transform_7, window_bounds = array<i64: 1, 1, 256>}, {transform_indices = @transform_8, window_bounds = array<i64: 1, 1, 256>}, {transform_indices = @transform_9, window_bounds = array<i64: 1, 256, 1024>}, {transform_indices = @transform_10, window_bounds = array<i64: 1, 1, 1024>}, {transform_indices = @transform_11, window_bounds = array<i64: 1, 1024, 256>}, {transform_indices = @transform_12, window_bounds = array<i64: 1, 1, 256>}, {pipeline_mode = #tpu.pipeline_mode<synchronous>, transform_indices = @transform_13, window_bounds = array<i64: 1, 256>}, {pipeline_mode = #tpu.pipeline_mode<synchronous>, transform_indices = @transform_14, window_bounds = array<i64: 1, 256>}, {pipeline_mode = #tpu.pipeline_mode<synchronous>, transform_indices = @transform_15, window_bounds = array<i64: 1, 256>}, {transform_indices = @transform_16, window_bounds = array<i64: 1, 2, 1>}]} {
    %c0_i32 = arith.constant 0 : i32
    %0 = arith.cmpi eq, %arg1, %c0_i32 : i32
    %1 = arith.extui %0 : i1 to i32
    %c0_i32_0 = arith.constant 0 : i32
    %2 = arith.cmpi ne, %1, %c0_i32_0 : i32
    scf.if %2 {
      %c0_63 = arith.constant 0 : index
      %c0_64 = arith.constant 0 : index
      %c0_65 = arith.constant 0 : index
      %162 = vector.load %arg2[%c0_63, %c0_64, %c0_65] : memref<2x16x256xf32, #tpu.memory_space<vmem>>, vector<2x16x256xf32>
      %163 = vector.shape_cast %162 : vector<2x16x256xf32> to vector<32x256xf32>
      %c0_66 = arith.constant 0 : index
      %c0_67 = arith.constant 0 : index
      %164 = vector.load %arg19[%c0_66, %c0_67] : memref<32x256xf32, #tpu.memory_space<vmem>>, vector<32x256xf32>
      tpu.vector_store %arg19[%c0_66, %c0_67], %163 {strides = array<i32>} : memref<32x256xf32, #tpu.memory_space<vmem>>, vector<32x256xf32>,
    } else {
    }
    %c0 = arith.constant 0 : index
    %c0_1 = arith.constant 0 : index
    %3 = vector.load %arg19[%c0, %c0_1] : memref<32x256xf32, #tpu.memory_space<vmem>>, vector<32x256xf32>
    %c0_2 = arith.constant 0 : index
    %c0_3 = arith.constant 0 : index
    %c0_4 = arith.constant 0 : index
    %4 = vector.load %arg3[%c0_2, %c0_3, %c0_4] : memref<1x1x256xf32, #tpu.memory_space<vmem>>, vector<1x1x256xf32>
    %5 = vector.shape_cast %4 : vector<1x1x256xf32> to vector<1x256xf32>
    %c0_5 = arith.constant 0 : index
    %c0_6 = arith.constant 0 : index
    %c0_7 = arith.constant 0 : index
    %6 = vector.load %arg4[%c0_5, %c0_6, %c0_7] : memref<1x1x256xf32, #tpu.memory_space<vmem>>, vector<1x1x256xf32>
    %7 = vector.shape_cast %6 : vector<1x1x256xf32> to vector<1x256xf32>
    %cst = arith.constant dense<0.000000e+00> : vector<32xf32>
    %8 = vector.multi_reduction <add>, %3, %cst [1] : vector<32x256xf32> to vector<32xf32>
    %9 = vector.shape_cast %8 : vector<32xf32> to vector<32x1xf32>
    %cst_8 = arith.constant 2.560000e+02 : f32
    %10 = vector.broadcast %cst_8 : f32 to vector<32x1xf32>
    %11 = arith.divf %9, %10 : vector<32x1xf32>
    %12 = vector.broadcast %11 : vector<32x1xf32> to vector<32x256xf32>
    %13 = arith.subf %3, %12 : vector<32x256xf32>
    %14 = arith.mulf %13, %13 : vector<32x256xf32>
    %cst_9 = arith.constant dense<0.000000e+00> : vector<32xf32>
    %15 = vector.multi_reduction <add>, %14, %cst_9 [1] : vector<32x256xf32> to vector<32xf32>
    %16 = vector.shape_cast %15 : vector<32xf32> to vector<32x1xf32>
    %cst_10 = arith.constant 2.560000e+02 : f32
    %17 = vector.broadcast %cst_10 : f32 to vector<32x1xf32>
    %18 = arith.divf %16, %17 : vector<32x1xf32>
    %19 = vector.broadcast %11 : vector<32x1xf32> to vector<32x256xf32>
    %20 = arith.subf %3, %19 : vector<32x256xf32>
    %cst_11 = arith.constant 9.99999974E-6 : f32
    %21 = vector.broadcast %cst_11 : f32 to vector<32x1xf32>
    %22 = arith.addf %18, %21 : vector<32x1xf32>
    %23 = math.rsqrt %22 : vector<32x1xf32>
    %24 = vector.broadcast %23 : vector<32x1xf32> to vector<32x256xf32>
    %25 = arith.mulf %20, %24 : vector<32x256xf32>
    %26 = vector.broadcast %5 : vector<1x256xf32> to vector<32x256xf32>
    %27 = arith.mulf %25, %26 : vector<32x256xf32>
    %28 = vector.broadcast %7 : vector<1x256xf32> to vector<32x256xf32>
    %29 = arith.addf %27, %28 : vector<32x256xf32>
    %30 = arith.truncf %29 : vector<32x256xf32> to vector<32x256xbf16>
    %c0_12 = arith.constant 0 : index
    %c0_13 = arith.constant 0 : index
    %c0_14 = arith.constant 0 : index
    %31 = vector.load %arg5[%c0_12, %c0_13, %c0_14] : memref<1x256x768xbf16, #tpu.memory_space<vmem>>, vector<1x256x768xbf16>
    %32 = vector.shape_cast %31 : vector<1x256x768xbf16> to vector<256x768xbf16>
    %cst_15 = arith.constant dense<0.000000e+00> : vector<32x768xf32>
    %33 = tpu.matmul %30, %32, %cst_15 {dimension_numbers = #tpu.dot_dimension_numbers<[1], [0], [0], [1], [0, 0, 1, 1], [], []>} : vector<32x256xbf16>, vector<256x768xbf16>, vector<32x768xf32> -> vector<32x768xf32>
    %c0_16 = arith.constant 0 : index
    %c0_17 = arith.constant 0 : index
    %c0_18 = arith.constant 0 : index
    %34 = vector.load %arg6[%c0_16, %c0_17, %c0_18] : memref<1x1x768xf32, #tpu.memory_space<vmem>>, vector<1x1x768xf32>
    %35 = vector.shape_cast %34 : vector<1x1x768xf32> to vector<1x768xf32>
    %36 = vector.broadcast %35 : vector<1x768xf32> to vector<32x768xf32>
    %37 = arith.addf %33, %36 : vector<32x768xf32>
    %38 = vector.extract_strided_slice %37 {offsets = [0, 0], sizes = [32, 128], strides = [1, 1]} : vector<32x768xf32> to vector<32x128xf32>
    %39 = vector.shape_cast %38 : vector<32x128xf32> to vector<2x16x128xf32>
    %40 = vector.extract_strided_slice %37 {offsets = [0, 128], sizes = [32, 128], strides = [1, 1]} : vector<32x768xf32> to vector<32x128xf32>
    %41 = vector.shape_cast %40 : vector<32x128xf32> to vector<2x16x128xf32>
    %42 = vector.shape_cast %39 : vector<2x16x128xf32> to vector<1x2x16x128xf32>
    %43 = vector.shape_cast %41 : vector<2x16x128xf32> to vector<1x2x16x128xf32>
    %44 = tpu.concatenate %42, %43 in 0 : vector<1x2x16x128xf32>, vector<1x2x16x128xf32> -> vector<2x2x16x128xf32>
    %45 = vector.shape_cast %44 : vector<2x2x16x128xf32> to vector<4x16x128xf32>
    %46 = arith.truncf %45 : vector<4x16x128xf32> to vector<4x16x128xbf16>
    %47 = vector.extract_strided_slice %37 {offsets = [0, 256], sizes = [32, 128], strides = [1, 1]} : vector<32x768xf32> to vector<32x128xf32>
    %48 = vector.shape_cast %47 : vector<32x128xf32> to vector<2x16x128xf32>
    %49 = vector.extract_strided_slice %37 {offsets = [0, 384], sizes = [32, 128], strides = [1, 1]} : vector<32x768xf32> to vector<32x128xf32>
    %50 = vector.shape_cast %49 : vector<32x128xf32> to vector<2x16x128xf32>
    %51 = vector.shape_cast %48 : vector<2x16x128xf32> to vector<1x2x16x128xf32>
    %52 = vector.shape_cast %50 : vector<2x16x128xf32> to vector<1x2x16x128xf32>
    %53 = tpu.concatenate %51, %52 in 0 : vector<1x2x16x128xf32>, vector<1x2x16x128xf32> -> vector<2x2x16x128xf32>
    %54 = vector.shape_cast %53 : vector<2x2x16x128xf32> to vector<4x16x128xf32>
    %55 = arith.truncf %54 : vector<4x16x128xf32> to vector<4x16x128xbf16>
    %56 = vector.extract_strided_slice %37 {offsets = [0, 512], sizes = [32, 128], strides = [1, 1]} : vector<32x768xf32> to vector<32x128xf32>
    %57 = vector.shape_cast %56 : vector<32x128xf32> to vector<2x16x128xf32>
    %58 = vector.extract_strided_slice %37 {offsets = [0, 640], sizes = [32, 128], strides = [1, 1]} : vector<32x768xf32> to vector<32x128xf32>
    %59 = vector.shape_cast %58 : vector<32x128xf32> to vector<2x16x128xf32>
    %60 = vector.shape_cast %57 : vector<2x16x128xf32> to vector<1x2x16x128xf32>
    %61 = vector.shape_cast %59 : vector<2x16x128xf32> to vector<1x2x16x128xf32>
    %62 = tpu.concatenate %60, %61 in 0 : vector<1x2x16x128xf32>, vector<1x2x16x128xf32> -> vector<2x2x16x128xf32>
    %63 = vector.shape_cast %62 : vector<2x2x16x128xf32> to vector<4x16x128xf32>
    %64 = arith.truncf %63 : vector<4x16x128xf32> to vector<4x16x128xbf16>
    "tpu.trace_start"() <{level = 10 : i32, message = "bqd,bkd->bqk"}> : () -> ()
    %cst_19 = arith.constant dense<0.000000e+00> : vector<4x16x16xf32>
    %65 = tpu.matmul %46, %55, %cst_19 {dimension_numbers = #tpu.dot_dimension_numbers<[2], [2], [1], [1], [0, 0, 0, 1, 1, 1], [0], [0]>} : vector<4x16x128xbf16>, vector<4x16x128xbf16>, vector<4x16x16xf32> -> vector<4x16x16xf32>
    "tpu.trace_stop"() : () -> ()
    %66 = tpu.iota {dimensions = array<i32: 0>} : vector<16x16xi32>
    %67 = tpu.iota {dimensions = array<i32: 1>} : vector<16x16xi32>
    %68 = arith.cmpi sle, %67, %66 : vector<16x16xi32>
    %69 = vector.shape_cast %68 : vector<16x16xi1> to vector<1x16x16xi1>
    %cst_20 = arith.constant -1.000000e+30 : f32
    %70 = vector.shape_cast %69 : vector<1x16x16xi1> to vector<1x16x16xi1>
    %71 = vector.broadcast %70 : vector<1x16x16xi1> to vector<4x16x16xi1>
    %72 = vector.broadcast %cst_20 : f32 to vector<4x16x16xf32>
    %73 = arith.select %71, %65, %72 : vector<4x16x16xi1>, vector<4x16x16xf32>
    %cst_21 = arith.constant dense<0xFF800000> : vector<4x16xf32>
    %74 = vector.multi_reduction <maximumf>, %73, %cst_21 [2] : vector<4x16x16xf32> to vector<4x16xf32>
    %75 = vector.shape_cast %74 : vector<4x16xf32> to vector<4x16x1xf32>
    %76 = vector.broadcast %75 : vector<4x16x1xf32> to vector<4x16x16xf32>
    %77 = arith.subf %73, %76 : vector<4x16x16xf32>
    %78 = math.exp %77 : vector<4x16x16xf32>
    %cst_22 = arith.constant dense<0.000000e+00> : vector<4x16xf32>
    %79 = vector.multi_reduction <add>, %78, %cst_22 [2] : vector<4x16x16xf32> to vector<4x16xf32>
    %80 = vector.shape_cast %79 : vector<4x16xf32> to vector<4x16x1xf32>
    %81 = tpu.reciprocal %80 {approx = true} : vector<4x16x1xf32> -> vector<4x16x1xf32>
    %82 = vector.broadcast %81 : vector<4x16x1xf32> to vector<4x16x16xf32>
    %83 = arith.mulf %78, %82 : vector<4x16x16xf32>
    %84 = arith.truncf %83 : vector<4x16x16xf32> to vector<4x16x16xbf16>
    "tpu.trace_start"() <{level = 10 : i32, message = "bqk,bkd->bqd"}> : () -> ()
    %cst_23 = arith.constant dense<0.000000e+00> : vector<4x16x128xf32>
    %85 = tpu.matmul %84, %64, %cst_23 {dimension_numbers = #tpu.dot_dimension_numbers<[2], [1], [1], [2], [0, 0, 0, 1, 1, 2], [0], [0]>} : vector<4x16x16xbf16>, vector<4x16x128xbf16>, vector<4x16x128xf32> -> vector<4x16x128xf32>
    "tpu.trace_stop"() : () -> ()
    %86 = vector.shape_cast %85 : vector<4x16x128xf32> to vector<2x2x16x128xf32>
    %87 = vector.extract_strided_slice %86 {offsets = [0, 0, 0, 0], sizes = [1, 2, 16, 128], strides = [1, 1, 1, 1]} : vector<2x2x16x128xf32> to vector<1x2x16x128xf32>
    %88 = vector.shape_cast %87 : vector<1x2x16x128xf32> to vector<2x16x128xf32>
    %89 = vector.extract_strided_slice %86 {offsets = [1, 0, 0, 0], sizes = [1, 2, 16, 128], strides = [1, 1, 1, 1]} : vector<2x2x16x128xf32> to vector<1x2x16x128xf32>
    %90 = vector.shape_cast %89 : vector<1x2x16x128xf32> to vector<2x16x128xf32>
    %91 = tpu.concatenate %88, %90 in 2 : vector<2x16x128xf32>, vector<2x16x128xf32> -> vector<2x16x256xf32>
    %92 = vector.shape_cast %91 : vector<2x16x256xf32> to vector<32x256xf32>
    %93 = arith.truncf %92 : vector<32x256xf32> to vector<32x256xbf16>
    %c0_24 = arith.constant 0 : index
    %c0_25 = arith.constant 0 : index
    %c0_26 = arith.constant 0 : index
    %94 = vector.load %arg7[%c0_24, %c0_25, %c0_26] : memref<1x256x256xbf16, #tpu.memory_space<vmem>>, vector<1x256x256xbf16>
    %95 = vector.shape_cast %94 : vector<1x256x256xbf16> to vector<256x256xbf16>
    %cst_27 = arith.constant dense<0.000000e+00> : vector<32x256xf32>
    %96 = tpu.matmul %93, %95, %cst_27 {dimension_numbers = #tpu.dot_dimension_numbers<[1], [0], [0], [1], [0, 0, 1, 1], [], []>} : vector<32x256xbf16>, vector<256x256xbf16>, vector<32x256xf32> -> vector<32x256xf32>
    %97 = arith.addf %3, %96 : vector<32x256xf32>
    %c0_28 = arith.constant 0 : index
    %c0_29 = arith.constant 0 : index
    %c0_30 = arith.constant 0 : index
    %98 = vector.load %arg8[%c0_28, %c0_29, %c0_30] : memref<1x1x256xf32, #tpu.memory_space<vmem>>, vector<1x1x256xf32>
    %99 = vector.shape_cast %98 : vector<1x1x256xf32> to vector<1x256xf32>
    %100 = vector.broadcast %99 : vector<1x256xf32> to vector<32x256xf32>
    %101 = arith.addf %97, %100 : vector<32x256xf32>
    %c0_31 = arith.constant 0 : index
    %c0_32 = arith.constant 0 : index
    %c0_33 = arith.constant 0 : index
    %102 = vector.load %arg9[%c0_31, %c0_32, %c0_33] : memref<1x1x256xf32, #tpu.memory_space<vmem>>, vector<1x1x256xf32>
    %103 = vector.shape_cast %102 : vector<1x1x256xf32> to vector<1x256xf32>
    %c0_34 = arith.constant 0 : index
    %c0_35 = arith.constant 0 : index
    %c0_36 = arith.constant 0 : index
    %104 = vector.load %arg10[%c0_34, %c0_35, %c0_36] : memref<1x1x256xf32, #tpu.memory_space<vmem>>, vector<1x1x256xf32>
    %105 = vector.shape_cast %104 : vector<1x1x256xf32> to vector<1x256xf32>
    %cst_37 = arith.constant dense<0.000000e+00> : vector<32xf32>
    %106 = vector.multi_reduction <add>, %101, %cst_37 [1] : vector<32x256xf32> to vector<32xf32>
    %107 = vector.shape_cast %106 : vector<32xf32> to vector<32x1xf32>
    %cst_38 = arith.constant 2.560000e+02 : f32
    %108 = vector.broadcast %cst_38 : f32 to vector<32x1xf32>
    %109 = arith.divf %107, %108 : vector<32x1xf32>
    %110 = vector.broadcast %109 : vector<32x1xf32> to vector<32x256xf32>
    %111 = arith.subf %101, %110 : vector<32x256xf32>
    %112 = arith.mulf %111, %111 : vector<32x256xf32>
    %cst_39 = arith.constant dense<0.000000e+00> : vector<32xf32>
    %113 = vector.multi_reduction <add>, %112, %cst_39 [1] : vector<32x256xf32> to vector<32xf32>
    %114 = vector.shape_cast %113 : vector<32xf32> to vector<32x1xf32>
    %cst_40 = arith.constant 2.560000e+02 : f32
    %115 = vector.broadcast %cst_40 : f32 to vector<32x1xf32>
    %116 = arith.divf %114, %115 : vector<32x1xf32>
    %117 = vector.broadcast %109 : vector<32x1xf32> to vector<32x256xf32>
    %118 = arith.subf %101, %117 : vector<32x256xf32>
    %cst_41 = arith.constant 9.99999974E-6 : f32
    %119 = vector.broadcast %cst_41 : f32 to vector<32x1xf32>
    %120 = arith.addf %116, %119 : vector<32x1xf32>
    %121 = math.rsqrt %120 : vector<32x1xf32>
    %122 = vector.broadcast %121 : vector<32x1xf32> to vector<32x256xf32>
    %123 = arith.mulf %118, %122 : vector<32x256xf32>
    %124 = vector.broadcast %103 : vector<1x256xf32> to vector<32x256xf32>
    %125 = arith.mulf %123, %124 : vector<32x256xf32>
    %126 = vector.broadcast %105 : vector<1x256xf32> to vector<32x256xf32>
    %127 = arith.addf %125, %126 : vector<32x256xf32>
    %128 = arith.truncf %127 : vector<32x256xf32> to vector<32x256xbf16>
    %c0_42 = arith.constant 0 : index
    %c0_43 = arith.constant 0 : index
    %c0_44 = arith.constant 0 : index
    %129 = vector.load %arg11[%c0_42, %c0_43, %c0_44] : memref<1x256x1024xbf16, #tpu.memory_space<vmem>>, vector<1x256x1024xbf16>
    %130 = vector.shape_cast %129 : vector<1x256x1024xbf16> to vector<256x1024xbf16>
    %cst_45 = arith.constant dense<0.000000e+00> : vector<32x1024xf32>
    %131 = tpu.matmul %128, %130, %cst_45 {dimension_numbers = #tpu.dot_dimension_numbers<[1], [0], [0], [1], [0, 0, 1, 1], [], []>} : vector<32x256xbf16>, vector<256x1024xbf16>, vector<32x1024xf32> -> vector<32x1024xf32>
    %c0_46 = arith.constant 0 : index
    %c0_47 = arith.constant 0 : index
    %c0_48 = arith.constant 0 : index
    %132 = vector.load %arg12[%c0_46, %c0_47, %c0_48] : memref<1x1x1024xf32, #tpu.memory_space<vmem>>, vector<1x1x1024xf32>
    %133 = vector.shape_cast %132 : vector<1x1x1024xf32> to vector<1x1024xf32>
    %134 = vector.broadcast %133 : vector<1x1024xf32> to vector<32x1024xf32>
    %135 = arith.addf %131, %134 : vector<32x1024xf32>
    %cst_49 = arith.constant 5.000000e-01 : f32
    %136 = vector.broadcast %cst_49 : f32 to vector<32x1024xf32>
    %137 = arith.mulf %136, %135 : vector<32x1024xf32>
    %138 = arith.mulf %135, %135 : vector<32x1024xf32>
    %139 = arith.mulf %135, %138 : vector<32x1024xf32>
    %cst_50 = arith.constant 4.471500e-02 : f32
    %140 = vector.broadcast %cst_50 : f32 to vector<32x1024xf32>
    %141 = arith.mulf %140, %139 : vector<32x1024xf32>
    %142 = arith.addf %135, %141 : vector<32x1024xf32>
    %cst_51 = arith.constant 0.797884583 : f32
    %143 = vector.broadcast %cst_51 : f32 to vector<32x1024xf32>
    %144 = arith.mulf %143, %142 : vector<32x1024xf32>
    %145 = math.tanh %144 : vector<32x1024xf32>
    %cst_52 = arith.constant 1.000000e+00 : f32
    %146 = vector.broadcast %cst_52 : f32 to vector<32x1024xf32>
    %147 = arith.addf %146, %145 : vector<32x1024xf32>
    %148 = arith.mulf %137, %147 : vector<32x1024xf32>
    %149 = arith.truncf %148 : vector<32x1024xf32> to vector<32x1024xbf16>
    %c0_53 = arith.constant 0 : index
    %c0_54 = arith.constant 0 : index
    %c0_55 = arith.constant 0 : index
    %150 = vector.load %arg13[%c0_53, %c0_54, %c0_55] : memref<1x1024x256xbf16, #tpu.memory_space<vmem>>, vector<1x1024x256xbf16>
    %151 = vector.shape_cast %150 : vector<1x1024x256xbf16> to vector<1024x256xbf16>
    %cst_56 = arith.constant dense<0.000000e+00> : vector<32x256xf32>
    %152 = tpu.matmul %149, %151, %cst_56 {dimension_numbers = #tpu.dot_dimension_numbers<[1], [0], [0], [1], [0, 0, 1, 1], [], []>} : vector<32x1024xbf16>, vector<1024x256xbf16>, vector<32x256xf32> -> vector<32x256xf32>
    %153 = arith.addf %101, %152 : vector<32x256xf32>
    %c0_57 = arith.constant 0 : index
    %c0_58 = arith.constant 0 : index
    %c0_59 = arith.constant 0 : index
    %154 = vector.load %arg14[%c0_57, %c0_58, %c0_59] : memref<1x1x256xf32, #tpu.memory_space<vmem>>, vector<1x1x256xf32>
    %155 = vector.shape_cast %154 : vector<1x1x256xf32> to vector<1x256xf32>
    %156 = vector.broadcast %155 : vector<1x256xf32> to vector<32x256xf32>
    %157 = arith.addf %153, %156 : vector<32x256xf32>
    %c0_60 = arith.constant 0 : index
    %c0_61 = arith.constant 0 : index
    %158 = vector.load %arg19[%c0_60, %c0_61] : memref<32x256xf32, #tpu.memory_space<vmem>>, vector<32x256xf32>
    tpu.vector_store %arg19[%c0_60, %c0_61], %157 {strides = array<i32>} : memref<32x256xf32, #tpu.memory_space<vmem>>, vector<32x256xf32>,
    %c1_i32 = arith.constant 1 : i32
    %159 = arith.cmpi eq, %arg1, %c1_i32 : i32
    %160 = arith.extui %159 : i1 to i32
    %c0_i32_62 = arith.constant 0 : i32
    %161 = arith.cmpi ne, %160, %c0_i32_62 : i32
    scf.if %161 {
      %c0_63 = arith.constant 0 : index
      %c0_64 = arith.constant 0 : index
      %162 = vector.load %arg15[%c0_63, %c0_64] : memref<1x256xf32, #tpu.memory_space<vmem>>, vector<1x256xf32>
      %c0_65 = arith.constant 0 : index
      %c0_66 = arith.constant 0 : index
      %163 = vector.load %arg16[%c0_65, %c0_66] : memref<1x256xf32, #tpu.memory_space<vmem>>, vector<1x256xf32>
      %cst_67 = arith.constant dense<0.000000e+00> : vector<32xf32>
      %164 = vector.multi_reduction <add>, %157, %cst_67 [1] : vector<32x256xf32> to vector<32xf32>
      %165 = vector.shape_cast %164 : vector<32xf32> to vector<32x1xf32>
      %cst_68 = arith.constant 2.560000e+02 : f32
      %166 = vector.broadcast %cst_68 : f32 to vector<32x1xf32>
      %167 = arith.divf %165, %166 : vector<32x1xf32>
      %168 = vector.broadcast %167 : vector<32x1xf32> to vector<32x256xf32>
      %169 = arith.subf %157, %168 : vector<32x256xf32>
      %170 = arith.mulf %169, %169 : vector<32x256xf32>
      %cst_69 = arith.constant dense<0.000000e+00> : vector<32xf32>
      %171 = vector.multi_reduction <add>, %170, %cst_69 [1] : vector<32x256xf32> to vector<32xf32>
      %172 = vector.shape_cast %171 : vector<32xf32> to vector<32x1xf32>
      %cst_70 = arith.constant 2.560000e+02 : f32
      %173 = vector.broadcast %cst_70 : f32 to vector<32x1xf32>
      %174 = arith.divf %172, %173 : vector<32x1xf32>
      %175 = vector.broadcast %167 : vector<32x1xf32> to vector<32x256xf32>
      %176 = arith.subf %157, %175 : vector<32x256xf32>
      %cst_71 = arith.constant 9.99999974E-6 : f32
      %177 = vector.broadcast %cst_71 : f32 to vector<32x1xf32>
      %178 = arith.addf %174, %177 : vector<32x1xf32>
      %179 = math.rsqrt %178 : vector<32x1xf32>
      %180 = vector.broadcast %179 : vector<32x1xf32> to vector<32x256xf32>
      %181 = arith.mulf %176, %180 : vector<32x256xf32>
      %182 = vector.broadcast %162 : vector<1x256xf32> to vector<32x256xf32>
      %183 = arith.mulf %181, %182 : vector<32x256xf32>
      %184 = vector.broadcast %163 : vector<1x256xf32> to vector<32x256xf32>
      %185 = arith.addf %183, %184 : vector<32x256xf32>
      %186 = vector.shape_cast %185 : vector<32x256xf32> to vector<2x16x256xf32>
      %cst_72 = arith.constant dense<0.000000e+00> : vector<2x256xf32>
      %187 = vector.multi_reduction <add>, %186, %cst_72 [1] : vector<2x16x256xf32> to vector<2x256xf32>
      %cst_73 = arith.constant 1.600000e+01 : f32
      %188 = vector.broadcast %cst_73 : f32 to vector<2x256xf32>
      %189 = arith.divf %187, %188 : vector<2x256xf32>
      %c0_74 = arith.constant 0 : index
      %c0_75 = arith.constant 0 : index
      %190 = vector.load %arg17[%c0_74, %c0_75] : memref<1x256xf32, #tpu.memory_space<vmem>>, vector<1x256xf32>
      %191 = vector.broadcast %190 : vector<1x256xf32> to vector<2x256xf32>
      %192 = arith.mulf %189, %191 : vector<2x256xf32>
      %cst_76 = arith.constant dense<0.000000e+00> : vector<2xf32>
      %193 = vector.multi_reduction <add>, %192, %cst_76 [1] : vector<2x256xf32> to vector<2xf32>
      %194 = vector.shape_cast %193 : vector<2xf32> to vector<2x1xf32>
      %c0_77 = arith.constant 0 : index
      %c0_78 = arith.constant 0 : index
      %c0_79 = arith.constant 0 : index
      %195 = vector.load %arg18[%c0_77, %c0_78, %c0_79] : memref<1x2x1xf32, #tpu.memory_space<vmem>>, vector<1x2x1xf32>
      %196 = vector.shape_cast %195 : vector<1x2x1xf32> to vector<2x1xf32>
      %197 = vector.shape_cast %194 : vector<2x1xf32> to vector<1x2x1xf32>
      tpu.vector_store %arg18[%c0_77, %c0_78, %c0_79], %197 {strides = array<i32>} : memref<1x2x1xf32, #tpu.memory_space<vmem>>, vector<1x2x1xf32>,
    } else {
    }
    return
  }
  func.func @transform_0(%arg0: i32, %arg1: i32) -> (i32, i32, i32) {
    %c0_i32 = arith.constant 0 : i32
    %c0_i32_0 = arith.constant 0 : i32
    %c0_i32_1 = arith.constant 0 : i32
    return %arg0, %c0_i32, %c0_i32_0 : i32, i32, i32
  }
  func.func @transform_1(%arg0: i32, %arg1: i32) -> (i32, i32, i32) {
    %c0_i32 = arith.constant 0 : i32
    %c0_i32_0 = arith.constant 0 : i32
    %c0_i32_1 = arith.constant 0 : i32
    return %arg1, %c0_i32, %c0_i32_0 : i32, i32, i32
  }
  func.func @transform_2(%arg0: i32, %arg1: i32) -> (i32, i32, i32) {
    %c0_i32 = arith.constant 0 : i32
    %c0_i32_0 = arith.constant 0 : i32
    %c0_i32_1 = arith.constant 0 : i32
    return %arg1, %c0_i32, %c0_i32_0 : i32, i32, i32
  }
  func.func @transform_3(%arg0: i32, %arg1: i32) -> (i32, i32, i32) {
    %c0_i32 = arith.constant 0 : i32
    %c0_i32_0 = arith.constant 0 : i32
    %c0_i32_1 = arith.constant 0 : i32
    return %arg1, %c0_i32, %c0_i32_0 : i32, i32, i32
  }
  func.func @transform_4(%arg0: i32, %arg1: i32) -> (i32, i32, i32) {
    %c0_i32 = arith.constant 0 : i32
    %c0_i32_0 = arith.constant 0 : i32
    %c0_i32_1 = arith.constant 0 : i32
    return %arg1, %c0_i32, %c0_i32_0 : i32, i32, i32
  }
  func.func @transform_5(%arg0: i32, %arg1: i32) -> (i32, i32, i32) {
    %c0_i32 = arith.constant 0 : i32
    %c0_i32_0 = arith.constant 0 : i32
    %c0_i32_1 = arith.constant 0 : i32
    return %arg1, %c0_i32, %c0_i32_0 : i32, i32, i32
  }
  func.func @transform_6(%arg0: i32, %arg1: i32) -> (i32, i32, i32) {
    %c0_i32 = arith.constant 0 : i32
    %c0_i32_0 = arith.constant 0 : i32
    %c0_i32_1 = arith.constant 0 : i32
    return %arg1, %c0_i32, %c0_i32_0 : i32, i32, i32
  }
  func.func @transform_7(%arg0: i32, %arg1: i32) -> (i32, i32, i32) {
    %c0_i32 = arith.constant 0 : i32
    %c0_i32_0 = arith.constant 0 : i32
    %c0_i32_1 = arith.constant 0 : i32
    return %arg1, %c0_i32, %c0_i32_0 : i32, i32, i32
  }
  func.func @transform_8(%arg0: i32, %arg1: i32) -> (i32, i32, i32) {
    %c0_i32 = arith.constant 0 : i32
    %c0_i32_0 = arith.constant 0 : i32
    %c0_i32_1 = arith.constant 0 : i32
    return %arg1, %c0_i32, %c0_i32_0 : i32, i32, i32
  }
  func.func @transform_9(%arg0: i32, %arg1: i32) -> (i32, i32, i32) {
    %c0_i32 = arith.constant 0 : i32
    %c0_i32_0 = arith.constant 0 : i32
    %c0_i32_1 = arith.constant 0 : i32
    return %arg1, %c0_i32, %c0_i32_0 : i32, i32, i32
  }
  func.func @transform_10(%arg0: i32, %arg1: i32) -> (i32, i32, i32) {
    %c0_i32 = arith.constant 0 : i32
    %c0_i32_0 = arith.constant 0 : i32
    %c0_i32_1 = arith.constant 0 : i32
    return %arg1, %c0_i32, %c0_i32_0 : i32, i32, i32
  }
  func.func @transform_11(%arg0: i32, %arg1: i32) -> (i32, i32, i32) {
    %c0_i32 = arith.constant 0 : i32
    %c0_i32_0 = arith.constant 0 : i32
    %c0_i32_1 = arith.constant 0 : i32
    return %arg1, %c0_i32, %c0_i32_0 : i32, i32, i32
  }
  func.func @transform_12(%arg0: i32, %arg1: i32) -> (i32, i32, i32) {
    %c0_i32 = arith.constant 0 : i32
    %c0_i32_0 = arith.constant 0 : i32
    %c0_i32_1 = arith.constant 0 : i32
    return %arg1, %c0_i32, %c0_i32_0 : i32, i32, i32
  }
  func.func @transform_13(%arg0: i32, %arg1: i32) -> (i32, i32) {
    %c0_i32 = arith.constant 0 : i32
    %c0_i32_0 = arith.constant 0 : i32
    %c0_i32_1 = arith.constant 0 : i32
    return %c0_i32, %c0_i32_0 : i32, i32
  }
  func.func @transform_14(%arg0: i32, %arg1: i32) -> (i32, i32) {
    %c0_i32 = arith.constant 0 : i32
    %c0_i32_0 = arith.constant 0 : i32
    %c0_i32_1 = arith.constant 0 : i32
    return %c0_i32, %c0_i32_0 : i32, i32
  }
  func.func @transform_15(%arg0: i32, %arg1: i32) -> (i32, i32) {
    %c0_i32 = arith.constant 0 : i32
    %c0_i32_0 = arith.constant 0 : i32
    %c0_i32_1 = arith.constant 0 : i32
    return %c0_i32, %c0_i32_0 : i32, i32
  }
  func.func @transform_16(%arg0: i32, %arg1: i32) -> (i32, i32, i32) {
    %c0_i32 = arith.constant 0 : i32
    %c0_i32_0 = arith.constant 0 : i32
    %c0_i32_1 = arith.constant 0 : i32
    return %arg0, %c0_i32, %c0_i32_0 : i32, i32, i32
  }
}

</mosaic_0001>

<bundles_post_ra>
// kernel: gpt_reward_forward.1
= control target key start
LH: loop header
LB: loop body
LE: loop exit
PB: predicated region body
PF: predicated region fallthrough
CT: control target
= control target key end

     0   :  { %s7987_s0 = inlined_call_operand.vmem [shape: f32[4,16,256], index: 0, kind: input, shape index: {}]   ;;  %s7988_s1 = inlined_call_operand.vmem [shape: f32[2,1,256], index: 1, kind: input, shape index: {}]   ;;  %s7989_s2 = inlined_call_operand.vmem [shape: f32[2,1,256], index: 2, kind: input, shape index: {}]   ;;  %s7990_s3 = inlined_call_operand.hbm [shape: bf16[2,256,768], index: 3, kind: input, shape index: {}]   ;;  %s7991_s4 = inlined_call_operand.vmem [shape: f32[2,1,768], index: 4, kind: input, shape index: {}]   ;;  %s7992_s5 = inlined_call_operand.vmem [shape: bf16[2,256,256], index: 5, kind: input, shape index: {}]   ;;  %s7993_s6 = inlined_call_operand.vmem [shape: f32[2,1,256], index: 6, kind: input, shape index: {}]   ;;  %s7994_s7 = inlined_call_operand.vmem [shape: f32[2,1,256], index: 7, kind: input, shape index: {}]   ;;  %s7995_s8 = inlined_call_operand.vmem [shape: f32[2,1,256], index: 8, kind: input, shape index: {}]   ;;  %s7996_s9 = inlined_call_operand.hbm [shape: bf16[2,256,1024], index: 9, kind: input, shape index: {}]   ;;  %s7997_s10 = inlined_call_operand.vmem [shape: f32[2,1,1024], index: 10, kind: input, shape index: {}]   ;;  %s7998_s11 = inlined_call_operand.hbm [shape: bf16[2,1024,256], index: 11, kind: input, shape index: {}]   ;;  %s7999_s12 = inlined_call_operand.vmem [shape: f32[2,1,256], index: 12, kind: input, shape index: {}]   ;;  %s8000_s13 = inlined_call_operand.vmem [shape: f32[1,256], index: 13, kind: input, shape index: {}]   ;;  %s8001_s14 = inlined_call_operand.vmem [shape: f32[1,256], index: 14, kind: input, shape index: {}]   ;;  %s8002_s15 = inlined_call_operand.vmem [shape: f32[1,256], index: 15, kind: input, shape index: {}]   ;;  %s8003_s16 = inlined_call_operand.vmem [shape: f32[2,2,1], index: 16, kind: output, shape index: {}]  }
   0x1   :  { %8014 = sst [smem:[#allocation20_spill]] %s7987_s0 }
   0x2   :  { %8015 = sst [smem:[#allocation21_spill]] %s7990_s3 }
   0x3   :  { %8016 = sst [smem:[#allocation22_spill]] %s7992_s5 }
   0x4   :  { %8017 = sst [smem:[#allocation23_spill]] %s7994_s7 }
   0x5   :  { %8018 = sst [smem:[#allocation24_spill]] %s7995_s8 }
   0x6   :  { %8019 = sst [smem:[#allocation25_spill]] %s7996_s9 }
   0x7   :  { %8020 = sst [smem:[#allocation26_spill]] %s7997_s10 }
   0x8   :  { %8021 = sst [smem:[#allocation27_spill]] %s7998_s11 }
   0x9   :  { %8022 = sst [smem:[#allocation28_spill]] %s7999_s12 }
   0xa   :  { %8023 = sst [smem:[#allocation29_spill]] %s8000_s13 }
   0xb   :  { %8024 = sst [smem:[#allocation30_spill]] %s8001_s14 }
   0xc   :  { %8025 = sst [smem:[#allocation31_spill]] %s8002_s15 }
   0xd   :  { %8026 = sst [smem:[#allocation32_spill]] %s8003_s16 }
   0xe   :  { %21 = vsyncpa [#allocation4], 0 }
   0xf   :  { %23 = vsyncpa [#allocation4 + $0x1], 0 }
  0x10   :  { %24 = vsyncpa [#allocation6], 0 }
  0x11   :  { %26 = vsyncpa [#allocation6 + $0x1], 0  ;;  %s6665_s21 = smov 0   ;;  %s6667_s22 = smov 0  }
  0x12   :  { %s6669_s23 = smov 0   ;;  %s6671_s24 = smov 0  }
  0x13   :  { %s6673_s25 = smov 0   ;;  %s6675_s26 = smov 0  }
  0x14   :  { %s6677_s27 = smov 0   ;;  %s6679_s28 = smov 0  }
  0x15 LB: > { %8027 = sst [smem:[#allocation10_spill]] %s6543_s22  ;;  %s8006_s29 = sadd.s32 4294967295, %s6567_s28   ;;  %s6567_s28 = sphi %s6679_s28, %s32_s28   ;;  %s6563_s27 = sphi %s6677_s27, %s8070_s27   ;;  %s6559_s26 = sphi %s6675_s26, %s8069_s26   ;;  %s6555_s25 = sphi %s6673_s25, %s8068_s25   ;;  %s6551_s24 = sphi %s6671_s24, %s8067_s24   ;;  %s6547_s23 = sphi %s6669_s23, %s8066_s23   ;;  %s6543_s22 = sphi %s6667_s22, %s8065_s22   ;;  %s6539_s21 = sphi %s6665_s21, %s8064_s21  }
  0x16   : > { %8028 = sst [smem:[#allocation11_spill]] %s6547_s23  ;;  %s41_s30 = sadd.s32 1, %s6559_s26 }
  0x17   : > { %8029 = sst [smem:[#allocation12_spill]] %s6559_s26  ;;  %p42_p0 = scmp.ge.s32.totalorder %s41_s30, 2 }
  0x18   : > { %8030 = sst [smem:[#allocation13_spill]] %s6563_s27  ;;  %s44_s0 = sadd.s32 1, %s6563_s27 }
  0x19   : > { %8031 = sst [smem:[#allocation14_spill]] %s6567_s28  ;;  %s129_s17 = sadd.s32 1, %s6547_s23 }
  0x1a   : > { %p136_p1 = scmp.ne.s32.totalorder %s6547_s23, %s6543_s22  ;;  %s8072_s30 = smov (%p42_p0, %s41_s30), 0 }
  0x1b   : > { %8032 = sst [smem:[#allocation15_spill]] %s8072_s30  ;;  %s8074_s0 = smov (!%p42_p0, %s44_s0), %s6563_s27 }
  0x1c   : > { %s126_s18 = ssub.s32 %s6559_s26, %s8072_s30  ;;  %p137_p2 = scmp.eq.s32.totalorder %s6567_s28, 0 }
  0x1d   : > { %p46_p3 = scmp.ge.s32.totalorder %s8074_s0, 2  ;;  %p127_p4 = scmp.eq.s32.totalorder %s126_s18, 0 }
  0x1e   : > { %p138_p5 = por %p137_p2, %p136_p1  ;;  %p142_p6 = scmp.ne.s32.totalorder %s6543_s22, %s6539_s21 }
  0x1f   : > { %s8076_s0 = smov (%p46_p3, %s8074_s0), 0  ;;  %p143_p7 = scmp.eq.s32.totalorder %s8006_s29, 0 }
  0x20   : > { %8033 = sst [smem:[#allocation16_spill]] %s8076_s0  ;;  %p5828_p8 = scmp.lt.s32.totalorder %s6567_s28, 4 }
  0x21   : > { %s6719_s19 = scalar_select %p127_p4, %s6547_s23, %s129_s17  }
  0x22   : > { %s6725_s20 = sand.u32 1, %s6547_s23   ;;  %p6727_p9 = por %p143_p7, %p142_p6 }
  0x23   : > { %8034 = sst [smem:[#allocation17_spill]] %s6719_s19  ;;  %s579_s30 = sand.u32 1, %s6567_s28  }
  0x24   : > { %p6732_p10 = pnand %p5828_p8, %p138_p5  ;;  %s5326_s21 = sshll.u32 %s6725_s20, 10 }
  0x25   : > { %s5740_s17 = sshll.u32 %s6559_s26, 14  ;;  %s8037_s9 = sld [smem:[#allocation25_spill]] }
  0x26   : > { %s583_s19 = scalar_lea.vmem [#allocation5], %s5326_s21  ;;  %s6741_s14 = scalar_lea.sflag [#allocation6], %s579_s30 }
  0x27   : > { %s590_s23 = sshll.u32 %s583_s19, 4  ;;  %p6415_p11 = pneg %p6732_p10  ;;  %s591_s23 = int_to_ptr.vmem [resolvable:$true] %s590_s23 }
  0x28   : > { %s6426_s13 = scalar_lea.vmem %s591_s23, 16384  ;;  %s6569_s16 = smov [#allocation5]  }
  0x29   : > { %p6427_p12 = scmp.ne.s32.totalorder %s591_s23, %s6426_s13  ;;  %s6431_s12 = sshll.u32 %s6569_s16, 4  ;;  %s6432_s12 = int_to_ptr.vmem [resolvable:$false] %s6431_s12 }
  0x2a   : > { %s6433_s10 = scalar_lea.vmem %s6432_s12, 32768  ;;  %p6434_p1 = scmp.lt.s32.totalorder %s591_s23, %s6432_s12 }
  0x2b   : > { %s589_s29 = scalar_lea.hbm %s8037_s9, %s5740_s17  ;;  %p6429_p13 = pnand %p6427_p12, %p6415_p11 }
  0x2c   : > { %p6435_p2 = scmp.lt.s32.totalorder %s6433_s10, %s6426_s13 }
  0x2d   : > { %p6430_p0 = pneg %p6429_p13 }
  0x2e   : > { %p6436_p3 = por %p6435_p2, %p6434_p1 }
  0x30   : > { %p6437_p4 = pnand %p6436_p3, %p6430_p0 }
  0x32   : > { %6440 = shalt.err (!%p6437_p4)
}
  0x33   : > { %s6570_s0 = smov 512   ;;  %s6571_s30 = smov 32  }
  0x34   : > { %5824 = dma.hbm_to_vmem [thread:$0]  (!%p6732_p10), %s589_s29, 16384, %s591_s23, %s6741_s14, %s6570_s0, %s6570_s0, %s6571_s30  }
  0x35   : > { %s8038_s11 = sld [smem:[#allocation27_spill]]  ;;  %s611_s10 = scalar_lea.vmem [#allocation7], %s5326_s21 }
  0x36   : > { %s618_s12 = sshll.u32 %s611_s10, 4  ;;  %p5332_p5 = scmp.ge.s32.totalorder %s6567_s28, 1  ;;  %s6756_s12 = int_to_ptr.vmem [resolvable:$true] %s618_s12 }
  0x37   : > { %p633_p6 = scmp.lt.s32.totalorder %s6567_s28, 5  ;;  %s5808_s9 = smul.u32 768, %s6725_s20 }
  0x38   : > { %s5809_s8 = smul.u32 12288, %s6559_s26  ;;  %s8040_s3 = sld [smem:[#allocation21_spill]] }
  0x39   : > { %p6760_p7 = pnand %p5332_p5, %p633_p6  ;;  %s526_s0 = scalar_lea.vmem [#allocation3], %s5808_s9 }
  0x3a   : > { %s523_s30 = scalar_lea.sflag [#allocation4], %s6725_s20  ;;  %s6572_s19 = smov [#allocation3]  }
  0x3b   : > { %s6754_s18 = scalar_lea.hbm %s8038_s11, %s5740_s17  ;;  %s533_s17 = sshll.u32 %s526_s0, 4  ;;  %s534_s17 = int_to_ptr.vmem [resolvable:$true] %s533_s17 }
  0x3c   : > { %s6454_s21 = scalar_lea.vmem %s534_s17, 12288  ;;  %s6459_s16 = sshll.u32 %s6572_s19, 4  ;;  %s6460_s16 = int_to_ptr.vmem [resolvable:$false] %s6459_s16 }
  0x3d   : > { %p6455_p8 = scmp.ne.s32.totalorder %s534_s17, %s6454_s21  ;;  %s6461_s10 = scalar_lea.vmem %s6460_s16, 24576 }
  0x3e   : > { %s532_s29 = scalar_lea.hbm %s8040_s3, %s5809_s8  ;;  %p6462_p0 = scmp.lt.s32.totalorder %s534_s17, %s6460_s16 }
  0x3f   : > { %p6457_p12 = pnand %p6455_p8, %p6415_p11  ;;  %p6463_p1 = scmp.lt.s32.totalorder %s6461_s10, %s6454_s21 }
  0x41   : > { %p6458_p13 = pneg %p6457_p12  ;;  %p6464_p2 = por %p6463_p1, %p6462_p0 }
  0x43   : > { %p6465_p3 = pnand %p6464_p2, %p6458_p13 }
  0x45   : > { %6468 = shalt.err (!%p6465_p3)
}
  0x46   : > { %s6573_s7 = smov 384   ;;  %s6574_s8 = smov 24  }
  0x47   : > { %5821 = dma.hbm_to_vmem [thread:$0]  (!%p6732_p10), %s532_s29, 12288, %s534_s17, %s523_s30, %s6573_s7, %s6573_s7, %s6574_s8  }
  0x48   : > { %s6482_s9 = scalar_lea.vmem %s6756_s12, 16384  ;;  %s6575_s20 = smov [#allocation7]  }
  0x49   : > { %p6483_p4 = scmp.ne.s32.totalorder %s6756_s12, %s6482_s9  ;;  %s6487_s23 = sshll.u32 %s6575_s20, 4  ;;  %s6488_s23 = int_to_ptr.vmem [resolvable:$false] %s6487_s23 }
  0x4a   : > { %s6489_s0 = scalar_lea.vmem %s6488_s23, 32768  ;;  %p6490_p8 = scmp.lt.s32.totalorder %s6756_s12, %s6488_s23 }
  0x4b   : > { %p6485_p5 = pnand %p6483_p4, %p6415_p11  ;;  %p6491_p12 = scmp.lt.s32.totalorder %s6489_s0, %s6482_s9 }
  0x4d   : > { %p6486_p6 = pneg %p6485_p5  ;;  %p6492_p13 = por %p6491_p12, %p6490_p8 }
  0x4f   : > { %p6493_p0 = pnand %p6492_p13, %p6486_p6 }
  0x51   : > { %6496 = shalt.err (!%p6493_p0)
}
  0x52   : > { %s6576_s21 = smov 128   ;;  %s6577_s29 = smov 8  }
  0x53   : > { %5827 = dma.hbm_to_vmem [thread:$0]  (!%p6732_p10), %s6754_s18, 16384, %s6756_s12, %s6741_s14, %s6576_s21, %s6576_s21, %s6577_s29  }
  0x54   : > { %637 = sbr.rel (%p6760_p7) target bundleno = 2896 (0xb50), region = 84 }
  0x59   : > { %s6789_s17 = sand.u32 1, %s6543_s22  }
  0x5a   : > { %s5810_s30 = smul.u32 768, %s6789_s17  ;;  %s640_s19 = scalar_lea.sflag [#allocation4], %s6789_s17 }
  0x5c   : > { %s6793_s16 = scalar_lea.vmem [#allocation3], %s5810_s30 }
  0x5d   : > { %6530 = dma.done.wait (%p6727_p9), %s640_s19, 12288  }
  0x5e   : > { %6532 = vsyncadd (%p6727_p9), %s640_s19, 4294955008  ;;  %s8041_s14 = sadd.s32 4294967295, %s6567_s28   ;;  %s8008_s18 = sshll.u32 %s6789_s17, 10 }
  0x5f   : > { %s648_s27 = sand.u32 1, %s8041_s14   ;;  %s6804_s13 = scalar_lea.vmem [#allocation5], %s8008_s18 }
  0x60   : > { %s649_s12 = scalar_lea.sflag [#allocation6], %s648_s27  ;;  %8042 = sst [smem:[#allocation18_spill]] %s6804_s13 }
  0x61   : > { %6534 = dma.done.wait (%p6727_p9), %s649_s12, 32768  }
  0x62   : > { %6536 = vsyncadd (%p6727_p9), %s649_s12, 4294934528  ;;  %s5335_s10 = sshll.u32 %s6555_s25, 1  ;;  %p769_p11 = scmp.lt.s32.totalorder %s6551_s24, 1 }
  0x63   : > { %p763_p10 = scmp.lt.s32.totalorder %s5335_s10, 3  ;;  %p806_p7 = scmp.lt.s32.totalorder %s6555_s25, 1 }
  0x64   : > { %s770_s7 = scalar_select %p769_p11, %s6551_s24, 1 }
  0x65   : > { %s8078_s10 = smov (!%p763_p10, %s5335_s10), 3  ;;  %s8043_s23 = sld [smem:[#allocation20_spill]] }
  0x66   : > { %s5742_s8 = sshll.u32 %s8078_s10, 5  ;;  %s6819_s15 = sshll.u32 %s770_s7, 1 }
  0x67   : > { %s5811_s12 = smul.u32 6, %s770_s7  ;;  %s5743_s10 = sshll.u32 %s770_s7, 8 }
  0x68   : > { %s8044_s5 = sld [smem:[#allocation22_spill]]  ;;  %s8080_s25 = smov (!%p806_p7, %s6555_s25), 1 }
  0x69   : > { %s6841_s11 = scalar_lea.vmem %s7991_s4, %s5811_s12  ;;  %s8046_s19 = sld [smem:[#allocation23_spill]] }
  0x6a   : > { %s8047_s28 = sld [smem:[#allocation24_spill]]  ;;  %s5347_s18 = sshll.u32 %s8080_s25, 1 }
  0x6b   : > { %s6817_s0 = scalar_lea.vmem %s8043_s23, %s5742_s8  ;;  %s5345_s8 = sshll.u32 %s770_s7, 3 }
  0x6c   : > { %s8049_s29 = sld [smem:[#allocation28_spill]]  ;;  %s8051_s22 = sshll.u32 %s6789_s17, 10 }
  0x6d   : > { %s8050_s30 = sld [smem:[#allocation32_spill]]  ;;  %p5348_p9 = scmp.ne.s32.totalorder %s6551_s24, 0 }
  0x6e   : > { %s6832_s20 = scalar_lea.vmem %s8044_s5, %s5743_s10  ;;  %s8048_s5 = sld [smem:[#allocation26_spill]] }
  0x6f   : > { %8045 = sst [smem:[#allocation19_spill]] %s6832_s20  ;;  %s793_s14 = scalar_lea.vmem %s8046_s19, %s6819_s15 }
  0x70   : > { %s797_s13 = scalar_lea.vmem %s8047_s28, %s6819_s15  ;;  %s6870_s28 = scalar_lea.vmem [#allocation7], %s8051_s22 }
  0x71   : > { %814 = sbr.rel (%p5348_p9) target bundleno = 123 (0x7b), region = 100 }
  0x72   : > { %s805_s3 = scalar_lea.vmem %s8049_s29, %s6819_s15 }
  0x73   : > { %s6866_s19 = scalar_lea.vmem %s8050_s30, %s5347_s18 }
  0x74   : > { %s6854_s20 = scalar_lea.vmem %s8048_s5, %s5345_s8 }
  0x76   : > { %v815_v0 = vld [vmem:[%s6817_s0] sm:$0xff]  ;;  %v816_v1 = vld [vmem:[%s6817_s0 + $0x8] sm:$0xff]  ;;  %v817_v2 = vld [vmem:[%s6817_s0 + $0x10] sm:$0xff] }
  0x77   : > { %823 = vst [vmem:[#allocation2 + $0x30] sm:$0xff] %v815_v0  ;;  %824 = vst [vmem:[#allocation2] sm:$0xff] %v816_v1  ;;  %v818_v3 = vld [vmem:[%s6817_s0 + $0x18] sm:$0xff]  ;;  %v819_v4 = vld [vmem:[%s6817_s0 + $0x20] sm:$0xff] }
  0x78   : > { %825 = vst [vmem:[#allocation2 + $0x18] sm:$0xff] %v817_v2  ;;  %v820_v5 = vld [vmem:[%s6817_s0 + $0x28] sm:$0xff]  ;;  %826 = vst [vmem:[#allocation2 + $0x10] sm:$0xff] %v818_v3  ;;  %v821_v6 = vld [vmem:[%s6817_s0 + $0x30] sm:$0xff] }
  0x79   : > { %827 = vst [vmem:[#allocation2 + $0x8] sm:$0xff] %v819_v4  ;;  %828 = vst [vmem:[#allocation2 + $0x20] sm:$0xff] %v820_v5  ;;  %v822_v7 = vld [vmem:[%s6817_s0 + $0x38] sm:$0xff] }
  0x7a   : > { %829 = vst [vmem:[#allocation2 + $0x28] sm:$0xff] %v821_v6  ;;  %830 = vst [vmem:[#allocation2 + $0x38] sm:$0xff] %v822_v7 }
  0x7b PF: > { %v5901_v20 = vld [vmem:[%s6793_s16 + $0x154] ss:$24 sps:$4 sm:$0xff]   ;;  %v5903_v21 = vld [vmem:[%s6793_s16 + $0x150] ss:$24 sps:$4 sm:$0xff]   ;;  %v5907_v24 = vld [vmem:[%s6793_s16 + $0x124] ss:$24 sps:$4 sm:$0xff]   ;;  %s8052_s17 = scalar_lea.vmem %s7988_s1, %s6819_s15  ;;  %s8053_s27 = scalar_lea.vmem %s7989_s2, %s6819_s15 }
  0x7c   : > { %v5904_v22 = vld [vmem:[%s6793_s16 + $0x15c] ss:$24 sps:$4 sm:$0xff]   ;;  %v5906_v23 = vld [vmem:[%s6793_s16 + $0x158] ss:$24 sps:$4 sm:$0xff]   ;;  %1556 = vmatprep.subr.bf16.mxu0 %v5901_v20  ;;  %v5910_v25 = vld [vmem:[%s6793_s16 + $0x12c] ss:$24 sps:$4 sm:$0xff]   ;;  %s8055_s8 = scalar_lea.vmem %s7993_s6, %s6819_s15 }
  0x7d   : > { %1609 = vmatprep.subr.bf16.mxu1 %v5904_v22  ;;  %1557 = vmatpush1.bf16.msra.mxu0 %v5903_v21  ;;  %v5909_v26 = vld [vmem:[%s6793_s16 + $0x120] ss:$24 sps:$4 sm:$0xff]   ;;  %v5913_v28 = vld [vmem:[%s6793_s16 + $0xf4] ss:$24 sps:$4 sm:$0xff]   ;;  %v5915_v30 = vld [vmem:[%s6793_s16 + $0xf0] ss:$24 sps:$4 sm:$0xff]  }
  0x7e   : > { %v6881_v8 = vld [vmem:[#allocation2 + $0x30] sm:$0xff]  ;;  %v6883_v9 = vld [vmem:[#allocation2] sm:$0xff]  ;;  %1610 = vmatpush1.bf16.msra.mxu1 %v5906_v23  ;;  %1558 = vmatprep.subr.bf16.mxu0 %v5907_v24  ;;  %vm6579_vm0 = vmmov 0   ;;  %vm1910_vm2 = vcmask 130048   ;;  %s8056_s10 = sld [smem:[#allocation18_spill]]  ;;  %p5737_p1 = scmp.ne.s32.totalorder %s6551_s24, 1 }
  0x7f   : > { %v841_v11 = vadd.f32 %v6883_v9, %v6881_v8  ;;  %v6891_v13 = vld [vmem:[#allocation2 + $0x18] sm:$0xff]  ;;  %v6893_v14 = vld [vmem:[#allocation2 + $0x10] sm:$0xff]  ;;  %v5912_v27 = vld [vmem:[%s6793_s16 + $0x128] ss:$24 sps:$4 sm:$0xff]   ;;  %1611 = vmatprep.subr.bf16.mxu1 %v5910_v25 }
  0x80   : > { %v6885_v10 = vld [vmem:[#allocation2 + $0x8] sm:$0xff]  ;;  %v6889_v12 = vld [vmem:[#allocation2 + $0x20] sm:$0xff]  ;;  %v844_v18 = vadd.f32 %v6893_v14, %v6891_v13  ;;  %v5916_v29 = vld [vmem:[%s6793_s16 + $0xfc] ss:$24 sps:$4 sm:$0xff]  }
  0x81   : > { %v847_v15 = vadd.f32 %v6889_v12, %v6885_v10  ;;  %v6897_v16 = vld [vmem:[#allocation2 + $0x28] sm:$0xff]  ;;  %v6899_v17 = vld [vmem:[#allocation2 + $0x38] sm:$0xff]  ;;  %842 = vadd.xlane.f32.xlu0 %v841_v11  ;;  %1559 = vmatpush1.bf16.msra.mxu0 %v5909_v26 }
  0x82   : > { %v850_v19 = vadd.f32 %v6899_v17, %v6897_v16  ;;  %1612 = vmatpush1.bf16.msra.mxu1 %v5912_v27  ;;  %v5918_v31 = vld [vmem:[%s6793_s16 + $0xf8] ss:$24 sps:$4 sm:$0xff]   ;;  %1560 = vmatprep.subr.bf16.mxu0 %v5913_v28  ;;  %v5919_v32 = vld [vmem:[%s6793_s16 + $0xc4] ss:$24 sps:$4 sm:$0xff]   ;;  %v5924_v35 = vld [vmem:[%s6793_s16 + $0xc8] ss:$24 sps:$4 sm:$0xff]  }
  0x83   : > { %848 = vadd.xlane.f32.xlu1 %v847_v15  ;;  %1613 = vmatprep.subr.bf16.mxu1 %v5916_v29  ;;  %v5922_v33 = vld [vmem:[%s6793_s16 + $0xcc] ss:$24 sps:$4 sm:$0xff]   ;;  %v5921_v34 = vld [vmem:[%s6793_s16 + $0xc0] ss:$24 sps:$4 sm:$0xff]   ;;  %v5928_v37 = vld [vmem:[%s6793_s16 + $0x9c] ss:$24 sps:$4 sm:$0xff]  }
  0x84   : > { %v5925_v36 = vld [vmem:[%s6793_s16 + $0x94] ss:$24 sps:$4 sm:$0xff]   ;;  %v5927_v38 = vld [vmem:[%s6793_s16 + $0x90] ss:$24 sps:$4 sm:$0xff]   ;;  %v5931_v40 = vld [vmem:[%s6793_s16 + $0x64] ss:$24 sps:$4 sm:$0xff]  }
  0x85   : > { %845 = vadd.xlane.f32.xlu0 %v844_v18  ;;  %1561 = vmatpush1.bf16.msra.mxu0 %v5915_v30  ;;  %v5930_v39 = vld [vmem:[%s6793_s16 + $0x98] ss:$24 sps:$4 sm:$0xff]   ;;  %v5934_v41 = vld [vmem:[%s6793_s16 + $0x6c] ss:$24 sps:$4 sm:$0xff]   ;;  %v5936_v43 = vld [vmem:[%s6793_s16 + $0x68] ss:$24 sps:$4 sm:$0xff]  }
  0x86   : > { %1614 = vmatpush1.bf16.msra.mxu1 %v5918_v31  ;;  %1562 = vmatprep.subr.bf16.mxu0 %v5919_v32  ;;  %v5933_v42 = vld [vmem:[%s6793_s16 + $0x60] ss:$24 sps:$4 sm:$0xff]   ;;  %v5937_v44 = vld [vmem:[%s6793_s16 + $0x34] ss:$24 sps:$4 sm:$0xff]   ;;  %v5939_v46 = vld [vmem:[%s6793_s16 + $0x30] ss:$24 sps:$4 sm:$0xff]  }
  0x87   : > { %851 = vadd.xlane.f32.xlu1 %v850_v19  ;;  %1615 = vmatprep.subr.bf16.mxu1 %v5922_v33  ;;  %v5940_v45 = vld [vmem:[%s6793_s16 + $0x3c] ss:$24 sps:$4 sm:$0xff]   ;;  %v5942_v47 = vld [vmem:[%s6793_s16 + $0x38] ss:$24 sps:$4 sm:$0xff]   ;;  %v5946_v49 = vld [vmem:[%s6793_s16 + $0xc] ss:$24 sps:$4 sm:$0xff]  }
  0x88   : > { %v5943_v48 = vld [vmem:[%s6793_s16 + $0x4] ss:$24 sps:$4 sm:$0xff]   ;;  %v5945_v50 = vld [vmem:[%s6793_s16] ss:$24 sps:$4 sm:$0xff]   ;;  %v5949_v52 = vld [vmem:[%s6793_s16 + $0x2d4] ss:$24 sps:$4 sm:$0xff]  }
  0x89   : > { %1563 = vmatpush1.bf16.msra.mxu0 %v5921_v34  ;;  %v5948_v51 = vld [vmem:[%s6793_s16 + $0x8] ss:$24 sps:$4 sm:$0xff]   ;;  %v5952_v53 = vld [vmem:[%s6793_s16 + $0x2dc] ss:$24 sps:$4 sm:$0xff]   ;;  %v5954_v19 = vld [vmem:[%s6793_s16 + $0x2d8] ss:$24 sps:$4 sm:$0xff]  }
  0x8a   : > { %1616 = vmatpush1.bf16.msra.mxu1 %v5924_v35  ;;  %1564 = vmatprep.subr.bf16.mxu0 %v5925_v36  ;;  %v5951_v54 = vld [vmem:[%s6793_s16 + $0x2d0] ss:$24 sps:$4 sm:$0xff]   ;;  %v5955_v20 = vld [vmem:[%s6793_s16 + $0x2a4] ss:$24 sps:$4 sm:$0xff]   ;;  %v5957_v21 = vld [vmem:[%s6793_s16 + $0x2a0] ss:$24 sps:$4 sm:$0xff]  }
  0x8b   : > { %1617 = vmatprep.subr.bf16.mxu1 %v5928_v37  ;;  %v5958_v22 = vld [vmem:[%s6793_s16 + $0x2ac] ss:$24 sps:$4 sm:$0xff]   ;;  %v5960_v23 = vld [vmem:[%s6793_s16 + $0x2a8] ss:$24 sps:$4 sm:$0xff]   ;;  %v5964_v26 = vld [vmem:[%s6793_s16 + $0x27c] ss:$24 sps:$4 sm:$0xff]  }
  0x8c   : > { %v5961_v24 = vld [vmem:[%s6793_s16 + $0x274] ss:$24 sps:$4 sm:$0xff]   ;;  %v5963_v25 = vld [vmem:[%s6793_s16 + $0x270] ss:$24 sps:$4 sm:$0xff]   ;;  %v5967_v28 = vld [vmem:[%s6793_s16 + $0x244] ss:$24 sps:$4 sm:$0xff]  }
  0x8d   : > { %1565 = vmatpush1.bf16.msra.mxu0 %v5927_v38  ;;  %v5966_v27 = vld [vmem:[%s6793_s16 + $0x278] ss:$24 sps:$4 sm:$0xff]   ;;  %v5970_v30 = vld [vmem:[%s6793_s16 + $0x24c] ss:$24 sps:$4 sm:$0xff]   ;;  %v5972_v31 = vld [vmem:[%s6793_s16 + $0x248] ss:$24 sps:$4 sm:$0xff]  }
  0x8e   : > { %1618 = vmatpush1.bf16.msra.mxu1 %v5930_v39  ;;  %1566 = vmatprep.subr.bf16.mxu0 %v5931_v40  ;;  %v5969_v29 = vld [vmem:[%s6793_s16 + $0x240] ss:$24 sps:$4 sm:$0xff]   ;;  %v5973_v32 = vld [vmem:[%s6793_s16 + $0x214] ss:$24 sps:$4 sm:$0xff]   ;;  %v5975_v33 = vld [vmem:[%s6793_s16 + $0x210] ss:$24 sps:$4 sm:$0xff]  }
  0x8f   : > { %1619 = vmatprep.subr.bf16.mxu1 %v5934_v41  ;;  %v5976_v34 = vld [vmem:[%s6793_s16 + $0x21c] ss:$24 sps:$4 sm:$0xff]   ;;  %v5978_v35 = vld [vmem:[%s6793_s16 + $0x218] ss:$24 sps:$4 sm:$0xff]   ;;  %v5982_v37 = vld [vmem:[%s6793_s16 + $0x1ec] ss:$24 sps:$4 sm:$0xff]  }
  0x90   : > { %v5979_v36 = vld [vmem:[%s6793_s16 + $0x1e4] ss:$24 sps:$4 sm:$0xff]   ;;  %v5981_v38 = vld [vmem:[%s6793_s16 + $0x1e0] ss:$24 sps:$4 sm:$0xff]   ;;  %v5985_v40 = vld [vmem:[%s6793_s16 + $0x1b4] ss:$24 sps:$4 sm:$0xff]  }
  0x91   : > { %1567 = vmatpush1.bf16.msra.mxu0 %v5933_v42  ;;  %v5984_v39 = vld [vmem:[%s6793_s16 + $0x1e8] ss:$24 sps:$4 sm:$0xff]   ;;  %v5988_v41 = vld [vmem:[%s6793_s16 + $0x1bc] ss:$24 sps:$4 sm:$0xff]  }
  0x92   : > { %1620 = vmatpush1.bf16.msra.mxu1 %v5936_v43  ;;  %1568 = vmatprep.subr.bf16.mxu0 %v5937_v44  ;;  %v5987_v42 = vld [vmem:[%s6793_s16 + $0x1b0] ss:$24 sps:$4 sm:$0xff]   ;;  %v5991_v44 = vld [vmem:[%s6793_s16 + $0x184] ss:$24 sps:$4 sm:$0xff]  }
  0x93   : > { %1621 = vmatprep.subr.bf16.mxu1 %v5940_v45  ;;  %v5990_v43 = vld [vmem:[%s6793_s16 + $0x1b8] ss:$24 sps:$4 sm:$0xff]   ;;  %v5994_v45 = vld [vmem:[%s6793_s16 + $0x18c] ss:$24 sps:$4 sm:$0xff]  }
  0x95   : > { %1569 = vmatpush1.bf16.msra.mxu0 %v5939_v46  ;;  %v5993_v46 = vld [vmem:[%s6793_s16 + $0x180] ss:$24 sps:$4 sm:$0xff]  }
  0x96   : > { %1622 = vmatpush1.bf16.msra.mxu1 %v5942_v47  ;;  %1570 = vmatprep.subr.bf16.mxu0 %v5943_v48  ;;  %v5996_v47 = vld [vmem:[%s6793_s16 + $0x188] ss:$24 sps:$4 sm:$0xff]   ;;  %v5999_v48 = vld [vmem:[%s6793_s16 + $0x164] ss:$24 sps:$4 sm:$0xff]  }
  0x97   : > { %1623 = vmatprep.subr.bf16.mxu1 %v5946_v49 }
  0x99   : > { %1571 = vmatpush1.bf16.msra.mxu0 %v5945_v50 }
  0x9a   : > { %1624 = vmatpush1.bf16.msra.mxu1 %v5948_v51  ;;  %1572 = vmatprep.subr.bf16.mxu0 %v5949_v52 }
  0x9b   : > { %1625 = vmatprep.subr.bf16.mxu1 %v5952_v53 }
  0x9d   : > { %1573 = vmatpush2.bf16.msra.mxu0 %v5951_v54 }
  0x9e   : > { %1626 = vmatpush2.bf16.msra.mxu1 %v5954_v19  ;;  %1574 = vmatprep.subr.bf16.mxu0 %v5955_v20 }
  0x9f   : > { %1627 = vmatprep.subr.bf16.mxu1 %v5958_v22 }
  0xa1   : > { %1575 = vmatpush2.bf16.msra.mxu0 %v5957_v21 }
  0xa2   : > { %1628 = vmatpush2.bf16.msra.mxu1 %v5960_v23  ;;  %1576 = vmatprep.subr.bf16.mxu0 %v5961_v24 }
  0xa3   : > { %1629 = vmatprep.subr.bf16.mxu1 %v5964_v26 }
  0xa5   : > { %1577 = vmatpush2.bf16.msra.mxu0 %v5963_v25 }
  0xa6   : > { %1630 = vmatpush2.bf16.msra.mxu1 %v5966_v27  ;;  %1578 = vmatprep.subr.bf16.mxu0 %v5967_v28 }
  0xa7   : > { %1631 = vmatprep.subr.bf16.mxu1 %v5970_v30 }
  0xa9   : > { %1579 = vmatpush2.bf16.msra.mxu0 %v5969_v29 }
  0xaa   : > { %1632 = vmatpush2.bf16.msra.mxu1 %v5972_v31  ;;  %1580 = vmatprep.subr.bf16.mxu0 %v5973_v32 }
  0xab   : > { %1633 = vmatprep.subr.bf16.mxu1 %v5976_v34 }
  0xad   : > { %1581 = vmatpush2.bf16.msra.mxu0 %v5975_v33 }
  0xae   : > { %1634 = vmatpush2.bf16.msra.mxu1 %v5978_v35  ;;  %1582 = vmatprep.subr.bf16.mxu0 %v5979_v36  ;;  %v6002_v35 = vld [vmem:[%s6793_s16 + $0x134] ss:$24 sps:$4 sm:$0xff]  }
  0xaf   : > { %1635 = vmatprep.subr.bf16.mxu1 %v5982_v37 }
  0xb1   : > { %1583 = vmatpush2.bf16.msra.mxu0 %v5981_v38 }
  0xb2   : > { %1636 = vmatpush2.bf16.msra.mxu1 %v5984_v39  ;;  %1584 = vmatprep.subr.bf16.mxu0 %v5985_v40  ;;  %v6005_v39 = vld [vmem:[%s6793_s16 + $0x104] ss:$24 sps:$4 sm:$0xff]  }
  0xb3   : > { %1637 = vmatprep.subr.bf16.mxu1 %v5988_v41 }
  0xb5   : > { %1585 = vmatpush2.bf16.msra.mxu0 %v5987_v42  ;;  %v6003_v42 = vld [vmem:[%s6793_s16 + $0x100] ss:$24 sps:$4 sm:$0xff]  }
  0xb6   : > { %1638 = vmatpush2.bf16.msra.mxu1 %v5990_v43  ;;  %1586 = vmatprep.subr.bf16.mxu0 %v5991_v44  ;;  %v6008_v44 = vld [vmem:[%s6793_s16 + $0xd4] ss:$24 sps:$4 sm:$0xff]  }
  0xb7   : > { %1639 = vmatprep.subr.bf16.mxu1 %v5994_v45  ;;  %v6006_v45 = vld [vmem:[%s6793_s16 + $0xd0] ss:$24 sps:$4 sm:$0xff]  }
  0xb9   : > { %1587 = vmatpush2.bf16.msra.mxu0 %v5993_v46  ;;  %v6011_v46 = vld [vmem:[%s6793_s16 + $0xa4] ss:$24 sps:$4 sm:$0xff]  }
  0xba   : > { %1640 = vmatpush2.bf16.msra.mxu1 %v5996_v47  ;;  %1662 = vmatprep.subr.bf16.mxu0 %v5999_v48  ;;  %v6009_v47 = vld [vmem:[%s6793_s16 + $0xa0] ss:$24 sps:$4 sm:$0xff]   ;;  %v6014_v48 = vld [vmem:[%s6793_s16 + $0x74] ss:$24 sps:$4 sm:$0xff]  }
 0x10a   : > { %v843_v55 = vpop.xlane.xlu0 %842 }
 0x10b   : > { %v854_v56 = vmul.f32 0.00390625, %v843_v55 }
 0x10c   : > { %v849_v57 = vpop.xlane.xlu1 %848 }
 0x10d   : > { %v856_v58 = vmul.f32 0.00390625, %v849_v57  ;;  %v6941_v59 = vsub.f32 %v6881_v8, %v854_v56  ;;  %v6944_v60 = vsub.f32 %v6883_v9, %v854_v56  ;;  %v907_v56 = vlaneseq }
 0x10e   : > { %v846_v63 = vpop.xlane.xlu0 %845 }
 0x10f   : > { %v6947_v61 = vsub.f32 %v6885_v10, %v856_v58  ;;  %v6950_v62 = vsub.f32 %v6889_v12, %v856_v58  ;;  %v855_v0 = vmul.f32 0.00390625, %v846_v63  ;;  %v866_v2 = vmul.f32 %v6941_v59, %v6941_v59 }
 0x110   : > { %v852_v1 = vpop.xlane.xlu1 %851  ;;  %v867_v3 = vmul.f32 %v6944_v60, %v6944_v60 }
 0x111   : > { %v857_v4 = vmul.f32 0.00390625, %v852_v1  ;;  %v870_v5 = vmul.f32 %v6947_v61, %v6947_v61  ;;  %v871_v6 = vmul.f32 %v6950_v62, %v6950_v62  ;;  %v6961_v7 = vsub.f32 %v6891_v13, %v855_v0 }
 0x112   : > { %v6964_v8 = vsub.f32 %v6893_v14, %v855_v0  ;;  %v874_v9 = vadd.f32 %v867_v3, %v866_v2  ;;  %v7011_v1 = vshrl.u32 %v907_v56, 7 }
 0x113   : > { %v6967_v10 = vsub.f32 %v6897_v16, %v857_v4  ;;  %v6970_v11 = vsub.f32 %v6899_v17, %v857_v4  ;;  %v880_v12 = vadd.f32 %v871_v6, %v870_v5  ;;  %v868_v13 = vmul.f32 %v6961_v7, %v6961_v7  ;;  %v839_v5 = vld [vmem:[%s8052_s17] sm:$0x3]  ;;  %s8062_s17 = sld [smem:[#allocation31_spill]] (!%p5737_p1) }
 0x114   : > { %875 = vadd.xlane.f32.xlu0 %v874_v9  ;;  %v869_v15 = vmul.f32 %v6964_v8, %v6964_v8  ;;  %v7014_v3 = vsub.s32 1, %v7011_v1  ;;  %v7017_v4 = vsub.s32 0, %v7011_v1 }
 0x115   : > { %v872_v14 = vmul.f32 %v6967_v10, %v6967_v10  ;;  %v873_v16 = vmul.f32 %v6970_v11, %v6970_v11 }
 0x116   : > { %v877_v18 = vadd.f32 %v869_v15, %v868_v13  ;;  %v914_v9 = vrot.slane %v839_v5, %v7014_v3  ;;  %v840_v13 = vld [vmem:[%s8053_s27] sm:$0x3] }
 0x117   : > { %v883_v17 = vadd.f32 %v873_v16, %v872_v14  ;;  %v929_v20 = vrot.slane %v840_v13, %v7017_v4 }
 0x118   : > { %881 = vadd.xlane.f32.xlu0 %v880_v12  ;;  %878 = vadd.xlane.f32.xlu1 %v877_v18  ;;  %v910_v12 = vrot.slane %v839_v5, %v7017_v4  ;;  %v6030_v5 = vld [vmem:[%s6793_s16 + $0x250] ss:$24 sps:$4 sm:$0xff]  }
 0x11c   : > { %884 = vadd.xlane.f32.xlu1 %v883_v17  ;;  %v933_v17 = vrot.slane %v840_v13, %v7014_v3  ;;  %v6036_v13 = vld [vmem:[%s6793_s16 + $0x1f0] ss:$24 sps:$4 sm:$0xff]  }
 0x19d   : > { %v876_v49 = vpop.xlane.xlu0 %875 }
 0x19e   : > { %v886_v50 = vmul.f32 0.00390625, %v876_v49  ;;  %v6012_v49 = vld [vmem:[%s6793_s16 + $0x70] ss:$24 sps:$4 sm:$0xff]  }
 0x1a0   : > { %v890_v51 = vadd.f32 1e-05, %v886_v50  ;;  %v6017_v50 = vld [vmem:[%s6793_s16 + $0x44] ss:$24 sps:$4 sm:$0xff]  }
 0x1a1   : > { %v879_v52 = vpop.xlane.xlu1 %878  ;;  %v882_v53 = vpop.xlane.xlu0 %881 }
 0x1a2   : > { %6285 = vrsqrt.f32 %v890_v51  ;;  %v887_v54 = vmul.f32 0.00390625, %v879_v52  ;;  %v888_v55 = vmul.f32 0.00390625, %v882_v53  ;;  %v6015_v51 = vld [vmem:[%s6793_s16 + $0x40] ss:$24 sps:$4 sm:$0xff]   ;;  %v6020_v52 = vld [vmem:[%s6793_s16 + $0x14] ss:$24 sps:$4 sm:$0xff]  }
 0x1a3   : > { %v6018_v53 = vld [vmem:[%s6793_s16 + $0x10] ss:$24 sps:$4 sm:$0xff]  }
 0x1a4   : > { %v891_v57 = vadd.f32 1e-05, %v887_v54  ;;  %v892_v58 = vadd.f32 1e-05, %v888_v55  ;;  %v6023_v54 = vld [vmem:[%s6793_s16 + $0x2e4] ss:$24 sps:$4 sm:$0xff]  }
 0x1a5   : > { %v885_v63 = vpop.xlane.xlu1 %884  ;;  %v6021_v55 = vld [vmem:[%s6793_s16 + $0x2e0] ss:$24 sps:$4 sm:$0xff]  }
 0x1a6   : > { %6287 = vrsqrt.f32 %v891_v57  ;;  %v889_v0 = vmul.f32 0.00390625, %v885_v63  ;;  %v6026_v57 = vld [vmem:[%s6793_s16 + $0x2b4] ss:$24 sps:$4 sm:$0xff]   ;;  %v6029_v63 = vld [vmem:[%s6793_s16 + $0x284] ss:$24 sps:$4 sm:$0xff]  }
 0x1a7   : > { %6289 = vrsqrt.f32 %v892_v58  ;;  %v6024_v58 = vld [vmem:[%s6793_s16 + $0x2b0] ss:$24 sps:$4 sm:$0xff]  }
 0x1a8   : > { %v893_v2 = vadd.f32 1e-05, %v889_v0  ;;  %v6027_v0 = vld [vmem:[%s6793_s16 + $0x280] ss:$24 sps:$4 sm:$0xff]  }
 0x1aa   : > { %6291 = vrsqrt.f32 %v893_v2  ;;  %v6032_v2 = vld [vmem:[%s6793_s16 + $0x254] ss:$24 sps:$4 sm:$0xff]  }
 0x1af   : > { %v6286_v6 = vpop.eup %6285 }
 0x1b0   : > { %v899_v15 = vmul.f32 %v6286_v6, %v6944_v60  ;;  %v898_v14 = vmul.f32 %v6286_v6, %v6941_v59  ;;  %v6035_v6 = vld [vmem:[%s6793_s16 + $0x224] ss:$24 sps:$4 sm:$0xff]  }
 0x1b2   : > { %v918_v18 = vmul.f32 %v914_v9, %v899_v15  ;;  %v917_v19 = vmul.f32 %v910_v12, %v898_v14  ;;  %v6041_v15 = vld [vmem:[%s6793_s16 + $0x1c4] ss:$24 sps:$4 sm:$0xff]   ;;  %v6039_v14 = vld [vmem:[%s6793_s16 + $0x1c0] ss:$24 sps:$4 sm:$0xff]  }
 0x1b3   : > { %v6288_v16 = vpop.eup %6287 }
 0x1b4   : > { %v6290_v21 = vpop.eup %6289  ;;  %v901_v22 = vmul.f32 %v6288_v16, %v6964_v8  ;;  %v900_v23 = vmul.f32 %v6288_v16, %v6961_v7  ;;  %v937_v59 = vadd.f32 %v933_v17, %v918_v18  ;;  %v936_v27 = vadd.f32 %v929_v20, %v917_v19  ;;  %v5997_v7 = vld [vmem:[%s6793_s16 + $0x160] ss:$24 sps:$4 sm:$0xff]   ;;  %v6044_v16 = vld [vmem:[%s6793_s16 + $0x194] ss:$24 sps:$4 sm:$0xff]   ;;  %v6042_v18 = vld [vmem:[%s6793_s16 + $0x190] ss:$24 sps:$4 sm:$0xff]  }
 0x1b5   : > { %v903_v24 = vmul.f32 %v6290_v21, %v6950_v62  ;;  %v902_v33 = vmul.f32 %v6290_v21, %v6947_v61  ;;  %v1056_v19 = vsub.s32 2, %v7011_v1 }
 0x1b6   : > { %v920_v25 = vmul.f32 %v914_v9, %v901_v22  ;;  %v919_v60 = vmul.f32 %v910_v12, %v900_v23 }
 0x1b7   : > { %v6292_v26 = vpop.eup %6291  ;;  %v922_v28 = vmul.f32 %v914_v9, %v903_v24  ;;  %v921_v61 = vmul.f32 %v910_v12, %v902_v33 }
 0x1b8   : > { %v939_v29 = vadd.f32 %v933_v17, %v920_v25  ;;  %v938_v30 = vadd.f32 %v929_v20, %v919_v60  ;;  %v905_v31 = vmul.f32 %v6292_v26, %v6970_v11  ;;  %v904_v32 = vmul.f32 %v6292_v26, %v6967_v10  ;;  %v6000_v11 = vld [vmem:[%s6793_s16 + $0x130] ss:$24 sps:$4 sm:$0xff]  }
 0x1b9   : > { %v941_v37 = vadd.f32 %v933_v17, %v922_v28  ;;  %v940_v41 = vadd.f32 %v929_v20, %v921_v61 }
 0x1ba   : > { %v945_v8 = vpack.c.bf16 %v939_v29, %v937_v59  ;;  %v7042_v62 = vpack.c.bf16 %v938_v30, %v936_v27  ;;  %v924_v34 = vmul.f32 %v914_v9, %v905_v31  ;;  %v923_v36 = vmul.f32 %v910_v12, %v904_v32  ;;  %v6033_v9 = vld [vmem:[%s6793_s16 + $0x220] ss:$24 sps:$4 sm:$0xff]   ;;  %v6038_v12 = vld [vmem:[%s6793_s16 + $0x1f4] ss:$24 sps:$4 sm:$0xff]  }
 0x1bc   : > { %1588 = vmatprep.mubr.bf16.mxu0 %v945_v8  ;;  %1641 = vmatprep.mubr.bf16.mxu1 %v945_v8  ;;  %v943_v38 = vadd.f32 %v933_v17, %v924_v34  ;;  %v942_v40 = vadd.f32 %v929_v20, %v923_v36  ;;  %v6578_v17 = vmov 0.0   ;;  %v7087_v20 = vld [vmem:[%s6841_s11] sm:$0x3f]  ;;  %v1060_v36 = vsub.s32 3, %v7011_v1  ;;  %s8054_s11 = sld [smem:[#allocation19_spill]] }
 0x1bd   : > { %1589 = vmatmul.mubr.bf16.vlgmr.msra.gmra.mxu0 %v7042_v62  ;;  %1642 = vmatmul.mubr.bf16.vlgmr.msra.gmra.mxu1 %v7042_v62  ;;  %v1057_v23 = vrot.slane %v7087_v20, %v1056_v19  ;;  %v1049_v31 = vrot.slane %v7087_v20, %v7017_v4 }
 0x1be   : > { %1663 = vmatpush1.bf16.msra.mxu0 %v5997_v7  ;;  %v7047_v10 = vpack.c.bf16 %v943_v38, %v941_v37  ;;  %v946_v43 = vpack.c.bf16 %v942_v40, %v940_v41  ;;  %5760 = vmatprep.subr.bf16.mxu1 %v6578_v17 }
 0x1bf   : > { %1664 = vmatprep.subr.bf16.mxu0 %v6002_v35 }
 0x1c0   : > { %1598 = vmatprep.mubr.bf16.mxu0 %v7047_v10  ;;  %1651 = vmatprep.mubr.bf16.mxu1 %v7047_v10 }
 0x1c2   : > { %1665 = vmatpush1.bf16.msra.mxu0 %v6000_v11 }
 0x1c3   : > { %1666 = vmatprep.subr.bf16.mxu0 %v6005_v39  ;;  %v1061_v39 = vrot.slane %v7087_v20, %v1060_v36 }
 0x1c5   : > { %1599 = vmatmul.mubr.bf16.gmra.mxu0 %v946_v43  ;;  %1652 = vmatmul.mubr.bf16.gmra.mxu1 %v946_v43 }
 0x1c6   : > { %1667 = vmatpush1.bf16.msra.mxu0 %v6003_v42  ;;  %1694 = vmatprep.mubr.bf16.mxu0 %v945_v8 }
 0x1c7   : > { %1668 = vmatprep.subr.bf16.mxu0 %v6008_v44  ;;  %5762 = vmatprep.mubr.msk.bf16.mxu1 %vm6579_vm0, %v6578_v17 }
 0x1ca   : > { %1669 = vmatpush1.bf16.msra.mxu0 %v6006_v45 }
 0x1cb   : > { %1670 = vmatprep.subr.bf16.mxu0 %v6011_v46  ;;  %v1053_v46 = vrot.slane %v7087_v20, %v7014_v3 }
 0x1ce   : > { %1671 = vmatpush1.bf16.msra.mxu0 %v6009_v47 }
 0x1cf   : > { %1672 = vmatprep.subr.bf16.mxu0 %v6014_v48 }
 0x1d2   : > { %1673 = vmatpush1.bf16.msra.mxu0 %v6012_v49 }
 0x1d3   : > { %1674 = vmatprep.subr.bf16.mxu0 %v6017_v50 }
 0x1d6   : > { %1675 = vmatpush1.bf16.msra.mxu0 %v6015_v51 }
 0x1d7   : > { %1676 = vmatprep.subr.bf16.mxu0 %v6020_v52 }
 0x1da   : > { %1677 = vmatpush1.bf16.msra.mxu0 %v6018_v53 }
 0x1db   : > { %1678 = vmatprep.subr.bf16.mxu0 %v6023_v54 }
 0x1de   : > { %1679 = vmatpush2.bf16.msra.mxu0 %v6021_v55 }
 0x1df   : > { %1680 = vmatprep.subr.bf16.mxu0 %v6026_v57 }
 0x1e2   : > { %1681 = vmatpush2.bf16.msra.mxu0 %v6024_v58 }
 0x1e3   : > { %1682 = vmatprep.subr.bf16.mxu0 %v6029_v63  ;;  %v1064_v63 = vsub.s32 4, %v7011_v1 }
 0x1e6   : > { %1683 = vmatpush2.bf16.msra.mxu0 %v6027_v0 }
 0x1e7   : > { %1684 = vmatprep.subr.bf16.mxu0 %v6032_v2  ;;  %v7116_v2 = vrot.slane %v7087_v20, %v1064_v63 }
 0x1ea   : > { %1685 = vmatpush2.bf16.msra.mxu0 %v6030_v5 }
 0x1eb   : > { %1686 = vmatprep.subr.bf16.mxu0 %v6035_v6 }
 0x1ee   : > { %1687 = vmatpush2.bf16.msra.mxu0 %v6033_v9 }
 0x1ef   : > { %1688 = vmatprep.subr.bf16.mxu0 %v6038_v12 }
 0x1f2   : > { %1689 = vmatpush2.bf16.msra.mxu0 %v6036_v13 }
 0x1f3   : > { %1690 = vmatprep.subr.bf16.mxu0 %v6041_v15  ;;  %v1895_v15 = vand.u32 127, %v907_v56 }
 0x1f5   : > { %vm1896_vm1 = vcmp.le.s32.totalorder %v1895_v15, %v7011_v1 }
 0x1f6   : > { %1691 = vmatpush2.bf16.msra.mxu0 %v6039_v14  ;;  %v1893_v14 = vadd.s32 8, %v7011_v1 }
 0x1f7   : > { %1692 = vmatprep.subr.bf16.mxu0 %v6044_v16 }
 0x1f8   : > { %vm1897_vm3 = vcmp.le.s32.totalorder %v1895_v15, %v1893_v14 }
 0x1fa   : > { %1693 = vmatpush2.bf16.msra.mxu0 %v6042_v18 }
 0x1fd   : > { %1695 = vmatmul.mubr.bf16.vlgmr.msra.gmra.mxu0 %v7042_v62 }
 0x1fe   : > { %1704 = vmatprep.mubr.bf16.mxu0 %v7047_v10 }
 0x205   : > { %1705 = vmatmul.mubr.bf16.gmra.mxu0 %v946_v43 }
 0x27d   : > { %v1590_v21 = vpop.f32.mrf.mxu0  ;;  %v1643_v22 = vpop.f32.mrf.mxu1 }
 0x27e   : > { %v1644_v59 = vadd.f32 %v1643_v22, %v1057_v23  ;;  %v1591_v34 = vadd.f32 %v1590_v21, %v1049_v31 }
 0x27f   : > { %v1592_v24 = vpop.f32.mrf.mxu0  ;;  %v1645_v25 = vpop.f32.mrf.mxu1 }
 0x280   : > { %v1646_v43 = vadd.f32 %v1645_v25, %v1061_v39  ;;  %v1593_v50 = vadd.f32 %v1592_v24, %v1053_v46 }
 0x281   : > { %v1594_v60 = vpop.f32.mrf.mxu0  ;;  %v1647_v26 = vpop.f32.mrf.mxu1 }
 0x282   : > { %v1648_v27 = vadd.f32 %v1647_v26, %v1057_v23  ;;  %v1595_v8 = vadd.f32 %v1594_v60, %v1049_v31 }
 0x283   : > { %v1596_v28 = vpop.f32.mrf.mxu0  ;;  %v1649_v29 = vpop.f32.mrf.mxu1 }
 0x284   : > { %v1719_v30 = vpack.c.bf16 %v1648_v27, %v1644_v59  ;;  %v1715_v61 = vpack.c.bf16 %v1595_v8, %v1591_v34  ;;  %v1650_v41 = vadd.f32 %v1649_v29, %v1061_v39  ;;  %v1597_v48 = vadd.f32 %v1596_v28, %v1053_v46 }
 0x285   : > { %v1600_v32 = vpop.f32.mrf.mxu0  ;;  %v1653_v33 = vpop.f32.mrf.mxu1 }
 0x286   : > { %5761 = vmatpush3.bf16.xpose.msra.mxu1 %v1719_v30  ;;  %v1654_v37 = vadd.f32 %v1653_v33, %v1057_v23  ;;  %v1601_v42 = vadd.f32 %v1600_v32, %v1049_v31  ;;  %v1721_v45 = vpack.c.bf16 %v1650_v41, %v1646_v43  ;;  %v1717_v52 = vpack.c.bf16 %v1597_v48, %v1593_v50 }
 0x287   : > { %v1655_v7 = vpop.f32.mrf.mxu1  ;;  %5766 = vmatprep.subr.bf16.mxu1 %v6578_v17  ;;  %v1602_v62 = vpop.f32.mrf.mxu0 }
 0x288   : > { %v1656_v51 = vadd.f32 %v1655_v7, %v1061_v39  ;;  %v1603_v57 = vadd.f32 %v1602_v62, %v1053_v46 }
 0x289   : > { %v1657_v35 = vpop.f32.mrf.mxu1  ;;  %v1604_v10 = vpop.f32.mrf.mxu0 }
 0x28a   : > { %v1658_v38 = vadd.f32 %v1657_v35, %v1057_v23  ;;  %v1605_v40 = vadd.f32 %v1604_v10, %v1049_v31 }
 0x28b   : > { %v1659_v47 = vpop.f32.mrf.mxu1  ;;  %v1606_v53 = vpop.f32.mrf.mxu0 }
 0x28c   : > { %v1720_v11 = vpack.c.bf16 %v1658_v38, %v1654_v37  ;;  %v1716_v44 = vpack.c.bf16 %v1605_v40, %v1601_v42  ;;  %v1660_v49 = vadd.f32 %v1659_v47, %v1061_v39  ;;  %v1607_v55 = vadd.f32 %v1606_v53, %v1053_v46 }
 0x28d   : > { %5763 = vmatmul.mubr.bf16.vlgmr.msra.gmra.mxu1 %v1715_v61 }
 0x28e   : > { %5767 = vmatpush3.bf16.xpose.msra.mxu1 %v1720_v11  ;;  %5768 = vmatprep.mubr.msk.bf16.mxu1 %vm6579_vm0, %v6578_v17  ;;  %v1722_v54 = vpack.c.bf16 %v1660_v49, %v1656_v51  ;;  %v1718_v58 = vpack.c.bf16 %v1607_v55, %v1603_v57 }
 0x28f   : > { %5772 = vmatprep.subr.bf16.mxu1 %v6578_v17 }
 0x295   : > { %5769 = vmatmul.mubr.bf16.vlgmr.msra.gmra.mxu1 %v1716_v44 }
 0x296   : > { %5773 = vmatpush3.bf16.xpose.msra.mxu1 %v1721_v45  ;;  %5774 = vmatprep.mubr.msk.bf16.mxu1 %vm6579_vm0, %v6578_v17 }
 0x297   : > { %5778 = vmatprep.subr.bf16.mxu1 %v6578_v17 }
 0x29d   : > { %5775 = vmatmul.mubr.bf16.vlgmr.msra.gmra.mxu1 %v1717_v52 }
 0x29e   : > { %5779 = vmatpush3.bf16.xpose.msra.mxu1 %v1722_v54  ;;  %5780 = vmatprep.mubr.msk.bf16.mxu1 %vm6579_vm0, %v6578_v17 }
 0x29f   : > { %5784 = vmatprep.subr.bf16.mxu1 %v6578_v17 }
 0x2a5   : > { %5781 = vmatmul.mubr.bf16.vlgmr.msra.gmra.mxu1 %v1718_v58 }
 0x2a6   : > { %5786 = vmatprep.mubr.msk.bf16.mxu1 %vm6579_vm0, %v6578_v17 }
 0x2bd   : > { %v1696_v0 = vpop.f32.mrf.mxu0 }
 0x2be   : > { %v1697_v9 = vadd.f32 %v1696_v0, %v7116_v2 }
 0x2bf   : > { %v7118_v5 = vpop.f32.mrf.mxu0 }
 0x2c1   : > { %v1700_v6 = vpop.f32.mrf.mxu0 }
 0x2c2   : > { %v1701_v12 = vadd.f32 %v1700_v6, %v7116_v2 }
 0x2c4   : > { %v1723_v13 = vpack.c.bf16 %v1701_v12, %v1697_v9 }
 0x2c6   : > { %5785 = vmatpush3.bf16.msra.mxu1 %v1723_v13 }
 0x2c7   : > { %5790 = vmatprep.subr.bf16.mxu1 %v6578_v17 }
 0x34d   : > { %v1761_v16 = vpop.f32.mrf.mxu1 }
 0x34e   : > { %v1902_v18 = vsel %vm1896_vm1, %v1761_v16, -1e+30 }
 0x34f   : > { %v5764_v21 = vpop.f32.mrf.mxu1  ;;  %v1911_v22 = vsel %vm1910_vm2, %v1902_v18, -inf }
 0x350   : > { %1912 = vmax.xlane.f32.xlu0 %v1911_v22 }
 0x351   : > { %v1764_v23 = vpop.f32.mrf.mxu1 }
 0x352   : > { %v1903_v24 = vsel %vm1897_vm3, %v1764_v23, -1e+30 }
 0x353   : > { %v5765_v25 = vpop.f32.mrf.mxu1  ;;  %v1914_v56 = vsel %vm1910_vm2, %v1903_v24, -inf }
 0x354   : > { %1915 = vmax.xlane.f32.xlu1 %v1914_v56 }
 0x355   : > { %v1802_v60 = vpop.f32.mrf.mxu1 }
 0x356   : > { %v1904_v26 = vsel %vm1896_vm1, %v1802_v60, -1e+30 }
 0x357   : > { %v5770_v59 = vpop.f32.mrf.mxu1  ;;  %v1917_v27 = vsel %vm1910_vm2, %v1904_v26, -inf }
 0x358   : > { %1918 = vmax.xlane.f32.xlu0 %v1917_v27 }
 0x359   : > { %v1805_v28 = vpop.f32.mrf.mxu1 }
 0x35a   : > { %v1905_v29 = vsel %vm1897_vm3, %v1805_v28, -1e+30 }
 0x35b   : > { %v5771_v30 = vpop.f32.mrf.mxu1  ;;  %v1920_v31 = vsel %vm1910_vm2, %v1905_v29, -inf }
 0x35c   : > { %1921 = vmax.xlane.f32.xlu1 %v1920_v31 }
 0x35d   : > { %v1843_v32 = vpop.f32.mrf.mxu1 }
 0x35e   : > { %v1906_v33 = vsel %vm1896_vm1, %v1843_v32, -1e+30 }
 0x35f   : > { %v5776_v8 = vpop.f32.mrf.mxu1  ;;  %v1923_v7 = vsel %vm1910_vm2, %v1906_v33, -inf }
 0x360   : > { %1924 = vmax.xlane.f32.xlu0 %v1923_v7  ;;  %v6045_v8 = vld [vmem:[%s8054_s11 + $0x70] ss:$8 sps:$4 sm:$0xff]   ;;  %v6047_v7 = vld [vmem:[%s8054_s11 + $0x74] ss:$8 sps:$4 sm:$0xff]  }
 0x361   : > { %v1846_v62 = vpop.f32.mrf.mxu1  ;;  %2375 = vmatprep.subr.bf16.mxu0 %v6047_v7 }
 0x362   : > { %v1907_v34 = vsel %vm1897_vm3, %v1846_v62, -1e+30  ;;  %v6050_v62 = vld [vmem:[%s8054_s11 + $0x64] ss:$8 sps:$4 sm:$0xff]   ;;  %2376 = vmatpush1.bf16.msra.mxu0 %v6045_v8 }
 0x363   : > { %v5777_v35 = vpop.f32.mrf.mxu1  ;;  %v1926_v37 = vsel %vm1910_vm2, %v1907_v34, -inf  ;;  %2377 = vmatprep.subr.bf16.mxu0 %v6050_v62 }
 0x364   : > { %1927 = vmax.xlane.f32.xlu1 %v1926_v37  ;;  %v6053_v35 = vld [vmem:[%s8054_s11 + $0x54] ss:$8 sps:$4 sm:$0xff]   ;;  %v6051_v37 = vld [vmem:[%s8054_s11 + $0x50] ss:$8 sps:$4 sm:$0xff]  }
 0x365   : > { %v1884_v38 = vpop.f32.mrf.mxu1 }
 0x366   : > { %v1908_v61 = vsel %vm1896_vm1, %v1884_v38, -1e+30  ;;  %v6056_v38 = vld [vmem:[%s8054_s11 + $0x44] ss:$8 sps:$4 sm:$0xff]  }
 0x367   : > { %v5782_v10 = vpop.f32.mrf.mxu1  ;;  %v1929_v11 = vsel %vm1910_vm2, %v1908_v61, -inf }
 0x368   : > { %1930 = vmax.xlane.f32.xlu0 %v1929_v11  ;;  %v6059_v10 = vld [vmem:[%s8054_s11 + $0x34] ss:$8 sps:$4 sm:$0xff]   ;;  %v6057_v11 = vld [vmem:[%s8054_s11 + $0x30] ss:$8 sps:$4 sm:$0xff]  }
 0x369   : > { %v1887_v39 = vpop.f32.mrf.mxu1 }
 0x36a   : > { %v1909_v40 = vsel %vm1897_vm3, %v1887_v39, -1e+30  ;;  %v6062_v39 = vld [vmem:[%s8054_s11 + $0x24] ss:$8 sps:$4 sm:$0xff]  }
 0x36b   : > { %v5783_v41 = vpop.f32.mrf.mxu1  ;;  %v1932_v42 = vsel %vm1910_vm2, %v1909_v40, -inf }
 0x36c   : > { %1933 = vmax.xlane.f32.xlu1 %v1932_v42  ;;  %v6065_v41 = vld [vmem:[%s8054_s11 + $0x14] ss:$8 sps:$4 sm:$0xff]   ;;  %v6063_v42 = vld [vmem:[%s8054_s11 + $0x10] ss:$8 sps:$4 sm:$0xff]  }
 0x3d9   : > { %v1913_v43 = vpop.xlane.xlu0 %1912 }
 0x3da   : > { %v1935_v44 = vsub.f32 %v1902_v18, %v1913_v43  ;;  %v6068_v43 = vld [vmem:[%s8054_s11 + $0x4] ss:$8 sps:$4 sm:$0xff]  }
 0x3dc   : > { %v1943_v45 = vmul.f32 1.442695, %v1935_v44  ;;  %v6066_v44 = vld [vmem:[%s8054_s11] ss:$8 sps:$4 sm:$0xff]  }
 0x3dd   : > { %v1916_v46 = vpop.xlane.xlu1 %1915 }
 0x3de   : > { %6293 = vpow2.f32 %v1943_v45  ;;  %v1936_v47 = vsub.f32 %v1903_v24, %v1916_v46  ;;  %v6071_v45 = vld [vmem:[%s8054_s11 + $0xf4] ss:$8 sps:$4 sm:$0xff]   ;;  %v6069_v46 = vld [vmem:[%s8054_s11 + $0xf0] ss:$8 sps:$4 sm:$0xff]  }
 0x3e0   : > { %v1945_v48 = vmul.f32 1.442695, %v1936_v47  ;;  %v6074_v47 = vld [vmem:[%s8054_s11 + $0xe4] ss:$8 sps:$4 sm:$0xff]  }
 0x3e1   : > { %v1919_v49 = vpop.xlane.xlu0 %1918 }
 0x3e2   : > { %6295 = vpow2.f32 %v1945_v48  ;;  %v1937_v50 = vsub.f32 %v1904_v26, %v1919_v49  ;;  %v6072_v48 = vld [vmem:[%s8054_s11 + $0xe0] ss:$8 sps:$4 sm:$0xff]  }
 0x3e4   : > { %v1947_v51 = vmul.f32 1.442695, %v1937_v50  ;;  %v1702_v50 = vpop.f32.mrf.mxu0 }
 0x3e5   : > { %v1922_v52 = vpop.xlane.xlu1 %1921 }
 0x3e6   : > { %6297 = vpow2.f32 %v1947_v51  ;;  %v1938_v53 = vsub.f32 %v1905_v29, %v1922_v52  ;;  %v1706_v52 = vpop.f32.mrf.mxu0 }
 0x3e8   : > { %v1949_v54 = vmul.f32 1.442695, %v1938_v53 }
 0x3e9   : > { %v1925_v55 = vpop.xlane.xlu0 %1924 }
 0x3ea   : > { %6299 = vpow2.f32 %v1949_v54  ;;  %v1939_v57 = vsub.f32 %v1906_v33, %v1925_v55  ;;  %v1708_v54 = vpop.f32.mrf.mxu0 }
 0x3eb   : > { %v7146_v58 = vpop.eup %6293 }
 0x3ec   : > { %v1951_v0 = vmul.f32 1.442695, %v1939_v57  ;;  %v1959_v6 = vsel %vm1910_vm2, %v7146_v58, 0.0  ;;  %v1710_v57 = vpop.f32.mrf.mxu0 }
 0x3ed   : > { %v1928_v9 = vpop.xlane.xlu1 %1927  ;;  %1960 = vadd.xlane.f32.xlu0 %v1959_v6 }
 0x3ee   : > { %6301 = vpow2.f32 %v1951_v0  ;;  %v1940_v12 = vsub.f32 %v1907_v34, %v1928_v9  ;;  %v6048_v34 = vld [vmem:[%s8054_s11 + $0x60] ss:$8 sps:$4 sm:$0xff]   ;;  %v1712_v8 = vpop.f32.mrf.mxu0 }
 0x3ef   : > { %v7150_v13 = vpop.eup %6295  ;;  %2378 = vmatpush1.bf16.msra.mxu0 %v6048_v34 }
 0x3f0   : > { %v1953_v15 = vmul.f32 1.442695, %v1940_v12  ;;  %v1962_v14 = vsel %vm1910_vm2, %v7150_v13, 0.0  ;;  %2379 = vmatprep.subr.bf16.mxu0 %v6053_v35  ;;  %v1711_v12 = vadd.f32 %v1710_v57, %v7116_v2 }
 0x3f1   : > { %v1931_v16 = vpop.xlane.xlu0 %1930  ;;  %1963 = vadd.xlane.f32.xlu1 %v1962_v14 }
 0x3f2   : > { %6303 = vpow2.f32 %v1953_v15  ;;  %v1941_v18 = vsub.f32 %v1908_v61, %v1931_v16  ;;  %v6054_v61 = vld [vmem:[%s8054_s11 + $0x40] ss:$8 sps:$4 sm:$0xff]   ;;  %v1068_v16 = vsub.s32 5, %v7011_v1 }
 0x3f3   : > { %v7154_v21 = vpop.eup %6297  ;;  %2380 = vmatpush1.bf16.msra.mxu0 %v6051_v37 }
 0x3f4   : > { %v1955_v22 = vmul.f32 1.442695, %v1941_v18  ;;  %v1965_v23 = vsel %vm1910_vm2, %v7154_v21, 0.0  ;;  %2381 = vmatprep.subr.bf16.mxu0 %v6056_v38  ;;  %v1707_v18 = vadd.f32 %v1706_v52, %v7116_v2 }
 0x3f5   : > { %1966 = vadd.xlane.f32.xlu0 %v1965_v23  ;;  %v1934_v24 = vpop.xlane.xlu1 %1933 }
 0x3f6   : > { %6305 = vpow2.f32 %v1955_v22  ;;  %v1942_v25 = vsub.f32 %v1909_v40, %v1934_v24  ;;  %v6060_v40 = vld [vmem:[%s8054_s11 + $0x20] ss:$8 sps:$4 sm:$0xff]   ;;  %v1724_v24 = vpack.c.bf16 %v1711_v12, %v1707_v18 }
 0x3f7   : > { %v7158_v56 = vpop.eup %6299  ;;  %2382 = vmatpush1.bf16.msra.mxu0 %v6054_v61 }
 0x3f8   : > { %v1957_v60 = vmul.f32 1.442695, %v1942_v25  ;;  %v1968_v26 = vsel %vm1910_vm2, %v7158_v56, 0.0  ;;  %2383 = vmatprep.subr.bf16.mxu0 %v6059_v10 }
 0x3f9   : > { %1969 = vadd.xlane.f32.xlu1 %v1968_v26 }
 0x3fa   : > { %6307 = vpow2.f32 %v1957_v60  ;;  %v1069_v60 = vrot.slane %v7087_v20, %v1068_v16 }
 0x3fb   : > { %v7162_v59 = vpop.eup %6301  ;;  %2384 = vmatpush1.bf16.msra.mxu0 %v6057_v11  ;;  %v6077_v11 = vld [vmem:[%s8054_s11 + $0xd4] ss:$8 sps:$4 sm:$0xff]  }
 0x3fc   : > { %v1971_v27 = vsel %vm1910_vm2, %v7162_v59, 0.0  ;;  %2385 = vmatprep.subr.bf16.mxu0 %v6062_v39  ;;  %v1703_v2 = vadd.f32 %v1702_v50, %v1069_v60  ;;  %v1709_v34 = vadd.f32 %v1708_v54, %v1069_v60  ;;  %v6075_v39 = vld [vmem:[%s8054_s11 + $0xd0] ss:$8 sps:$4 sm:$0xff]  }
 0x3fd   : > { %1972 = vadd.xlane.f32.xlu0 %v1971_v27 }
 0x3ff   : > { %v7166_v28 = vpop.eup %6303  ;;  %2386 = vmatpush1.bf16.msra.mxu0 %v6060_v40  ;;  %v6080_v40 = vld [vmem:[%s8054_s11 + $0xc4] ss:$8 sps:$4 sm:$0xff]  }
 0x400   : > { %v1974_v29 = vsel %vm1910_vm2, %v7166_v28, 0.0  ;;  %2387 = vmatprep.subr.bf16.mxu0 %v6065_v41  ;;  %v6078_v41 = vld [vmem:[%s8054_s11 + $0xc0] ss:$8 sps:$4 sm:$0xff]  }
 0x401   : > { %1975 = vadd.xlane.f32.xlu1 %v1974_v29  ;;  %v1699_v29 = vadd.f32 %v7118_v5, %v1069_v60 }
 0x403   : > { %v7170_v30 = vpop.eup %6305  ;;  %2388 = vmatpush1.bf16.msra.mxu0 %v6063_v42  ;;  %v1725_v20 = vpack.c.bf16 %v1703_v2, %v1699_v29  ;;  %v6084_v42 = vld [vmem:[%s8054_s11 + $0xa0] ss:$8 sps:$4 sm:$0xff]  }
 0x404   : > { %v1977_v31 = vsel %vm1910_vm2, %v7170_v30, 0.0  ;;  %2389 = vmatprep.subr.bf16.mxu0 %v6068_v43  ;;  %v6089_v43 = vld [vmem:[%s8054_s11 + $0x94] ss:$8 sps:$4 sm:$0xff]   ;;  %v6398_v29 = vld [vmem:[#allocation2] sm:$0xff] }
 0x405   : > { %1978 = vadd.xlane.f32.xlu0 %v1977_v31 }
 0x407   : > { %v7174_v32 = vpop.eup %6307  ;;  %2390 = vmatpush1.bf16.msra.mxu0 %v6066_v44  ;;  %v6087_v44 = vld [vmem:[%s8054_s11 + $0x90] ss:$8 sps:$4 sm:$0xff]  }
 0x408   : > { %v1980_v33 = vsel %vm1910_vm2, %v7174_v32, 0.0  ;;  %2391 = vmatprep.subr.bf16.mxu0 %v6071_v45  ;;  %v6092_v45 = vld [vmem:[%s8054_s11 + $0x84] ss:$8 sps:$4 sm:$0xff]  }
 0x409   : > { %1981 = vadd.xlane.f32.xlu1 %v1980_v33 }
 0x40b   : > { %2392 = vmatpush2.bf16.msra.mxu0 %v6069_v46  ;;  %v6090_v46 = vld [vmem:[%s8054_s11 + $0x80] ss:$8 sps:$4 sm:$0xff]  }
 0x40c   : > { %2393 = vmatprep.subr.bf16.mxu0 %v6074_v47 }
 0x40f   : > { %2394 = vmatpush2.bf16.msra.mxu0 %v6072_v48 }
 0x410   : > { %2395 = vmatprep.subr.bf16.mxu0 %v6077_v11 }
 0x413   : > { %2396 = vmatpush2.bf16.msra.mxu0 %v6075_v39 }
 0x414   : > { %2397 = vmatprep.subr.bf16.mxu0 %v6080_v40 }
 0x417   : > { %2398 = vmatpush2.bf16.msra.mxu0 %v6078_v41 }
 0x476   : > { %v1961_v49 = vpop.xlane.xlu0 %1960 }
 0x477   : > { %6309 = vrcp.f32 %v1961_v49 }
 0x47a   : > { %v1964_v51 = vpop.xlane.xlu1 %1963 }
 0x47b   : > { %6311 = vrcp.f32 %v1964_v51 }
 0x47e   : > { %v1967_v53 = vpop.xlane.xlu0 %1966 }
 0x47f   : > { %6313 = vrcp.f32 %v1967_v53 }
 0x482   : > { %v1970_v55 = vpop.xlane.xlu1 %1969 }
 0x483   : > { %6315 = vrcp.f32 %v1970_v55 }
 0x484   : > { %v6310_v0 = vpop.eup %6309 }
 0x485   : > { %v1991_v15 = vmul.f32 %v6310_v0, %v7146_v58 }
 0x486   : > { %v1973_v6 = vpop.xlane.xlu0 %1972 }
 0x487   : > { %6317 = vrcp.f32 %v1973_v6 }
 0x488   : > { %v6312_v9 = vpop.eup %6311 }
 0x489   : > { %v1992_v14 = vmul.f32 %v6312_v9, %v7150_v13 }
 0x48a   : > { %v1976_v22 = vpop.xlane.xlu1 %1975 }
 0x48b   : > { %6319 = vrcp.f32 %v1976_v22  ;;  %v1999_v23 = vpack.c.bf16 %v1992_v14, %v1991_v15 }
 0x48c   : > { %v6314_v25 = vpop.eup %6313 }
 0x48d   : > { %5787 = vmatmul.mubr.msk.bf16.vlgmr.msra.gmra.mxu1 %vm1910_vm2, %v1999_v23  ;;  %v1993_v13 = vmul.f32 %v6314_v25, %v7154_v21  ;;  %v1713_v21 = vadd.f32 %v1712_v8, %v1069_v60  ;;  %v2436_v25 = vld [vmem:[%s8055_s8] sm:$0x3] }
 0x48e   : > { %5791 = vmatpush3.bf16.msra.mxu1 %v1724_v24  ;;  %v1979_v26 = vpop.xlane.xlu0 %1978  ;;  %5792 = vmatprep.mubr.msk.bf16.mxu1 %vm6579_vm0, %v6578_v17  ;;  %v2441_v2 = vrot.slane %v2436_v25, %v7017_v4 }
 0x48f   : > { %5796 = vmatprep.subr.bf16.mxu1 %v6578_v17  ;;  %6321 = vrcp.f32 %v1979_v26  ;;  %v1726_v37 = vpack.c.bf16 %v1713_v21, %v1709_v34  ;;  %v6397_v26 = vld [vmem:[#allocation2 + $0x30] sm:$0xff] }
 0x490   : > { %v6316_v58 = vpop.eup %6315 }
 0x491   : > { %v1994_v27 = vmul.f32 %v6316_v58, %v7158_v56 }
 0x492   : > { %v1982_v31 = vpop.xlane.xlu1 %1981 }
 0x493   : > { %6323 = vrcp.f32 %v1982_v31  ;;  %v2000_v33 = vpack.c.bf16 %v1994_v27, %v1993_v13  ;;  %v2445_v13 = vrot.slane %v2436_v25, %v7014_v3 }
 0x494   : > { %v6318_v7 = vpop.eup %6317 }
 0x495   : > { %5793 = vmatmul.mubr.msk.bf16.vlgmr.msra.gmra.mxu1 %vm1910_vm2, %v2000_v33  ;;  %v1995_v5 = vmul.f32 %v6318_v7, %v7162_v59  ;;  %v6399_v7 = vld [vmem:[#allocation2 + $0x18] sm:$0xff] }
 0x496   : > { %5797 = vmatpush3.bf16.msra.mxu1 %v1725_v20  ;;  %5798 = vmatprep.mubr.msk.bf16.mxu1 %vm6579_vm0, %v6578_v17 }
 0x497   : > { %5802 = vmatprep.subr.bf16.mxu1 %v6578_v17 }
 0x498   : > { %v6320_v62 = vpop.eup %6319 }
 0x499   : > { %v1996_v56 = vmul.f32 %v6320_v62, %v7166_v28 }
 0x49b   : > { %v2001_v35 = vpack.c.bf16 %v1996_v56, %v1995_v5  ;;  %v6400_v5 = vld [vmem:[#allocation2 + $0x10] sm:$0xff] }
 0x49c   : > { %v6322_v38 = vpop.eup %6321 }
 0x49d   : > { %5799 = vmatmul.mubr.msk.bf16.vlgmr.msra.gmra.mxu1 %vm1910_vm2, %v2001_v35  ;;  %v1997_v10 = vmul.f32 %v6322_v38, %v7170_v30  ;;  %v6081_v30 = vld [vmem:[%s8054_s11 + $0xb0] ss:$8 sps:$4 sm:$0xff]  }
 0x49e   : > { %5803 = vmatpush3.bf16.msra.mxu1 %v1726_v37  ;;  %5804 = vmatprep.mubr.msk.bf16.mxu1 %vm6579_vm0, %v6578_v17  ;;  %v6083_v17 = vld [vmem:[%s8054_s11 + $0xb4] ss:$8 sps:$4 sm:$0xff]  }
 0x49f   : > { %2399 = vmatprep.subr.bf16.mxu0 %v6083_v17 }
 0x4a0   : > { %v6324_v61 = vpop.eup %6323  ;;  %2400 = vmatpush2.bf16.msra.mxu0 %v6081_v30  ;;  %v6403_v30 = vld [vmem:[#allocation2 + $0x28] sm:$0xff] }
 0x4a1   : > { %v1998_v59 = vmul.f32 %v6324_v61, %v7174_v32  ;;  %v6086_v32 = vld [vmem:[%s8054_s11 + $0xa4] ss:$8 sps:$4 sm:$0xff]  }
 0x4a2   : > { %2401 = vmatprep.subr.bf16.mxu0 %v6086_v32  ;;  %v6401_v61 = vld [vmem:[#allocation2 + $0x8] sm:$0xff] }
 0x4a3   : > { %v2002_v28 = vpack.c.bf16 %v1998_v59, %v1997_v10 }
 0x4a4   : > { %2402 = vmatpush2.bf16.msra.mxu0 %v6084_v42 }
 0x4a5   : > { %5805 = vmatmul.mubr.msk.bf16.vlgmr.msra.gmra.mxu1 %vm1910_vm2, %v2002_v28  ;;  %2403 = vmatprep.subr.bf16.mxu0 %v6089_v43  ;;  %v6402_v28 = vld [vmem:[#allocation2 + $0x20] sm:$0xff]  ;;  %v6404_v43 = vld [vmem:[#allocation2 + $0x38] sm:$0xff] }
 0x4a8   : > { %2404 = vmatpush2.bf16.msra.mxu0 %v6087_v44 }
 0x4a9   : > { %2405 = vmatprep.subr.bf16.mxu0 %v6092_v45 }
 0x4ac   : > { %2406 = vmatpush2.bf16.msra.mxu0 %v6090_v46 }
 0x54d   : > { %v2040_v47 = vpop.f32.mrf.mxu1 }
 0x54f   : > { %v5788_v48 = vpop.f32.mrf.mxu1 }
 0x551   : > { %v2043_v49 = vpop.f32.mrf.mxu1 }
 0x552   : > { %v2179_v9 = vpack.c.bf16 %v2043_v49, %v2040_v47  ;;  %v2620_v49 = vld [vmem:[%s8056_s10 + $0x1c0] sm:$0xff] }
 0x553   : > { %v5789_v50 = vpop.f32.mrf.mxu1 }
 0x554   : > { %v2624_v50 = vld [vmem:[%s8056_s10 + $0x1e0] sm:$0xff] }
 0x555   : > { %v2084_v51 = vpop.f32.mrf.mxu1 }
 0x557   : > { %v5794_v52 = vpop.f32.mrf.mxu1 }
 0x558   : > { %v5537_v52 = vcombine.low %v2620_v49, %v2624_v50 }
 0x559   : > { %v2087_v53 = vpop.f32.mrf.mxu1 }
 0x55a   : > { %v2181_v23 = vpack.c.bf16 %v2087_v53, %v2084_v51  ;;  %v2621_v51 = vld [vmem:[%s8056_s10 + $0x1c8] sm:$0xff]  ;;  %v5538_v53 = vcombine.high %v2620_v49, %v2624_v50 }
 0x55b   : > { %v5795_v54 = vpop.f32.mrf.mxu1  ;;  %v2577_v49 = vld [vmem:[%s8056_s10 + $0x68] sm:$0xff] }
 0x55c   : > { %v2625_v54 = vld [vmem:[%s8056_s10 + $0x1e8] sm:$0xff]  ;;  %3374 = vmatprep.subr.bf16.mxu1 %v5538_v53 }
 0x55d   : > { %v2128_v55 = vpop.f32.mrf.mxu1  ;;  %3375 = vmatpush1.bf16.msra.mxu1 %v5537_v52 }
 0x55f   : > { %v5800_v57 = vpop.f32.mrf.mxu1 }
 0x560   : > { %v2616_v57 = vld [vmem:[%s8056_s10 + $0x1a0] sm:$0xff] }
 0x561   : > { %v2131_v0 = vpop.f32.mrf.mxu1 }
 0x562   : > { %v2180_v6 = vpack.c.bf16 %v2131_v0, %v2128_v55  ;;  %v2612_v55 = vld [vmem:[%s8056_s10 + $0x180] sm:$0xff]  ;;  %v5539_v0 = vcombine.low %v2621_v51, %v2625_v54 }
 0x563   : > { %v5801_v12 = vpop.f32.mrf.mxu1  ;;  %v5529_v25 = vcombine.low %v2612_v55, %v2616_v57 }
 0x564   : > { %2407 = vmatprep.mubr.bf16.mxu0 %v2180_v6  ;;  %v5540_v6 = vcombine.high %v2621_v51, %v2625_v54  ;;  %v2613_v12 = vld [vmem:[%s8056_s10 + $0x188] sm:$0xff]  ;;  %v2564_v54 = vld [vmem:[%s8056_s10] sm:$0xff] }
 0x565   : > { %v2172_v15 = vpop.f32.mrf.mxu1  ;;  %2408 = vmatmul.mubr.bf16.vlgmr.msra.gmra.mxu0 %v2179_v9  ;;  %v5530_v9 = vcombine.high %v2612_v55, %v2616_v57  ;;  %v2568_v55 = vld [vmem:[%s8056_s10 + $0x20] sm:$0xff]  ;;  %v2565_v57 = vld [vmem:[%s8056_s10 + $0x8] sm:$0xff] }
 0x566   : > { %3427 = vmatprep.subr.bf16.mxu0 %v5540_v6 }
 0x567   : > { %v5806_v14 = vpop.f32.mrf.mxu1  ;;  %3428 = vmatpush1.bf16.msra.mxu0 %v5539_v0  ;;  %3376 = vmatprep.subr.bf16.mxu1 %v5530_v9  ;;  %v2569_v0 = vld [vmem:[%s8056_s10 + $0x28] sm:$0xff] }
 0x568   : > { %v2604_v14 = vld [vmem:[%s8056_s10 + $0x140] sm:$0xff]  ;;  %3377 = vmatpush1.bf16.msra.mxu1 %v5529_v25  ;;  %v5483_v25 = vcombine.low %v2565_v57, %v2569_v0 }
 0x569   : > { %v2175_v18 = vpop.f32.mrf.mxu1 }
 0x56a   : > { %v2182_v22 = vpack.c.bf16 %v2175_v18, %v2172_v15  ;;  %v2617_v15 = vld [vmem:[%s8056_s10 + $0x1a8] sm:$0xff] }
 0x56b   : > { %v5807_v24 = vpop.f32.mrf.mxu1  ;;  %v5532_v18 = vcombine.high %v2613_v12, %v2617_v15 }
 0x56c   : > { %2417 = vmatprep.mubr.bf16.mxu0 %v2182_v22  ;;  %v2608_v22 = vld [vmem:[%s8056_s10 + $0x160] sm:$0xff]  ;;  %v2609_v24 = vld [vmem:[%s8056_s10 + $0x168] sm:$0xff] }
 0x56d   : > { %2418 = vmatmul.mubr.bf16.gmra.mxu0 %v2181_v23  ;;  %v2605_v23 = vld [vmem:[%s8056_s10 + $0x148] sm:$0xff]  ;;  %3429 = vmatprep.subr.bf16.mxu0 %v5532_v18  ;;  %v2688_v18 = vld [vmem:[%s8056_s10 + $0x3e0] sm:$0xff] }
 0x625   : > { %v2409_v60 = vpop.f32.mrf.mxu0 }
 0x626   : > { %v2428_v58 = vadd.f32 %v6397_v26, %v2409_v60  ;;  %v5531_v60 = vcombine.low %v2613_v12, %v2617_v15  ;;  %v5522_v26 = vcombine.high %v2604_v14, %v2608_v22  ;;  %v5482_v12 = vcombine.high %v2564_v54, %v2568_v55 }
 0x627   : > { %v2411_v27 = vpop.f32.mrf.mxu0  ;;  %v5484_v15 = vcombine.high %v2565_v57, %v2569_v0 }
 0x628   : > { %v2429_v31 = vadd.f32 %v6398_v29, %v2411_v27  ;;  %v7244_v20 = vadd.f32 %v2441_v2, %v2428_v58  ;;  %v5524_v58 = vcombine.high %v2605_v23, %v2609_v24  ;;  %v2597_v27 = vld [vmem:[%s8056_s10 + $0x108] sm:$0xff]  ;;  %3430 = vmatpush1.bf16.msra.mxu0 %v5531_v60  ;;  %3378 = vmatprep.subr.bf16.mxu1 %v5522_v26 }
 0x629   : > { %v2413_v33 = vpop.f32.mrf.mxu0  ;;  %v2601_v29 = vld [vmem:[%s8056_s10 + $0x128] sm:$0xff] }
 0x62a   : > { %v7246_v8 = vadd.f32 %v2445_v13, %v2429_v31  ;;  %v2430_v62 = vadd.f32 %v6399_v7, %v2413_v33  ;;  %v5521_v31 = vcombine.low %v2604_v14, %v2608_v22  ;;  %v5523_v33 = vcombine.low %v2605_v23, %v2609_v24  ;;  %3431 = vmatprep.subr.bf16.mxu0 %v5524_v58  ;;  %v2684_v14 = vld [vmem:[%s8056_s10 + $0x3c0] sm:$0xff]  ;;  %v2685_v22 = vld [vmem:[%s8056_s10 + $0x3c8] sm:$0xff] }
 0x62b   : > { %v2415_v21 = vpop.f32.mrf.mxu0  ;;  %v2689_v23 = vld [vmem:[%s8056_s10 + $0x3e8] sm:$0xff]  ;;  %v5481_v24 = vcombine.low %v2564_v54, %v2568_v55  ;;  %v5602_v60 = vcombine.high %v2684_v14, %v2688_v18  ;;  %v5601_v58 = vcombine.low %v2684_v14, %v2688_v18 }
 0x62c   : > { %v2431_v56 = vadd.f32 %v6400_v5, %v2415_v21  ;;  %v2458_v34 = vadd.f32 %v7246_v8, %v7244_v20  ;;  %v7250_v37 = vadd.f32 %v2441_v2, %v2430_v62  ;;  %v5516_v62 = vcombine.high %v2597_v27, %v2601_v29  ;;  %v2588_v21 = vld [vmem:[%s8056_s10 + $0xc0] sm:$0xff]  ;;  %3379 = vmatpush1.bf16.msra.mxu1 %v5521_v31  ;;  %v2681_v55 = vld [vmem:[%s8056_s10 + $0x3a8] sm:$0xff] }
 0x62d   : > { %v2419_v35 = vpop.f32.mrf.mxu0  ;;  %v2592_v5 = vld [vmem:[%s8056_s10 + $0xe0] sm:$0xff]  ;;  %3432 = vmatpush1.bf16.msra.mxu0 %v5523_v33  ;;  %v5604_v26 = vcombine.high %v2685_v22, %v2689_v23  ;;  %v2673_v18 = vld [vmem:[%s8056_s10 + $0x368] sm:$0xff] }
 0x62e   : > { %v7252_v38 = vadd.f32 %v2445_v13, %v2431_v56  ;;  %v2432_v10 = vadd.f32 %v6401_v61, %v2419_v35  ;;  %2459 = vadd.xlane.f32.xlu0 %v2458_v34  ;;  %v2589_v56 = vld [vmem:[%s8056_s10 + $0xc8] sm:$0xff]  ;;  %v5515_v61 = vcombine.low %v2597_v27, %v2601_v29  ;;  %3433 = vmatprep.subr.bf16.mxu0 %v5516_v62 }
 0x62f   : > { %v2421_v59 = vpop.f32.mrf.mxu0  ;;  %v2593_v34 = vld [vmem:[%s8056_s10 + $0xe8] sm:$0xff] }
 0x630   : > { %v2433_v11 = vadd.f32 %v6402_v28, %v2421_v59  ;;  %v2461_v39 = vadd.f32 %v7252_v38, %v7250_v37  ;;  %v7256_v41 = vadd.f32 %v2441_v2, %v2432_v10  ;;  %v5506_v10 = vcombine.high %v2588_v21, %v2592_v5  ;;  %v2580_v28 = vld [vmem:[%s8056_s10 + $0x80] sm:$0xff] }
 0x631   : > { %v2423_v40 = vpop.f32.mrf.mxu0  ;;  %v5508_v59 = vcombine.high %v2589_v56, %v2593_v34  ;;  %3434 = vmatpush1.bf16.msra.mxu0 %v5515_v61 }
 0x632   : > { %v7258_v17 = vadd.f32 %v2445_v13, %v2433_v11  ;;  %v2434_v32 = vadd.f32 %v6403_v30, %v2423_v40  ;;  %2462 = vadd.xlane.f32.xlu1 %v2461_v39  ;;  %v2584_v11 = vld [vmem:[%s8056_s10 + $0xa0] sm:$0xff]  ;;  %v2581_v39 = vld [vmem:[%s8056_s10 + $0x88] sm:$0xff]  ;;  %v5505_v30 = vcombine.low %v2588_v21, %v2592_v5 }
 0x633   : > { %v2425_v42 = vpop.f32.mrf.mxu0  ;;  %v2585_v40 = vld [vmem:[%s8056_s10 + $0xa8] sm:$0xff]  ;;  %3435 = vmatprep.subr.bf16.mxu0 %v5508_v59  ;;  %v5497_v50 = vcombine.low %v2580_v28, %v2584_v11 }
 0x634   : > { %v2435_v44 = vadd.f32 %v6404_v43, %v2425_v42  ;;  %v2464_v45 = vadd.f32 %v7258_v17, %v7256_v41  ;;  %v7262_v46 = vadd.f32 %v2441_v2, %v2434_v32  ;;  %v2596_v2 = vld [vmem:[%s8056_s10 + $0x100] sm:$0xff]  ;;  %v5507_v32 = vcombine.low %v2589_v56, %v2593_v34 }
 0x635   : > { %v5498_v42 = vcombine.high %v2580_v28, %v2584_v11  ;;  %v5500_v43 = vcombine.high %v2581_v39, %v2585_v40  ;;  %v5499_v51 = vcombine.low %v2581_v39, %v2585_v40 }
 0x636   : > { %v7264_v47 = vadd.f32 %v2445_v13, %v2435_v44  ;;  %2465 = vadd.xlane.f32.xlu0 %v2464_v45  ;;  %v2600_v13 = vld [vmem:[%s8056_s10 + $0x120] sm:$0xff]  ;;  %3436 = vmatpush1.bf16.msra.mxu0 %v5507_v32 }
 0x637   : > { %v5514_v7 = vcombine.high %v2596_v2, %v2600_v13  ;;  %v5513_v35 = vcombine.low %v2596_v2, %v2600_v13  ;;  %v2572_v44 = vld [vmem:[%s8056_s10 + $0x40] sm:$0xff]  ;;  %3437 = vmatprep.subr.bf16.mxu0 %v5500_v43  ;;  %v5603_v2 = vcombine.low %v2685_v22, %v2689_v23 }
 0x638   : > { %v2467_v48 = vadd.f32 %v7264_v47, %v7262_v46  ;;  %v2576_v45 = vld [vmem:[%s8056_s10 + $0x60] sm:$0xff] }
 0x639   : > { %3380 = vmatprep.subr.bf16.mxu1 %v5514_v7  ;;  %v5490_v52 = vcombine.high %v2572_v44, %v2576_v45  ;;  %v5489_v6 = vcombine.low %v2572_v44, %v2576_v45 }
 0x63a   : > { %2468 = vadd.xlane.f32.xlu1 %v2467_v48  ;;  %3381 = vmatpush1.bf16.msra.mxu1 %v5513_v35  ;;  %v2573_v48 = vld [vmem:[%s8056_s10 + $0x48] sm:$0xff] }
 0x63b   : > { %3382 = vmatprep.subr.bf16.mxu1 %v5506_v10  ;;  %v5492_v53 = vcombine.high %v2573_v48, %v2577_v49  ;;  %3438 = vmatpush1.bf16.msra.mxu0 %v5499_v51  ;;  %v5491_v9 = vcombine.low %v2573_v48, %v2577_v49  ;;  %v2676_v51 = vld [vmem:[%s8056_s10 + $0x380] sm:$0xff] }
 0x63d   : > { %3439 = vmatprep.subr.bf16.mxu0 %v5492_v53  ;;  %v2677_v53 = vld [vmem:[%s8056_s10 + $0x388] sm:$0xff] }
 0x63e   : > { %3383 = vmatpush1.bf16.msra.mxu1 %v5505_v30  ;;  %v5595_v0 = vcombine.low %v2677_v53, %v2681_v55 }
 0x63f   : > { %3384 = vmatprep.subr.bf16.mxu1 %v5498_v42  ;;  %3440 = vmatpush1.bf16.msra.mxu0 %v5491_v9  ;;  %v2668_v9 = vld [vmem:[%s8056_s10 + $0x340] sm:$0xff] }
 0x640   : > { %3441 = vmatprep.subr.bf16.mxu0 %v5484_v15  ;;  %v2669_v15 = vld [vmem:[%s8056_s10 + $0x348] sm:$0xff] }
 0x641   : > { %v5587_v23 = vcombine.low %v2669_v15, %v2673_v18 }
 0x642   : > { %3385 = vmatpush1.bf16.msra.mxu1 %v5497_v50 }
 0x643   : > { %3386 = vmatprep.subr.bf16.mxu1 %v5490_v52  ;;  %3442 = vmatpush1.bf16.msra.mxu0 %v5483_v25  ;;  %v2680_v52 = vld [vmem:[%s8056_s10 + $0x3a0] sm:$0xff] }
 0x644   : > { %3443 = vmatprep.subr.bf16.mxu0 %v5604_v26  ;;  %v5594_v54 = vcombine.high %v2676_v51, %v2680_v52  ;;  %v5593_v57 = vcombine.low %v2676_v51, %v2680_v52  ;;  %v2660_v25 = vld [vmem:[%s8056_s10 + $0x300] sm:$0xff]  ;;  %v2661_v26 = vld [vmem:[%s8056_s10 + $0x308] sm:$0xff] }
 0x646   : > { %3387 = vmatpush1.bf16.msra.mxu1 %v5489_v6  ;;  %v5596_v6 = vcombine.high %v2677_v53, %v2681_v55  ;;  %v2637_v53 = vld [vmem:[%s8056_s10 + $0x248] sm:$0xff]  ;;  %v2628_v55 = vld [vmem:[%s8056_s10 + $0x200] sm:$0xff] }
 0x647   : > { %3388 = vmatprep.subr.bf16.mxu1 %v5482_v12  ;;  %3444 = vmatpush2.bf16.msra.mxu0 %v5603_v2  ;;  %v2672_v12 = vld [vmem:[%s8056_s10 + $0x360] sm:$0xff]  ;;  %v2665_v2 = vld [vmem:[%s8056_s10 + $0x328] sm:$0xff] }
 0x648   : > { %3445 = vmatprep.subr.bf16.mxu0 %v5596_v6  ;;  %v5586_v14 = vcombine.high %v2668_v9, %v2672_v12  ;;  %v5585_v22 = vcombine.low %v2668_v9, %v2672_v12  ;;  %v2629_v6 = vld [vmem:[%s8056_s10 + $0x208] sm:$0xff] }
 0x649   : > { %v2633_v9 = vld [vmem:[%s8056_s10 + $0x228] sm:$0xff] }
 0x64a   : > { %3389 = vmatpush1.bf16.msra.mxu1 %v5481_v24  ;;  %v5588_v24 = vcombine.high %v2669_v15, %v2673_v18  ;;  %v5548_v18 = vcombine.high %v2629_v6, %v2633_v9 }
 0x64b   : > { %3390 = vmatprep.subr.bf16.mxu1 %v5602_v60  ;;  %3446 = vmatpush2.bf16.msra.mxu0 %v5595_v0  ;;  %v2664_v60 = vld [vmem:[%s8056_s10 + $0x320] sm:$0xff] }
 0x64c   : > { %3447 = vmatprep.subr.bf16.mxu0 %v5588_v24  ;;  %v2632_v0 = vld [vmem:[%s8056_s10 + $0x220] sm:$0xff]  ;;  %v7373_v24 = vld [vmem:[%s8056_s10 + $0x1d0] sm:$0xff] }
 0x64e   : > { %3391 = vmatpush2.bf16.msra.mxu1 %v5601_v58  ;;  %v5578_v58 = vcombine.high %v2660_v25, %v2664_v60 }
 0x64f   : > { %3392 = vmatprep.subr.bf16.mxu1 %v5594_v54  ;;  %3448 = vmatpush2.bf16.msra.mxu0 %v5587_v23  ;;  %v2641_v54 = vld [vmem:[%s8056_s10 + $0x268] sm:$0xff]  ;;  %v5547_v23 = vcombine.low %v2629_v6, %v2633_v9 }
 0x650   : > { %v5555_v15 = vcombine.low %v2637_v53, %v2641_v54 }
 0x652   : > { %3393 = vmatpush2.bf16.msra.mxu1 %v5593_v57  ;;  %v5556_v57 = vcombine.high %v2637_v53, %v2641_v54 }
 0x653   : > { %3394 = vmatprep.subr.bf16.mxu1 %v5586_v14  ;;  %v5546_v14 = vcombine.high %v2628_v55, %v2632_v0 }
 0x656   : > { %3395 = vmatpush2.bf16.msra.mxu1 %v5585_v22  ;;  %v5545_v22 = vcombine.low %v2628_v55, %v2632_v0 }
 0x657   : > { %3396 = vmatprep.subr.bf16.mxu1 %v5578_v58  ;;  %v7384_v58 = vld [vmem:[%s8056_s10 + $0x1f8] sm:$0xff] }
 0x6b7   : > { %v2460_v13 = vpop.xlane.xlu0 %2459 }
 0x6b8   : > { %v2470_v27 = vmul.f32 0.00390625, %v2460_v13  ;;  %v5577_v13 = vcombine.low %v2660_v25, %v2664_v60  ;;  %v7376_v25 = vld [vmem:[%s8056_s10 + $0x1f0] sm:$0xff]  ;;  %v7379_v60 = vld [vmem:[%s8056_s10 + $0x1d8] sm:$0xff] }
 0x6ba   : > { %v7305_v29 = vsub.f32 %v7244_v20, %v2470_v27  ;;  %v7308_v31 = vsub.f32 %v7246_v8, %v2470_v27  ;;  %v5579_v27 = vcombine.low %v2661_v26, %v2665_v2  ;;  %3397 = vmatpush2.bf16.msra.mxu1 %v5577_v13  ;;  %v5543_v13 = vcombine.low %v7379_v60, %v7384_v58 }
 0x6bb   : > { %v2463_v33 = vpop.xlane.xlu1 %2462 }
 0x6bc   : > { %v2471_v7 = vmul.f32 0.00390625, %v2463_v33  ;;  %v2482_v62 = vmul.f32 %v7305_v29, %v7305_v29  ;;  %v2483_v21 = vmul.f32 %v7308_v31, %v7308_v31  ;;  %v5580_v33 = vcombine.high %v2661_v26, %v2665_v2 }
 0x6bd   : > { %v5542_v26 = vcombine.high %v7373_v24, %v7376_v25  ;;  %v5541_v2 = vcombine.low %v7373_v24, %v7376_v25  ;;  %v2598_v25 = vld [vmem:[%s8056_s10 + $0x110] sm:$0xff] }
 0x6be   : > { %v7315_v5 = vsub.f32 %v7250_v37, %v2471_v7  ;;  %v7318_v56 = vsub.f32 %v7252_v38, %v2471_v7  ;;  %v2490_v34 = vadd.f32 %v2483_v21, %v2482_v62  ;;  %3449 = vmatprep.subr.bf16.mxu0 %v5580_v33  ;;  %v2652_v7 = vld [vmem:[%s8056_s10 + $0x2c0] sm:$0xff]  ;;  %v2653_v21 = vld [vmem:[%s8056_s10 + $0x2c8] sm:$0xff] }
 0x6bf   : > { %v2466_v35 = vpop.xlane.xlu0 %2465  ;;  %v2656_v62 = vld [vmem:[%s8056_s10 + $0x2e0] sm:$0xff]  ;;  %3450 = vmatpush2.bf16.msra.mxu0 %v5579_v27  ;;  %v5544_v27 = vcombine.high %v7379_v60, %v7384_v58  ;;  %v2599_v60 = vld [vmem:[%s8056_s10 + $0x118] sm:$0xff] }
 0x6c0   : > { %v2472_v61 = vmul.f32 0.00390625, %v2466_v35  ;;  %2491 = vadd.xlane.f32.xlu0 %v2490_v34  ;;  %v2484_v10 = vmul.f32 %v7315_v5, %v7315_v5  ;;  %v2485_v59 = vmul.f32 %v7318_v56, %v7318_v56  ;;  %v5570_v34 = vcombine.high %v2652_v7, %v2656_v62  ;;  %v2657_v35 = vld [vmem:[%s8056_s10 + $0x2e8] sm:$0xff]  ;;  %v2603_v58 = vld [vmem:[%s8056_s10 + $0x138] sm:$0xff] }
 0x6c2   : > { %v7325_v28 = vsub.f32 %v7256_v41, %v2472_v61  ;;  %v7328_v11 = vsub.f32 %v7258_v17, %v2472_v61  ;;  %v2493_v39 = vadd.f32 %v2485_v59, %v2484_v10  ;;  %v5569_v61 = vcombine.low %v2652_v7, %v2656_v62  ;;  %3398 = vmatprep.subr.bf16.mxu1 %v5570_v34 }
 0x6c3   : > { %v2469_v40 = vpop.xlane.xlu1 %2468  ;;  %v5571_v10 = vcombine.low %v2653_v21, %v2657_v35  ;;  %v5572_v59 = vcombine.high %v2653_v21, %v2657_v35 }
 0x6c4   : > { %v2473_v30 = vmul.f32 0.00390625, %v2469_v40  ;;  %2494 = vadd.xlane.f32.xlu1 %v2493_v39  ;;  %v2486_v32 = vmul.f32 %v7325_v28, %v7325_v28  ;;  %v2487_v42 = vmul.f32 %v7328_v11, %v7328_v11  ;;  %3399 = vmatpush2.bf16.msra.mxu1 %v5569_v61  ;;  %v2644_v39 = vld [vmem:[%s8056_s10 + $0x280] sm:$0xff] }
 0x6c5   : > { %3451 = vmatprep.subr.bf16.mxu0 %v5572_v59  ;;  %v2648_v40 = vld [vmem:[%s8056_s10 + $0x2a0] sm:$0xff] }
 0x6c6   : > { %v7335_v43 = vsub.f32 %v7262_v46, %v2473_v30  ;;  %v7338_v44 = vsub.f32 %v7264_v47, %v2473_v30  ;;  %v2496_v45 = vadd.f32 %v2487_v42, %v2486_v32  ;;  %v2645_v30 = vld [vmem:[%s8056_s10 + $0x288] sm:$0xff]  ;;  %3452 = vmatpush2.bf16.msra.mxu0 %v5571_v10  ;;  %v5561_v32 = vcombine.low %v2644_v39, %v2648_v40 }
 0x6c7   : > { %v5562_v42 = vcombine.high %v2644_v39, %v2648_v40 }
 0x6c8   : > { %2497 = vadd.xlane.f32.xlu0 %v2496_v45  ;;  %v2488_v48 = vmul.f32 %v7335_v43, %v7335_v43  ;;  %v2489_v49 = vmul.f32 %v7338_v44, %v7338_v44  ;;  %v2649_v45 = vld [vmem:[%s8056_s10 + $0x2a8] sm:$0xff] }
 0x6c9   : > { %v5564_v51 = vcombine.high %v2645_v30, %v2649_v45  ;;  %3400 = vmatprep.subr.bf16.mxu1 %v5562_v42 }
 0x6ca   : > { %v2499_v50 = vadd.f32 %v2489_v49, %v2488_v48  ;;  %v2636_v48 = vld [vmem:[%s8056_s10 + $0x240] sm:$0xff]  ;;  %3401 = vmatpush2.bf16.msra.mxu1 %v5561_v32 }
 0x6cb   : > { %v2640_v49 = vld [vmem:[%s8056_s10 + $0x260] sm:$0xff]  ;;  %3453 = vmatprep.subr.bf16.mxu0 %v5564_v51 }
 0x6cc   : > { %2500 = vadd.xlane.f32.xlu1 %v2499_v50  ;;  %v5563_v50 = vcombine.low %v2645_v30, %v2649_v45  ;;  %v5554_v52 = vcombine.high %v2636_v48, %v2640_v49  ;;  %v5553_v12 = vcombine.low %v2636_v48, %v2640_v49  ;;  %v2456_v32 = vld [vmem:[%s793_s14] sm:$0x3] }
 0x6cd   : > { %v2530_v45 = vrot.slane %v2456_v32, %v7014_v3  ;;  %v2526_v48 = vrot.slane %v2456_v32, %v7017_v4  ;;  %v2457_v49 = vld [vmem:[%s797_s13] sm:$0x3] }
 0x6ce   : > { %3454 = vmatpush2.bf16.msra.mxu0 %v5563_v50  ;;  %3402 = vmatprep.subr.bf16.mxu1 %v5554_v52  ;;  %v2549_v54 = vrot.slane %v2457_v49, %v7014_v3 }
 0x6cf   : > { %3455 = vmatprep.subr.bf16.mxu0 %v5556_v57  ;;  %3403 = vmatpush2.bf16.msra.mxu1 %v5553_v12  ;;  %v2545_v57 = vrot.slane %v2457_v49, %v7017_v4 }
 0x6d0   : > { %3404 = vmatprep.subr.bf16.mxu1 %v5546_v14  ;;  %v2614_v14 = vld [vmem:[%s8056_s10 + $0x190] sm:$0xff] }
 0x6d2   : > { %3456 = vmatpush2.bf16.msra.mxu0 %v5555_v15 }
 0x6d3   : > { %3457 = vmatprep.subr.bf16.mxu0 %v5548_v18  ;;  %3405 = vmatpush2.bf16.msra.mxu1 %v5545_v22 }
 0x6d4   : > { %3480 = vmatprep.subr.bf16.mxu1 %v5542_v26  ;;  %v2615_v26 = vld [vmem:[%s8056_s10 + $0x198] sm:$0xff] }
 0x6d6   : > { %3458 = vmatpush2.bf16.msra.mxu0 %v5547_v23  ;;  %v2618_v23 = vld [vmem:[%s8056_s10 + $0x1b0] sm:$0xff] }
 0x6d7   : > { %3533 = vmatprep.subr.bf16.mxu0 %v5544_v27  ;;  %v2619_v27 = vld [vmem:[%s8056_s10 + $0x1b8] sm:$0xff] }
 0x749   : > { %v2492_v33 = vpop.xlane.xlu0 %2491 }
 0x74a   : > { %v2502_v7 = vmul.f32 0.00390625, %v2492_v33 }
 0x74c   : > { %v2506_v62 = vadd.f32 1e-05, %v2502_v7 }
 0x74d   : > { %v2495_v21 = vpop.xlane.xlu1 %2494 }
 0x74e   : > { %6325 = vrsqrt.f32 %v2506_v62  ;;  %v2503_v34 = vmul.f32 0.00390625, %v2495_v21  ;;  %v5534_v21 = vcombine.high %v2614_v14, %v2618_v23 }
 0x750   : > { %v2507_v35 = vadd.f32 1e-05, %v2503_v34  ;;  %v5536_v34 = vcombine.high %v2615_v26, %v2619_v27 }
 0x751   : > { %v2498_v61 = vpop.xlane.xlu0 %2497 }
 0x752   : > { %6327 = vrsqrt.f32 %v2507_v35  ;;  %v2504_v10 = vmul.f32 0.00390625, %v2498_v61  ;;  %v2606_v61 = vld [vmem:[%s8056_s10 + $0x150] sm:$0xff] }
 0x754   : > { %v2508_v59 = vadd.f32 1e-05, %v2504_v10 }
 0x755   : > { %v2501_v39 = vpop.xlane.xlu1 %2500 }
 0x756   : > { %6329 = vrsqrt.f32 %v2508_v59  ;;  %v2505_v40 = vmul.f32 0.00390625, %v2501_v39  ;;  %v2610_v59 = vld [vmem:[%s8056_s10 + $0x170] sm:$0xff]  ;;  %v2607_v39 = vld [vmem:[%s8056_s10 + $0x158] sm:$0xff] }
 0x758   : > { %v2509_v30 = vadd.f32 1e-05, %v2505_v40  ;;  %v2611_v40 = vld [vmem:[%s8056_s10 + $0x178] sm:$0xff] }
 0x759   : > { %v5528_v49 = vcombine.high %v2607_v39, %v2611_v40 }
 0x75a   : > { %6331 = vrsqrt.f32 %v2509_v30 }
 0x75b   : > { %v6326_v42 = vpop.eup %6325 }
 0x75c   : > { %v2515_v50 = vmul.f32 %v6326_v42, %v7308_v31  ;;  %v2514_v51 = vmul.f32 %v6326_v42, %v7305_v29  ;;  %v5526_v42 = vcombine.high %v2606_v61, %v2610_v59 }
 0x75e   : > { %v2534_v53 = vmul.f32 %v2530_v45, %v2515_v50  ;;  %v2533_v55 = vmul.f32 %v2526_v48, %v2514_v51 }
 0x75f   : > { %v6328_v52 = vpop.eup %6327 }
 0x760   : > { %v2517_v0 = vmul.f32 %v6328_v52, %v7318_v56  ;;  %v2516_v6 = vmul.f32 %v6328_v52, %v7315_v5  ;;  %v2553_v31 = vadd.f32 %v2549_v54, %v2534_v53  ;;  %v2552_v29 = vadd.f32 %v2545_v57, %v2533_v55  ;;  %v2602_v53 = vld [vmem:[%s8056_s10 + $0x130] sm:$0xff] }
 0x761   : > { %v5518_v55 = vcombine.high %v2598_v25, %v2602_v53 }
 0x762   : > { %v2536_v9 = vmul.f32 %v2530_v45, %v2517_v0  ;;  %v2535_v12 = vmul.f32 %v2526_v48, %v2516_v6  ;;  %v2594_v0 = vld [vmem:[%s8056_s10 + $0xf0] sm:$0xff]  ;;  %v2591_v6 = vld [vmem:[%s8056_s10 + $0xd8] sm:$0xff] }
 0x763   : > { %v6330_v15 = vpop.eup %6329 }
 0x764   : > { %v2555_v18 = vadd.f32 %v2549_v54, %v2536_v9  ;;  %v2554_v22 = vadd.f32 %v2545_v57, %v2535_v12  ;;  %v2519_v33 = vmul.f32 %v6330_v15, %v7328_v11  ;;  %v2518_v56 = vmul.f32 %v6330_v15, %v7325_v28  ;;  %v2595_v9 = vld [vmem:[%s8056_s10 + $0xf8] sm:$0xff] }
 0x765   : > { %v5533_v28 = vcombine.low %v2614_v14, %v2618_v23  ;;  %v5517_v12 = vcombine.low %v2598_v25, %v2602_v53  ;;  %v5519_v15 = vcombine.low %v2599_v60, %v2603_v58  ;;  %v2582_v14 = vld [vmem:[%s8056_s10 + $0x90] sm:$0xff]  ;;  %v2587_v23 = vld [vmem:[%s8056_s10 + $0xb8] sm:$0xff] }
 0x766   : > { %v2561_v5 = vpack.c.bf16 %v2555_v18, %v2553_v31  ;;  %v7416_v7 = vpack.c.bf16 %v2554_v22, %v2552_v29  ;;  %v2538_v35 = vmul.f32 %v2530_v45, %v2519_v33  ;;  %v2537_v11 = vmul.f32 %v2526_v48, %v2518_v56  ;;  %v2586_v18 = vld [vmem:[%s8056_s10 + $0xb0] sm:$0xff]  ;;  %v2583_v22 = vld [vmem:[%s8056_s10 + $0x98] sm:$0xff] }
 0x767   : > { %v6332_v62 = vpop.eup %6331  ;;  %v5512_v29 = vcombine.high %v2591_v6, %v2595_v9  ;;  %v5502_v33 = vcombine.high %v2582_v14, %v2586_v18  ;;  %v5504_v56 = vcombine.high %v2583_v22, %v2587_v23  ;;  %v2678_v53 = vld [vmem:[%s8056_s10 + $0x390] sm:$0xff] }
 0x768   : > { %3406 = vmatprep.mubr.bf16.mxu1 %v2561_v5  ;;  %3459 = vmatprep.mubr.bf16.mxu0 %v2561_v5  ;;  %v2521_v10 = vmul.f32 %v6332_v62, %v7338_v44  ;;  %v2520_v30 = vmul.f32 %v6332_v62, %v7335_v43  ;;  %v5535_v44 = vcombine.low %v2615_v26, %v2619_v27  ;;  %v2578_v62 = vld [vmem:[%s8056_s10 + $0x70] sm:$0xff] }
 0x769   : > { %3407 = vmatmul.mubr.bf16.vlgmr.msra.gmra.mxu1 %v7416_v7  ;;  %3460 = vmatmul.mubr.bf16.vlgmr.msra.gmra.mxu0 %v7416_v7  ;;  %v2557_v50 = vadd.f32 %v2549_v54, %v2538_v35  ;;  %v2556_v52 = vadd.f32 %v2545_v57, %v2537_v11  ;;  %v5511_v27 = vcombine.low %v2591_v6, %v2595_v9  ;;  %v2571_v11 = vld [vmem:[%s8056_s10 + $0x38] sm:$0xff]  ;;  %v2670_v6 = vld [vmem:[%s8056_s10 + $0x350] sm:$0xff] }
 0x76a   : > { %3481 = vmatpush1.bf16.msra.mxu1 %v5541_v2  ;;  %3534 = vmatpush1.bf16.msra.mxu0 %v5543_v13  ;;  %v2540_v43 = vmul.f32 %v2530_v45, %v2521_v10  ;;  %v2539_v32 = vmul.f32 %v2526_v48, %v2520_v30  ;;  %v5525_v2 = vcombine.low %v2606_v61, %v2610_v59  ;;  %v2567_v30 = vld [vmem:[%s8056_s10 + $0x18] sm:$0xff]  ;;  %v2674_v9 = vld [vmem:[%s8056_s10 + $0x370] sm:$0xff] }
 0x76b   : > { %3482 = vmatprep.subr.bf16.mxu1 %v5534_v21  ;;  %3535 = vmatprep.subr.bf16.mxu0 %v5536_v34  ;;  %v5527_v45 = vcombine.low %v2607_v39, %v2611_v40  ;;  %v2575_v21 = vld [vmem:[%s8056_s10 + $0x58] sm:$0xff]  ;;  %v5501_v35 = vcombine.low %v2582_v14, %v2586_v18  ;;  %v5503_v61 = vcombine.low %v2583_v22, %v2587_v23  ;;  %v2566_v39 = vld [vmem:[%s8056_s10 + $0x10] sm:$0xff] }
 0x76c   : > { %v2559_v51 = vadd.f32 %v2549_v54, %v2540_v43  ;;  %v2558_v24 = vadd.f32 %v2545_v57, %v2539_v32  ;;  %v2590_v54 = vld [vmem:[%s8056_s10 + $0xd0] sm:$0xff]  ;;  %v5520_v57 = vcombine.high %v2599_v60, %v2603_v58  ;;  %v2579_v34 = vld [vmem:[%s8056_s10 + $0x78] sm:$0xff]  ;;  %v5488_v32 = vcombine.high %v2567_v30, %v2571_v11 }
 0x76d   : > { %v5510_v31 = vcombine.high %v2590_v54, %v2594_v0  ;;  %v5509_v26 = vcombine.low %v2590_v54, %v2594_v0  ;;  %v5496_v59 = vcombine.high %v2575_v21, %v2579_v34  ;;  %v2570_v40 = vld [vmem:[%s8056_s10 + $0x30] sm:$0xff]  ;;  %v2679_v58 = vld [vmem:[%s8056_s10 + $0x398] sm:$0xff]  ;;  %v5590_v14 = vcombine.high %v2670_v6, %v2674_v9 }
 0x76e   : > { %3483 = vmatpush1.bf16.msra.mxu1 %v5533_v28  ;;  %3536 = vmatpush1.bf16.msra.mxu0 %v5535_v44  ;;  %v7436_v13 = vpack.c.bf16 %v2559_v51, %v2557_v50  ;;  %v7438_v48 = vpack.c.bf16 %v2558_v24, %v2556_v52  ;;  %v5495_v44 = vcombine.low %v2575_v21, %v2579_v34  ;;  %v2687_v50 = vld [vmem:[%s8056_s10 + $0x3d8] sm:$0xff]  ;;  %v2682_v60 = vld [vmem:[%s8056_s10 + $0x3b0] sm:$0xff] }
 0x76f   : > { %3484 = vmatprep.subr.bf16.mxu1 %v5526_v42  ;;  %3537 = vmatprep.subr.bf16.mxu0 %v5528_v49  ;;  %v5486_v43 = vcombine.high %v2566_v39, %v2570_v40  ;;  %v2686_v42 = vld [vmem:[%s8056_s10 + $0x3d0] sm:$0xff]  ;;  %v2691_v51 = vld [vmem:[%s8056_s10 + $0x3f8] sm:$0xff]  ;;  %v5485_v52 = vcombine.low %v2566_v39, %v2570_v40  ;;  %v5487_v24 = vcombine.low %v2567_v30, %v2571_v11 }
 0x770   : > { %3416 = vmatprep.mubr.bf16.mxu1 %v7436_v13  ;;  %3469 = vmatprep.mubr.bf16.mxu0 %v7436_v13  ;;  %v2690_v49 = vld [vmem:[%s8056_s10 + $0x3f0] sm:$0xff] }
 0x771   : > { %3417 = vmatmul.mubr.bf16.gmra.mxu1 %v7438_v48  ;;  %3470 = vmatmul.mubr.bf16.gmra.mxu0 %v7438_v48  ;;  %v5606_v25 = vcombine.high %v2686_v42, %v2690_v49  ;;  %v5605_v54 = vcombine.low %v2686_v42, %v2690_v49  ;;  %v2662_v22 = vld [vmem:[%s8056_s10 + $0x310] sm:$0xff] }
 0x772   : > { %3485 = vmatpush1.bf16.msra.mxu1 %v5525_v2  ;;  %3538 = vmatpush1.bf16.msra.mxu0 %v5527_v45  ;;  %v5608_v2 = vcombine.high %v2687_v50, %v2691_v51  ;;  %v2683_v45 = vld [vmem:[%s8056_s10 + $0x3b8] sm:$0xff]  ;;  %v2666_v23 = vld [vmem:[%s8056_s10 + $0x330] sm:$0xff] }
 0x773   : > { %3512 = vmatprep.mubr.bf16.mxu1 %v2561_v5  ;;  %3565 = vmatprep.mubr.bf16.mxu0 %v2561_v5  ;;  %v2574_v5 = vld [vmem:[%s8056_s10 + $0x50] sm:$0xff]  ;;  %v5600_v0 = vcombine.high %v2679_v58, %v2683_v45 }
 0x774   : > { %3486 = vmatprep.subr.bf16.mxu1 %v5518_v55  ;;  %3539 = vmatprep.subr.bf16.mxu0 %v5520_v57  ;;  %v5494_v10 = vcombine.high %v2574_v5, %v2578_v62  ;;  %v5493_v28 = vcombine.low %v2574_v5, %v2578_v62  ;;  %v5607_v55 = vcombine.low %v2687_v50, %v2691_v51  ;;  %v2654_v21 = vld [vmem:[%s8056_s10 + $0x2d0] sm:$0xff] }
 0x775   : > { %v5598_v57 = vcombine.high %v2678_v53, %v2682_v60  ;;  %v5582_v5 = vcombine.high %v2662_v22, %v2666_v23  ;;  %v2658_v34 = vld [vmem:[%s8056_s10 + $0x2f0] sm:$0xff] }
 0x776   : > { %3487 = vmatpush1.bf16.msra.mxu1 %v5517_v12  ;;  %3540 = vmatpush1.bf16.msra.mxu0 %v5519_v15  ;;  %v2671_v12 = vld [vmem:[%s8056_s10 + $0x358] sm:$0xff]  ;;  %v5574_v39 = vcombine.high %v2654_v21, %v2658_v34  ;;  %v2646_v30 = vld [vmem:[%s8056_s10 + $0x290] sm:$0xff] }
 0x777   : > { %3488 = vmatprep.subr.bf16.mxu1 %v5510_v31  ;;  %3541 = vmatprep.subr.bf16.mxu0 %v5512_v29  ;;  %v2675_v15 = vld [vmem:[%s8056_s10 + $0x378] sm:$0xff]  ;;  %v5597_v31 = vcombine.low %v2678_v53, %v2682_v60  ;;  %v5599_v29 = vcombine.low %v2679_v58, %v2683_v45  ;;  %v2650_v11 = vld [vmem:[%s8056_s10 + $0x2b0] sm:$0xff] }
 0x778   : > { %v5592_v18 = vcombine.high %v2671_v12, %v2675_v15  ;;  %v5566_v42 = vcombine.high %v2646_v30, %v2650_v11  ;;  %v2638_v50 = vld [vmem:[%s8056_s10 + $0x250] sm:$0xff] }
 0x779   : > { %v2642_v51 = vld [vmem:[%s8056_s10 + $0x270] sm:$0xff] }
 0x77a   : > { %3489 = vmatpush1.bf16.msra.mxu1 %v5509_v26  ;;  %3542 = vmatpush1.bf16.msra.mxu0 %v5511_v27  ;;  %v2663_v26 = vld [vmem:[%s8056_s10 + $0x318] sm:$0xff]  ;;  %v5558_v53 = vcombine.high %v2638_v50, %v2642_v51  ;;  %v2630_v58 = vld [vmem:[%s8056_s10 + $0x210] sm:$0xff] }
 0x77b   : > { %3490 = vmatprep.subr.bf16.mxu1 %v5502_v33  ;;  %3543 = vmatprep.subr.bf16.mxu0 %v5504_v56  ;;  %v2667_v27 = vld [vmem:[%s8056_s10 + $0x338] sm:$0xff]  ;;  %v5589_v33 = vcombine.low %v2670_v6, %v2674_v9  ;;  %v5591_v56 = vcombine.low %v2671_v12, %v2675_v15  ;;  %v2634_v45 = vld [vmem:[%s8056_s10 + $0x230] sm:$0xff] }
 0x77c   : > { %v5584_v62 = vcombine.high %v2663_v26, %v2667_v27  ;;  %v5550_v6 = vcombine.high %v2630_v58, %v2634_v45  ;;  %v5549_v12 = vcombine.low %v2630_v58, %v2634_v45  ;;  %v6150_v58 = vld [vmem:[%s6870_s28 + $0x1e0] ss:$8 sps:$4 sm:$0xff]   ;;  %v6155_v45 = vld [vmem:[%s6870_s28 + $0xd4] ss:$8 sps:$4 sm:$0xff]  }
 0x77e   : > { %3491 = vmatpush1.bf16.msra.mxu1 %v5501_v35  ;;  %3544 = vmatpush1.bf16.msra.mxu0 %v5503_v61  ;;  %v2655_v35 = vld [vmem:[%s8056_s10 + $0x2d8] sm:$0xff] }
 0x77f   : > { %3492 = vmatprep.subr.bf16.mxu1 %v5494_v10  ;;  %3545 = vmatprep.subr.bf16.mxu0 %v5496_v59  ;;  %v2659_v61 = vld [vmem:[%s8056_s10 + $0x2f8] sm:$0xff]  ;;  %v5581_v10 = vcombine.low %v2662_v22, %v2666_v23  ;;  %v5583_v59 = vcombine.low %v2663_v26, %v2667_v27  ;;  %v6101_v22 = vld [vmem:[%s6870_s28 + $0x64] ss:$8 sps:$4 sm:$0xff]   ;;  %v6099_v26 = vld [vmem:[%s6870_s28 + $0x60] ss:$8 sps:$4 sm:$0xff]  }
 0x780   : > { %v5576_v40 = vcombine.high %v2655_v35, %v2659_v61  ;;  %v6104_v23 = vld [vmem:[%s6870_s28 + $0x164] ss:$8 sps:$4 sm:$0xff]   ;;  %v6102_v27 = vld [vmem:[%s6870_s28 + $0x160] ss:$8 sps:$4 sm:$0xff]  }
 0x782   : > { %3493 = vmatpush1.bf16.msra.mxu1 %v5493_v28  ;;  %3546 = vmatpush1.bf16.msra.mxu0 %v5495_v44  ;;  %v2647_v28 = vld [vmem:[%s8056_s10 + $0x298] sm:$0xff] }
 0x783   : > { %3494 = vmatprep.subr.bf16.mxu1 %v5486_v43  ;;  %3547 = vmatprep.subr.bf16.mxu0 %v5488_v32  ;;  %v2651_v44 = vld [vmem:[%s8056_s10 + $0x2b8] sm:$0xff]  ;;  %v5573_v43 = vcombine.low %v2654_v21, %v2658_v34  ;;  %v5575_v32 = vcombine.low %v2655_v35, %v2659_v61  ;;  %v6111_v21 = vld [vmem:[%s6870_s28 + $0x40] ss:$8 sps:$4 sm:$0xff]  }
 0x784   : > { %v5568_v49 = vcombine.high %v2647_v28, %v2651_v44  ;;  %v6114_v34 = vld [vmem:[%s6870_s28 + $0x140] ss:$8 sps:$4 sm:$0xff]   ;;  %v6119_v35 = vld [vmem:[%s6870_s28 + $0x34] ss:$8 sps:$4 sm:$0xff]  }
 0x785   : > { %v6122_v61 = vld [vmem:[%s6870_s28 + $0x134] ss:$8 sps:$4 sm:$0xff]  }
 0x786   : > { %3495 = vmatpush1.bf16.msra.mxu1 %v5485_v52  ;;  %3548 = vmatpush1.bf16.msra.mxu0 %v5487_v24  ;;  %v2639_v52 = vld [vmem:[%s8056_s10 + $0x258] sm:$0xff] }
 0x787   : > { %3496 = vmatprep.subr.bf16.mxu1 %v5606_v25  ;;  %3549 = vmatprep.subr.bf16.mxu0 %v5608_v2  ;;  %v2643_v24 = vld [vmem:[%s8056_s10 + $0x278] sm:$0xff]  ;;  %v5565_v25 = vcombine.low %v2646_v30, %v2650_v11  ;;  %v5567_v2 = vcombine.low %v2647_v28, %v2651_v44  ;;  %v6126_v30 = vld [vmem:[%s6870_s28 + $0x120] ss:$8 sps:$4 sm:$0xff]  }
 0x788   : > { %v5560_v60 = vcombine.high %v2639_v52, %v2643_v24  ;;  %v6131_v11 = vld [vmem:[%s6870_s28 + $0x14] ss:$8 sps:$4 sm:$0xff]   ;;  %v6129_v44 = vld [vmem:[%s6870_s28 + $0x10] ss:$8 sps:$4 sm:$0xff]  }
 0x789   : > { %v6134_v28 = vld [vmem:[%s6870_s28 + $0x114] ss:$8 sps:$4 sm:$0xff]  }
 0x78a   : > { %3497 = vmatpush2.bf16.msra.mxu1 %v5605_v54  ;;  %3550 = vmatpush2.bf16.msra.mxu0 %v5607_v55  ;;  %v2631_v54 = vld [vmem:[%s8056_s10 + $0x218] sm:$0xff] }
 0x78b   : > { %3498 = vmatprep.subr.bf16.mxu1 %v5598_v57  ;;  %3551 = vmatprep.subr.bf16.mxu0 %v5600_v0  ;;  %v2635_v55 = vld [vmem:[%s8056_s10 + $0x238] sm:$0xff]  ;;  %v5557_v57 = vcombine.low %v2638_v50, %v2642_v51  ;;  %v5559_v0 = vcombine.low %v2639_v52, %v2643_v24  ;;  %v6138_v50 = vld [vmem:[%s6870_s28 + $0x100] ss:$8 sps:$4 sm:$0xff]  }
 0x78c   : > { %v5552_v9 = vcombine.high %v2631_v54, %v2635_v55  ;;  %v5551_v15 = vcombine.low %v2631_v54, %v2635_v55  ;;  %v6143_v51 = vld [vmem:[%s6870_s28 + $0xf4] ss:$8 sps:$4 sm:$0xff]   ;;  %v6141_v24 = vld [vmem:[%s6870_s28 + $0xf0] ss:$8 sps:$4 sm:$0xff]  }
 0x78d   : > { %v6146_v52 = vld [vmem:[%s6870_s28 + $0x1f4] ss:$8 sps:$4 sm:$0xff]   ;;  %v6153_v55 = vld [vmem:[%s6870_s28 + $0xd0] ss:$8 sps:$4 sm:$0xff]  }
 0x78e   : > { %3499 = vmatpush2.bf16.msra.mxu1 %v5597_v31  ;;  %3552 = vmatpush2.bf16.msra.mxu0 %v5599_v29  ;;  %v6095_v31 = vld [vmem:[%s6870_s28 + $0x74] ss:$8 sps:$4 sm:$0xff]  }
 0x78f   : > { %3500 = vmatprep.subr.bf16.mxu1 %v5590_v14  ;;  %3553 = vmatprep.subr.bf16.mxu0 %v5592_v18  ;;  %v6098_v29 = vld [vmem:[%s6870_s28 + $0x174] ss:$8 sps:$4 sm:$0xff]   ;;  %v6093_v14 = vld [vmem:[%s6870_s28 + $0x70] ss:$8 sps:$4 sm:$0xff]  }
 0x790   : > { %v6096_v18 = vld [vmem:[%s6870_s28 + $0x170] ss:$8 sps:$4 sm:$0xff]   ;;  %v6158_v54 = vld [vmem:[%s6870_s28 + $0x1d4] ss:$8 sps:$4 sm:$0xff]  }
 0x792   : > { %3501 = vmatpush2.bf16.msra.mxu1 %v5589_v33  ;;  %3554 = vmatpush2.bf16.msra.mxu0 %v5591_v56  ;;  %v6107_v33 = vld [vmem:[%s6870_s28 + $0x54] ss:$8 sps:$4 sm:$0xff]  }
 0x793   : > { %3502 = vmatprep.subr.bf16.mxu1 %v5582_v5  ;;  %3555 = vmatprep.subr.bf16.mxu0 %v5584_v62  ;;  %v6110_v56 = vld [vmem:[%s6870_s28 + $0x154] ss:$8 sps:$4 sm:$0xff]   ;;  %v6108_v5 = vld [vmem:[%s6870_s28 + $0x150] ss:$8 sps:$4 sm:$0xff]   ;;  %v6116_v62 = vld [vmem:[%s6870_s28 + $0x144] ss:$8 sps:$4 sm:$0xff]  }
 0x796   : > { %3503 = vmatpush2.bf16.msra.mxu1 %v5581_v10  ;;  %3556 = vmatpush2.bf16.msra.mxu0 %v5583_v59  ;;  %v6117_v10 = vld [vmem:[%s6870_s28 + $0x30] ss:$8 sps:$4 sm:$0xff]  }
 0x797   : > { %3504 = vmatprep.subr.bf16.mxu1 %v5574_v39  ;;  %3557 = vmatprep.subr.bf16.mxu0 %v5576_v40  ;;  %v6120_v59 = vld [vmem:[%s6870_s28 + $0x130] ss:$8 sps:$4 sm:$0xff]   ;;  %v6128_v39 = vld [vmem:[%s6870_s28 + $0x124] ss:$8 sps:$4 sm:$0xff]   ;;  %v6123_v40 = vld [vmem:[%s6870_s28 + $0x20] ss:$8 sps:$4 sm:$0xff]  }
 0x79a   : > { %3505 = vmatpush2.bf16.msra.mxu1 %v5573_v43  ;;  %3558 = vmatpush2.bf16.msra.mxu0 %v5575_v32  ;;  %v6132_v43 = vld [vmem:[%s6870_s28 + $0x110] ss:$8 sps:$4 sm:$0xff]   ;;  %v6137_v32 = vld [vmem:[%s6870_s28 + $0x4] ss:$8 sps:$4 sm:$0xff]  }
 0x79b   : > { %3506 = vmatprep.subr.bf16.mxu1 %v5566_v42  ;;  %3559 = vmatprep.subr.bf16.mxu0 %v5568_v49  ;;  %v6140_v42 = vld [vmem:[%s6870_s28 + $0x104] ss:$8 sps:$4 sm:$0xff]   ;;  %v6135_v49 = vld [vmem:[%s6870_s28] ss:$8 sps:$4 sm:$0xff]  }
 0x79e   : > { %3507 = vmatpush2.bf16.msra.mxu1 %v5565_v25  ;;  %3560 = vmatpush2.bf16.msra.mxu0 %v5567_v2  ;;  %v6144_v25 = vld [vmem:[%s6870_s28 + $0x1f0] ss:$8 sps:$4 sm:$0xff]   ;;  %v6149_v2 = vld [vmem:[%s6870_s28 + $0xe4] ss:$8 sps:$4 sm:$0xff]  }
 0x79f   : > { %3508 = vmatprep.subr.bf16.mxu1 %v5558_v53  ;;  %3561 = vmatprep.subr.bf16.mxu0 %v5560_v60  ;;  %v6152_v53 = vld [vmem:[%s6870_s28 + $0x1e4] ss:$8 sps:$4 sm:$0xff]   ;;  %v6147_v60 = vld [vmem:[%s6870_s28 + $0xe0] ss:$8 sps:$4 sm:$0xff]  }
 0x7a2   : > { %3509 = vmatpush2.bf16.msra.mxu1 %v5557_v57  ;;  %3562 = vmatpush2.bf16.msra.mxu0 %v5559_v0  ;;  %v6156_v57 = vld [vmem:[%s6870_s28 + $0x1d0] ss:$8 sps:$4 sm:$0xff]   ;;  %v6161_v0 = vld [vmem:[%s6870_s28 + $0xc4] ss:$8 sps:$4 sm:$0xff]  }
 0x7a3   : > { %3510 = vmatprep.subr.bf16.mxu1 %v5550_v6  ;;  %3563 = vmatprep.subr.bf16.mxu0 %v5552_v9  ;;  %v6164_v6 = vld [vmem:[%s6870_s28 + $0x1c4] ss:$8 sps:$4 sm:$0xff]   ;;  %v6159_v9 = vld [vmem:[%s6870_s28 + $0xc0] ss:$8 sps:$4 sm:$0xff]  }
 0x7a6   : > { %3511 = vmatpush2.bf16.msra.mxu1 %v5549_v12  ;;  %3564 = vmatpush2.bf16.msra.mxu0 %v5551_v15  ;;  %v6162_v12 = vld [vmem:[%s6870_s28 + $0x1c0] ss:$8 sps:$4 sm:$0xff]   ;;  %v6167_v15 = vld [vmem:[%s6870_s28 + $0xb4] ss:$8 sps:$4 sm:$0xff]  }
 0x7a7   : > { %4658 = vmatprep.subr.bf16.mxu1 %v6095_v31  ;;  %4711 = vmatprep.subr.bf16.mxu0 %v6098_v29  ;;  %v6170_v31 = vld [vmem:[%s6870_s28 + $0x1b4] ss:$8 sps:$4 sm:$0xff]   ;;  %v6165_v29 = vld [vmem:[%s6870_s28 + $0xb0] ss:$8 sps:$4 sm:$0xff]  }
 0x7a9   : > { %3513 = vmatmul.mubr.bf16.vlgmr.msra.gmra.mxu1 %v7416_v7  ;;  %3566 = vmatmul.mubr.bf16.vlgmr.msra.gmra.mxu0 %v7416_v7  ;;  %v6105_v7 = vld [vmem:[%s6870_s28 + $0x50] ss:$8 sps:$4 sm:$0xff]  }
 0x7aa   : > { %3522 = vmatprep.mubr.bf16.mxu1 %v7436_v13  ;;  %3575 = vmatprep.mubr.bf16.mxu0 %v7436_v13  ;;  %v6113_v13 = vld [vmem:[%s6870_s28 + $0x44] ss:$8 sps:$4 sm:$0xff]  }
 0x7ab   : > { %4659 = vmatpush1.bf16.msra.mxu1 %v6093_v14  ;;  %4712 = vmatpush1.bf16.msra.mxu0 %v6096_v18  ;;  %v6168_v14 = vld [vmem:[%s6870_s28 + $0x1b0] ss:$8 sps:$4 sm:$0xff]   ;;  %v6173_v18 = vld [vmem:[%s6870_s28 + $0xa4] ss:$8 sps:$4 sm:$0xff]  }
 0x7ac   : > { %4660 = vmatprep.subr.bf16.mxu1 %v6101_v22  ;;  %4713 = vmatprep.subr.bf16.mxu0 %v6104_v23  ;;  %v6176_v22 = vld [vmem:[%s6870_s28 + $0x1a4] ss:$8 sps:$4 sm:$0xff]   ;;  %v6171_v23 = vld [vmem:[%s6870_s28 + $0xa0] ss:$8 sps:$4 sm:$0xff]  }
 0x7af   : > { %4661 = vmatpush1.bf16.msra.mxu1 %v6099_v26  ;;  %4714 = vmatpush1.bf16.msra.mxu0 %v6102_v27  ;;  %v6174_v26 = vld [vmem:[%s6870_s28 + $0x1a0] ss:$8 sps:$4 sm:$0xff]   ;;  %v6179_v27 = vld [vmem:[%s6870_s28 + $0x94] ss:$8 sps:$4 sm:$0xff]  }
 0x7b0   : > { %4662 = vmatprep.subr.bf16.mxu1 %v6107_v33  ;;  %4715 = vmatprep.subr.bf16.mxu0 %v6110_v56  ;;  %v6182_v33 = vld [vmem:[%s6870_s28 + $0x194] ss:$8 sps:$4 sm:$0xff]   ;;  %v6177_v56 = vld [vmem:[%s6870_s28 + $0x90] ss:$8 sps:$4 sm:$0xff]  }
 0x7b1   : > { %3523 = vmatmul.mubr.bf16.gmra.mxu1 %v7438_v48  ;;  %3576 = vmatmul.mubr.bf16.gmra.mxu0 %v7438_v48  ;;  %v6125_v48 = vld [vmem:[%s6870_s28 + $0x24] ss:$8 sps:$4 sm:$0xff]  }
 0x7b3   : > { %4663 = vmatpush1.bf16.msra.mxu1 %v6105_v7  ;;  %4716 = vmatpush1.bf16.msra.mxu0 %v6108_v5  ;;  %v6180_v7 = vld [vmem:[%s6870_s28 + $0x190] ss:$8 sps:$4 sm:$0xff]   ;;  %v6185_v5 = vld [vmem:[%s6870_s28 + $0x84] ss:$8 sps:$4 sm:$0xff]  }
 0x7b4   : > { %4664 = vmatprep.subr.bf16.mxu1 %v6113_v13  ;;  %4717 = vmatprep.subr.bf16.mxu0 %v6116_v62  ;;  %v6188_v13 = vld [vmem:[%s6870_s28 + $0x184] ss:$8 sps:$4 sm:$0xff]   ;;  %v6183_v62 = vld [vmem:[%s6870_s28 + $0x80] ss:$8 sps:$4 sm:$0xff]  }
 0x7b7   : > { %4665 = vmatpush1.bf16.msra.mxu1 %v6111_v21  ;;  %4718 = vmatpush1.bf16.msra.mxu0 %v6114_v34  ;;  %v6186_v21 = vld [vmem:[%s6870_s28 + $0x180] ss:$8 sps:$4 sm:$0xff]   ;;  %v6191_v34 = vld [vmem:[%s6870_s28 + $0x274] ss:$8 sps:$4 sm:$0xff]  }
 0x7b8   : > { %4666 = vmatprep.subr.bf16.mxu1 %v6119_v35  ;;  %4719 = vmatprep.subr.bf16.mxu0 %v6122_v61  ;;  %v6194_v35 = vld [vmem:[%s6870_s28 + $0x374] ss:$8 sps:$4 sm:$0xff]   ;;  %v7565_v61 = vld [vmem:[%s6854_s20] sm:$0xff] }
 0x7bb   : > { %4667 = vmatpush1.bf16.msra.mxu1 %v6117_v10  ;;  %4720 = vmatpush1.bf16.msra.mxu0 %v6120_v59  ;;  %v7569_v10 = vrot.slane %v7565_v61, %v7017_v4  ;;  %v7574_v59 = vrot.slane %v7565_v61, %v1056_v19 }
 0x7bc   : > { %4668 = vmatprep.subr.bf16.mxu1 %v6125_v48  ;;  %4721 = vmatprep.subr.bf16.mxu0 %v6128_v39 }
 0x7bf   : > { %4669 = vmatpush1.bf16.msra.mxu1 %v6123_v40  ;;  %4722 = vmatpush1.bf16.msra.mxu0 %v6126_v30  ;;  %v7578_v40 = vrot.slane %v7565_v61, %v7014_v3  ;;  %v7583_v30 = vrot.slane %v7565_v61, %v1060_v36 }
 0x7c0   : > { %4670 = vmatprep.subr.bf16.mxu1 %v6131_v11  ;;  %4723 = vmatprep.subr.bf16.mxu0 %v6134_v28 }
 0x7c3   : > { %4671 = vmatpush1.bf16.msra.mxu1 %v6129_v44  ;;  %4724 = vmatpush1.bf16.msra.mxu0 %v6132_v43 }
 0x7c4   : > { %4672 = vmatprep.subr.bf16.mxu1 %v6137_v32  ;;  %4725 = vmatprep.subr.bf16.mxu0 %v6140_v42 }
 0x7c7   : > { %4673 = vmatpush1.bf16.msra.mxu1 %v6135_v49  ;;  %4726 = vmatpush1.bf16.msra.mxu0 %v6138_v50 }
 0x7c8   : > { %4674 = vmatprep.subr.bf16.mxu1 %v6143_v51  ;;  %4727 = vmatprep.subr.bf16.mxu0 %v6146_v52 }
 0x7cb   : > { %4675 = vmatpush2.bf16.msra.mxu1 %v6141_v24  ;;  %4728 = vmatpush2.bf16.msra.mxu0 %v6144_v25 }
 0x7cc   : > { %4676 = vmatprep.subr.bf16.mxu1 %v6149_v2  ;;  %4729 = vmatprep.subr.bf16.mxu0 %v6152_v53 }
 0x7cf   : > { %4677 = vmatpush2.bf16.msra.mxu1 %v6147_v60  ;;  %4730 = vmatpush2.bf16.msra.mxu0 %v6150_v58 }
 0x7d0   : > { %4678 = vmatprep.subr.bf16.mxu1 %v6155_v45  ;;  %4731 = vmatprep.subr.bf16.mxu0 %v6158_v54 }
 0x7d3   : > { %4679 = vmatpush2.bf16.msra.mxu1 %v6153_v55  ;;  %4732 = vmatpush2.bf16.msra.mxu0 %v6156_v57 }
 0x7d4   : > { %4680 = vmatprep.subr.bf16.mxu1 %v6161_v0  ;;  %4733 = vmatprep.subr.bf16.mxu0 %v6164_v6 }
 0x7d7   : > { %4681 = vmatpush2.bf16.msra.mxu1 %v6159_v9  ;;  %4734 = vmatpush2.bf16.msra.mxu0 %v6162_v12 }
 0x7d8   : > { %4682 = vmatprep.subr.bf16.mxu1 %v6167_v15  ;;  %4735 = vmatprep.subr.bf16.mxu0 %v6170_v31 }
 0x7db   : > { %4683 = vmatpush2.bf16.msra.mxu1 %v6165_v29  ;;  %4736 = vmatpush2.bf16.msra.mxu0 %v6168_v14 }
 0x7dc   : > { %4684 = vmatprep.subr.bf16.mxu1 %v6173_v18  ;;  %4737 = vmatprep.subr.bf16.mxu0 %v6176_v22 }
 0x7df   : > { %4685 = vmatpush2.bf16.msra.mxu1 %v6171_v23  ;;  %4738 = vmatpush2.bf16.msra.mxu0 %v6174_v26 }
 0x7e0   : > { %4686 = vmatprep.subr.bf16.mxu1 %v6179_v27  ;;  %4739 = vmatprep.subr.bf16.mxu0 %v6182_v33 }
 0x7e3   : > { %4687 = vmatpush2.bf16.msra.mxu1 %v6177_v56  ;;  %4740 = vmatpush2.bf16.msra.mxu0 %v6180_v7 }
 0x7e4   : > { %4688 = vmatprep.subr.bf16.mxu1 %v6185_v5  ;;  %4741 = vmatprep.subr.bf16.mxu0 %v6188_v13 }
 0x7e7   : > { %4689 = vmatpush2.bf16.msra.mxu1 %v6183_v62  ;;  %4742 = vmatpush2.bf16.msra.mxu0 %v6186_v21 }
 0x7e8   : > { %4764 = vmatprep.subr.bf16.mxu1 %v6191_v34  ;;  %4817 = vmatprep.subr.bf16.mxu0 %v6194_v35 }
 0x829   : > { %v3408_v48 = vpop.f32.mrf.mxu1  ;;  %v3461_v39 = vpop.f32.mrf.mxu0 }
 0x82a   : > { %v7586_v11 = vadd.f32 %v3408_v48, %v7569_v10  ;;  %v7589_v28 = vadd.f32 %v3461_v39, %v7574_v59 }
 0x82b   : > { %v3410_v44 = vpop.f32.mrf.mxu1  ;;  %v3463_v19 = vpop.f32.mrf.mxu0 }
 0x82c   : > { %v3618_v43 = vmul.f32 %v7586_v11, %v7586_v11  ;;  %v3620_v32 = vmul.f32 %v7589_v28, %v7589_v28  ;;  %v7596_v42 = vadd.f32 %v3410_v44, %v7578_v40  ;;  %v7599_v36 = vadd.f32 %v3463_v19, %v7583_v30 }
 0x82d   : > { %v3412_v49 = vpop.f32.mrf.mxu1  ;;  %v3465_v50 = vpop.f32.mrf.mxu0 }
 0x82e   : > { %v3650_v51 = vmul.f32 %v3618_v43, %v7586_v11  ;;  %v3652_v52 = vmul.f32 %v3620_v32, %v7589_v28  ;;  %v7604_v24 = vadd.f32 %v3412_v49, %v7569_v10  ;;  %v7607_v25 = vadd.f32 %v3465_v50, %v7574_v59 }
 0x82f   : > { %v3619_v2 = vmul.f32 %v7596_v42, %v7596_v42  ;;  %v3621_v53 = vmul.f32 %v7599_v36, %v7599_v36  ;;  %v3414_v60 = vpop.f32.mrf.mxu1  ;;  %v3467_v58 = vpop.f32.mrf.mxu0 }
 0x830   : > { %v3682_v45 = vmul.f32 0.044715, %v3650_v51  ;;  %v3684_v54 = vmul.f32 0.044715, %v3652_v52  ;;  %v3626_v55 = vmul.f32 %v7604_v24, %v7604_v24  ;;  %v3628_v6 = vmul.f32 %v7607_v25, %v7607_v25 }
 0x831   : > { %v3651_v57 = vmul.f32 %v3619_v2, %v7596_v42  ;;  %v3653_v0 = vmul.f32 %v3621_v53, %v7599_v36  ;;  %v3418_v9 = vpop.f32.mrf.mxu1  ;;  %v7623_v29 = vadd.f32 %v3414_v60, %v7578_v40  ;;  %v7627_v23 = vadd.f32 %v3467_v58, %v7583_v30  ;;  %v3471_v26 = vpop.f32.mrf.mxu0 }
 0x832   : > { %v3714_v12 = vadd.f32 %v3682_v45, %v7586_v11  ;;  %v3716_v15 = vadd.f32 %v3684_v54, %v7589_v28  ;;  %v3658_v31 = vmul.f32 %v3626_v55, %v7604_v24  ;;  %v3660_v22 = vmul.f32 %v3628_v6, %v7607_v25 }
 0x833   : > { %v3683_v14 = vmul.f32 0.044715, %v3651_v57  ;;  %v3685_v18 = vmul.f32 0.044715, %v3653_v0  ;;  %v3627_v7 = vmul.f32 %v7623_v29, %v7623_v29  ;;  %v3629_v21 = vmul.f32 %v7627_v23, %v7627_v23  ;;  %v3420_v34 = vpop.f32.mrf.mxu1  ;;  %v3473_v32 = vpop.f32.mrf.mxu0 }
 0x834   : > { %v3746_v27 = vmul.f32 0.7978846, %v3714_v12  ;;  %v3748_v33 = vmul.f32 0.7978846, %v3716_v15  ;;  %v3690_v56 = vmul.f32 0.044715, %v3658_v31  ;;  %v7638_v39 = vadd.f32 %v3418_v9, %v7569_v10 }
 0x835   : > { %v3715_v5 = vadd.f32 %v3683_v14, %v7596_v42  ;;  %v3717_v13 = vadd.f32 %v3685_v18, %v7599_v36  ;;  %v3692_v62 = vmul.f32 0.044715, %v3660_v22  ;;  %v3659_v48 = vmul.f32 %v3627_v7, %v7623_v29  ;;  %v3422_v58 = vpop.f32.mrf.mxu1  ;;  %v3475_v9 = vpop.f32.mrf.mxu0 }
 0x836   : > { %6333 = vtanh.f32 %v3746_v27  ;;  %v3722_v35 = vadd.f32 %v3690_v56, %v7604_v24  ;;  %v3661_v51 = vmul.f32 %v3629_v21, %v7627_v23  ;;  %v3634_v52 = vmul.f32 %v7638_v39, %v7638_v39 }
 0x837   : > { %6335 = vtanh.f32 %v3748_v33  ;;  %v3747_v44 = vmul.f32 0.7978846, %v3715_v5  ;;  %v3749_v19 = vmul.f32 0.7978846, %v3717_v13  ;;  %v3724_v43 = vadd.f32 %v3692_v62, %v7607_v25  ;;  %v3424_v27 = vpop.f32.mrf.mxu1 }
 0x838   : > { %v3754_v49 = vmul.f32 0.7978846, %v3722_v35  ;;  %v3691_v50 = vmul.f32 0.044715, %v3659_v48  ;;  %v7645_v53 = vadd.f32 %v3471_v26, %v7574_v59  ;;  %v7648_v60 = vadd.f32 %v3420_v34, %v7578_v40  ;;  %v3477_v34 = vpop.f32.mrf.mxu0 }
 0x839   : > { %6337 = vtanh.f32 %v3747_v44  ;;  %v3756_v2 = vmul.f32 0.7978846, %v3724_v43  ;;  %v3693_v54 = vmul.f32 0.044715, %v3661_v51  ;;  %v3666_v55 = vmul.f32 %v3634_v52, %v7638_v39 }
 0x83a   : > { %6339 = vtanh.f32 %v3749_v19  ;;  %v3723_v45 = vadd.f32 %v3691_v50, %v7623_v29  ;;  %v3636_v57 = vmul.f32 %v7645_v53, %v7645_v53  ;;  %v3635_v0 = vmul.f32 %v7648_v60, %v7648_v60 }
 0x83b   : > { %6341 = vtanh.f32 %v3754_v49  ;;  %v7657_v6 = vadd.f32 %v3473_v32, %v7583_v30  ;;  %v3725_v15 = vadd.f32 %v3693_v54, %v7627_v23  ;;  %v3698_v31 = vmul.f32 0.044715, %v3666_v55 }
 0x83c   : > { %6343 = vtanh.f32 %v3756_v2  ;;  %v3755_v12 = vmul.f32 0.7978846, %v3723_v45  ;;  %v3668_v14 = vmul.f32 %v3636_v57, %v7645_v53  ;;  %v3667_v18 = vmul.f32 %v3635_v0, %v7648_v60 }
 0x83d   : > { %v3637_v22 = vmul.f32 %v7657_v6, %v7657_v6  ;;  %v7665_v26 = vadd.f32 %v3422_v58, %v7569_v10  ;;  %v3757_v33 = vmul.f32 0.7978846, %v3725_v15  ;;  %v3730_v56 = vadd.f32 %v3698_v31, %v7638_v39 }
 0x83e   : > { %6345 = vtanh.f32 %v3755_v12  ;;  %v7669_v7 = vadd.f32 %v3475_v9, %v7574_v59  ;;  %v3700_v5 = vmul.f32 0.044715, %v3668_v14  ;;  %v3699_v13 = vmul.f32 0.044715, %v3667_v18 }
 0x83f   : > { %v3669_v62 = vmul.f32 %v3637_v22, %v7657_v6  ;;  %v3642_v21 = vmul.f32 %v7665_v26, %v7665_v26  ;;  %6347 = vtanh.f32 %v3757_v33  ;;  %v7677_v35 = vadd.f32 %v3424_v27, %v7578_v40 }
 0x840   : > { %v3644_v10 = vmul.f32 %v7669_v7, %v7669_v7  ;;  %v3732_v48 = vadd.f32 %v3700_v5, %v7645_v53  ;;  %v3731_v59 = vadd.f32 %v3699_v13, %v7648_v60  ;;  %v3762_v43 = vmul.f32 0.7978846, %v3730_v56 }
 0x841   : > { %v3701_v44 = vmul.f32 0.044715, %v3669_v62  ;;  %v3674_v19 = vmul.f32 %v3642_v21, %v7665_v26  ;;  %v3643_v49 = vmul.f32 %v7677_v35, %v7677_v35  ;;  %v7686_v50 = vadd.f32 %v3477_v34, %v7583_v30 }
 0x842   : > { %v3676_v32 = vmul.f32 %v3644_v10, %v7669_v7  ;;  %v3764_v52 = vmul.f32 0.7978846, %v3732_v48  ;;  %v3763_v45 = vmul.f32 0.7978846, %v3731_v59  ;;  %v3586_v12 = vmul.f32 0.5, %v7586_v11 }
 0x843   : > { %v6334_v51 = vpop.eup %6333  ;;  %v3733_v40 = vadd.f32 %v3701_v44, %v7657_v6  ;;  %v3706_v2 = vmul.f32 0.044715, %v3674_v19  ;;  %v3675_v55 = vmul.f32 %v3643_v49, %v7677_v35  ;;  %v3645_v57 = vmul.f32 %v7686_v50, %v7686_v50 }
 0x844   : > { %v6336_v58 = vpop.eup %6335  ;;  %v3708_v54 = vmul.f32 0.044715, %v3676_v32  ;;  %6349 = vtanh.f32 %v3762_v43  ;;  %v3587_v5 = vmul.f32 0.5, %v7596_v42  ;;  %v3589_v21 = vmul.f32 0.5, %v7599_v36 }
 0x845   : > { %v3738_v0 = vadd.f32 %v3706_v2, %v7665_v26  ;;  %v3707_v15 = vmul.f32 0.044715, %v3675_v55  ;;  %6351 = vtanh.f32 %v3764_v52  ;;  %v3765_v14 = vmul.f32 0.7978846, %v3733_v40 }
 0x846   : > { %v6338_v9 = vpop.eup %6337  ;;  %v3740_v30 = vadd.f32 %v3708_v54, %v7669_v7  ;;  %v3677_v22 = vmul.f32 %v3645_v57, %v7686_v50  ;;  %6353 = vtanh.f32 %v3763_v45  ;;  %v3594_v34 = vmul.f32 0.5, %v7604_v24 }
 0x847   : > { %v6340_v31 = vpop.eup %6339  ;;  %v3770_v18 = vmul.f32 0.7978846, %v3738_v0  ;;  %v3739_v56 = vadd.f32 %v3707_v15, %v7677_v35  ;;  %v3811_v48 = vadd.f32 1.0, %v6338_v9  ;;  %v3810_v44 = vadd.f32 1.0, %v6334_v51  ;;  %v6189_v15 = vld [vmem:[%s6870_s28 + $0x270] ss:$8 sps:$4 sm:$0xff]  }
 0x848   : > { %v6342_v27 = vpop.eup %6341  ;;  %v3772_v33 = vmul.f32 0.7978846, %v3740_v30  ;;  %v3709_v11 = vmul.f32 0.044715, %v3677_v22  ;;  %v3595_v42 = vmul.f32 0.5, %v7623_v29  ;;  %v3813_v49 = vadd.f32 1.0, %v6340_v31 }
 0x849   : > { %v6344_v13 = vpop.eup %6343  ;;  %v3818_v62 = vadd.f32 1.0, %v6342_v27  ;;  %6355 = vtanh.f32 %v3770_v18  ;;  %v3771_v10 = vmul.f32 0.7978846, %v3739_v56  ;;  %v3812_v40 = vadd.f32 1.0, %v6336_v58 }
 0x84a   : > { %6357 = vtanh.f32 %v3772_v33  ;;  %v3820_v19 = vadd.f32 1.0, %v6344_v13  ;;  %v3741_v43 = vadd.f32 %v3709_v11, %v7686_v50  ;;  %v3596_v24 = vmul.f32 0.5, %v7607_v25  ;;  %v6195_v33 = vld [vmem:[%s6870_s28 + $0x260] ss:$8 sps:$4 sm:$0xff]  }
 0x84b   : > { %v6346_v59 = vpop.eup %6345  ;;  %6359 = vtanh.f32 %v3765_v14  ;;  %v3850_v36 = vmul.f32 %v3818_v62, %v3594_v34  ;;  %v3843_v45 = vmul.f32 %v3811_v48, %v3587_v5  ;;  %v3597_v51 = vmul.f32 0.5, %v7627_v23  ;;  %v6197_v14 = vld [vmem:[%s6870_s28 + $0x264] ss:$8 sps:$4 sm:$0xff]   ;;  %v6192_v23 = vld [vmem:[%s6870_s28 + $0x370] ss:$8 sps:$4 sm:$0xff]  }
 0x84c   : > { %6361 = vtanh.f32 %v3771_v10  ;;  %v3819_v32 = vadd.f32 1.0, %v6346_v59  ;;  %v6348_v52 = vpop.eup %6347  ;;  %v3773_v2 = vmul.f32 0.7978846, %v3741_v43  ;;  %v3842_v57 = vmul.f32 %v3810_v44, %v3586_v12  ;;  %v6200_v12 = vld [vmem:[%s6870_s28 + $0x364] ss:$8 sps:$4 sm:$0xff]  }
 0x84d   : > { %v3821_v55 = vadd.f32 1.0, %v6348_v52  ;;  %v3588_v0 = vmul.f32 0.5, %v7589_v28  ;;  %v3852_v29 = vmul.f32 %v3820_v19, %v3596_v24  ;;  %v3845_v30 = vmul.f32 %v3813_v49, %v3589_v21  ;;  %v6203_v5 = vld [vmem:[%s6870_s28 + $0x254] ss:$8 sps:$4 sm:$0xff]   ;;  %v6198_v62 = vld [vmem:[%s6870_s28 + $0x360] ss:$8 sps:$4 sm:$0xff]  }
 0x84e   : > { %v3851_v54 = vmul.f32 %v3819_v32, %v3595_v42  ;;  %6363 = vtanh.f32 %v3773_v2  ;;  %v3874_v31 = vpack.c.bf16 %v3850_v36, %v3842_v57  ;;  %v6206_v21 = vld [vmem:[%s6870_s28 + $0x354] ss:$8 sps:$4 sm:$0xff]   ;;  %v6201_v59 = vld [vmem:[%s6870_s28 + $0x250] ss:$8 sps:$4 sm:$0xff]   ;;  %v3610_v19 = vmul.f32 0.5, %v7665_v26 }
 0x84f   : > { %v3853_v58 = vmul.f32 %v3821_v55, %v3597_v51  ;;  %v3844_v25 = vmul.f32 %v3812_v40, %v3588_v0  ;;  %v6209_v42 = vld [vmem:[%s6870_s28 + $0x244] ss:$8 sps:$4 sm:$0xff]   ;;  %v3603_v32 = vmul.f32 0.5, %v7648_v60  ;;  %v3611_v49 = vmul.f32 0.5, %v7677_v35  ;;  %v6204_v40 = vld [vmem:[%s6870_s28 + $0x350] ss:$8 sps:$4 sm:$0xff]  }
 0x850   : > { %v3875_v9 = vpack.c.bf16 %v3851_v54, %v3843_v45  ;;  %v3602_v2 = vmul.f32 0.5, %v7638_v39  ;;  %v6212_v54 = vld [vmem:[%s6870_s28 + $0x344] ss:$8 sps:$4 sm:$0xff]   ;;  %v3612_v57 = vmul.f32 0.5, %v7669_v7  ;;  %v6207_v0 = vld [vmem:[%s6870_s28 + $0x240] ss:$8 sps:$4 sm:$0xff]  }
 0x851   : > { %v3877_v18 = vpack.c.bf16 %v3853_v58, %v3845_v30  ;;  %v6350_v22 = vpop.eup %6349  ;;  %v3876_v28 = vpack.c.bf16 %v3852_v29, %v3844_v25  ;;  %v3605_v35 = vmul.f32 0.5, %v7657_v6  ;;  %v3613_v29 = vmul.f32 0.5, %v7686_v50  ;;  %v6215_v39 = vld [vmem:[%s6870_s28 + $0x234] ss:$8 sps:$4 sm:$0xff]   ;;  %v6210_v7 = vld [vmem:[%s6870_s28 + $0x340] ss:$8 sps:$4 sm:$0xff]  }
 0x852   : > { %4690 = vmatprep.mubr.bf16.mxu1 %v3875_v9  ;;  %v6352_v27 = vpop.eup %6351  ;;  %v3826_v43 = vadd.f32 1.0, %v6350_v22  ;;  %v6218_v6 = vld [vmem:[%s6870_s28 + $0x334] ss:$8 sps:$4 sm:$0xff]  }
 0x853   : > { %4691 = vmatmul.mubr.bf16.vlgmr.msra.gmra.mxu1 %v3874_v31  ;;  %4743 = vmatprep.mubr.bf16.mxu0 %v3877_v18  ;;  %v6354_v56 = vpop.eup %6353  ;;  %v3828_v60 = vadd.f32 1.0, %v6352_v27  ;;  %v2720_v27 = vsub.s32 6, %v7011_v1 }
 0x854   : > { %4765 = vmatpush1.bf16.msra.mxu1 %v6189_v15  ;;  %4744 = vmatmul.mubr.bf16.vlgmr.msra.gmra.mxu0 %v3876_v28  ;;  %v3827_v48 = vadd.f32 1.0, %v6354_v56  ;;  %v3858_v30 = vmul.f32 %v3826_v43, %v3602_v2  ;;  %v3604_v15 = vmul.f32 0.5, %v7645_v53  ;;  %v6221_v53 = vld [vmem:[%s6870_s28 + $0x224] ss:$8 sps:$4 sm:$0xff]   ;;  %v6219_v56 = vld [vmem:[%s6870_s28 + $0x220] ss:$8 sps:$4 sm:$0xff]  }
 0x855   : > { %4766 = vmatprep.subr.bf16.mxu1 %v6197_v14  ;;  %4818 = vmatpush1.bf16.msra.mxu0 %v6192_v23  ;;  %v6213_v23 = vld [vmem:[%s6870_s28 + $0x230] ss:$8 sps:$4 sm:$0xff]  }
 0x856   : > { %v6356_v13 = vpop.eup %6355  ;;  %4819 = vmatprep.subr.bf16.mxu0 %v6200_v12  ;;  %v3859_v26 = vmul.f32 %v3827_v48, %v3603_v32  ;;  %v3860_v50 = vmul.f32 %v3828_v60, %v3604_v15  ;;  %v6216_v12 = vld [vmem:[%s6870_s28 + $0x330] ss:$8 sps:$4 sm:$0xff]   ;;  %v6234_v60 = vld [vmem:[%s6870_s28 + $0x300] ss:$8 sps:$4 sm:$0xff]  }
 0x857   : > { %v6358_v11 = vpop.eup %6357  ;;  %v3834_v34 = vadd.f32 1.0, %v6356_v13  ;;  %v2724_v13 = vsub.s32 7, %v7011_v1  ;;  %v6228_v32 = vld [vmem:[%s6870_s28 + $0x310] ss:$8 sps:$4 sm:$0xff]   ;;  %v6236_v1 = vld [vmem:[%s6870_s28 + $0x304] ss:$8 sps:$4 sm:$0xff]  }
 0x858   : > { %v6360_v10 = vpop.eup %6359  ;;  %4767 = vmatpush1.bf16.msra.mxu1 %v6195_v33  ;;  %v3836_v36 = vadd.f32 1.0, %v6358_v11  ;;  %v6224_v33 = vld [vmem:[%s6870_s28 + $0x324] ss:$8 sps:$4 sm:$0xff]   ;;  %v7741_v11 = vrot.slane %v7565_v61, %v1064_v63 }
 0x859   : > { %v6362_v44 = vpop.eup %6361  ;;  %4768 = vmatprep.subr.bf16.mxu1 %v6203_v5  ;;  %4820 = vmatpush1.bf16.msra.mxu0 %v6198_v62  ;;  %v3829_v24 = vadd.f32 1.0, %v6360_v10  ;;  %v3866_v45 = vmul.f32 %v3834_v34, %v3610_v19  ;;  %v6227_v5 = vld [vmem:[%s6870_s28 + $0x214] ss:$8 sps:$4 sm:$0xff]   ;;  %v6222_v62 = vld [vmem:[%s6870_s28 + $0x320] ss:$8 sps:$4 sm:$0xff]   ;;  %v7754_v63 = vrot.slane %v7565_v61, %v2724_v13 }
 0x85a   : > { %v3835_v52 = vadd.f32 1.0, %v6362_v44  ;;  %4821 = vmatprep.subr.bf16.mxu0 %v6206_v21  ;;  %v3868_v25 = vmul.f32 %v3836_v36, %v3612_v57  ;;  %v7744_v21 = vrot.slane %v7565_v61, %v2720_v27  ;;  %v6230_v34 = vld [vmem:[%s6870_s28 + $0x314] ss:$8 sps:$4 sm:$0xff]   ;;  %v6225_v10 = vld [vmem:[%s6870_s28 + $0x210] ss:$8 sps:$4 sm:$0xff]   ;;  %v7751_v44 = vrot.slane %v7565_v61, %v1068_v16 }
 0x85b   : > { %v6364_v51 = vpop.eup %6363  ;;  %v3861_v31 = vmul.f32 %v3829_v24, %v3605_v35  ;;  %v3882_v18 = vpack.c.bf16 %v3866_v45, %v3858_v30  ;;  %v6233_v19 = vld [vmem:[%s6870_s28 + $0x204] ss:$8 sps:$4 sm:$0xff]   ;;  %v6242_v30 = vld [vmem:[%s6870_s28 + $0x3f4] ss:$8 sps:$4 sm:$0xff]  }
 0x85c   : > { %v3867_v55 = vmul.f32 %v3835_v52, %v3611_v49  ;;  %4769 = vmatpush1.bf16.msra.mxu1 %v6201_v59  ;;  %v3837_v9 = vadd.f32 1.0, %v6364_v51  ;;  %v3884_v28 = vpack.c.bf16 %v3868_v25, %v3860_v50  ;;  %v6237_v25 = vld [vmem:[%s6870_s28 + $0x2f0] ss:$8 sps:$4 sm:$0xff]  }
 0x85d   : > { %4770 = vmatprep.subr.bf16.mxu1 %v6209_v42  ;;  %4822 = vmatpush1.bf16.msra.mxu0 %v6204_v40  ;;  %v6231_v40 = vld [vmem:[%s6870_s28 + $0x200] ss:$8 sps:$4 sm:$0xff]  }
 0x85e   : > { %v3883_v58 = vpack.c.bf16 %v3867_v55, %v3859_v26  ;;  %v3869_v14 = vmul.f32 %v3837_v9, %v3613_v29  ;;  %4823 = vmatprep.subr.bf16.mxu0 %v6212_v54  ;;  %v6239_v54 = vld [vmem:[%s6870_s28 + $0x2f4] ss:$8 sps:$4 sm:$0xff]  }
 0x860   : > { %4700 = vmatprep.mubr.bf16.mxu1 %v3883_v58  ;;  %4771 = vmatpush1.bf16.msra.mxu1 %v6207_v0  ;;  %v3885_v22 = vpack.c.bf16 %v3869_v14, %v3861_v31 }
 0x861   : > { %4701 = vmatmul.mubr.bf16.gmra.mxu1 %v3882_v18  ;;  %4772 = vmatprep.subr.bf16.mxu1 %v6215_v39 }
 0x862   : > { %4824 = vmatpush1.bf16.msra.mxu0 %v6210_v7  ;;  %4753 = vmatprep.mubr.bf16.mxu0 %v3885_v22 }
 0x863   : > { %4825 = vmatprep.subr.bf16.mxu0 %v6218_v6  ;;  %4754 = vmatmul.mubr.bf16.gmra.mxu0 %v3884_v28  ;;  %v6245_v6 = vld [vmem:[%s6870_s28 + $0x2e4] ss:$8 sps:$4 sm:$0xff]   ;;  %v6240_v28 = vld [vmem:[%s6870_s28 + $0x3f0] ss:$8 sps:$4 sm:$0xff]  }
 0x864   : > { %4773 = vmatpush1.bf16.msra.mxu1 %v6213_v23 }
 0x865   : > { %4774 = vmatprep.subr.bf16.mxu1 %v6221_v53 }
 0x866   : > { %4826 = vmatpush1.bf16.msra.mxu0 %v6216_v12  ;;  %v6243_v12 = vld [vmem:[%s6870_s28 + $0x2e0] ss:$8 sps:$4 sm:$0xff]  }
 0x867   : > { %4827 = vmatprep.subr.bf16.mxu0 %v6224_v33 }
 0x868   : > { %4775 = vmatpush1.bf16.msra.mxu1 %v6219_v56 }
 0x869   : > { %v3514_v48 = vpop.f32.mrf.mxu1  ;;  %v3567_v59 = vpop.f32.mrf.mxu0  ;;  %4776 = vmatprep.subr.bf16.mxu1 %v6227_v5 }
 0x86a   : > { %4828 = vmatpush1.bf16.msra.mxu0 %v6222_v62  ;;  %v7758_v43 = vadd.f32 %v3514_v48, %v7741_v11  ;;  %v7761_v42 = vadd.f32 %v3567_v59, %v7744_v21  ;;  %v6248_v62 = vld [vmem:[%s6870_s28 + $0x3e4] ss:$8 sps:$4 sm:$0xff]  }
 0x86b   : > { %4829 = vmatprep.subr.bf16.mxu0 %v6230_v34  ;;  %v3516_v49 = vpop.f32.mrf.mxu1  ;;  %v3569_v52 = vpop.f32.mrf.mxu0 }
 0x86c   : > { %v3622_v16 = vmul.f32 %v7758_v43, %v7758_v43  ;;  %v3624_v61 = vmul.f32 %v7761_v42, %v7761_v42  ;;  %4777 = vmatpush1.bf16.msra.mxu1 %v6225_v10  ;;  %v7771_v36 = vadd.f32 %v3516_v49, %v7751_v44  ;;  %v7774_v24 = vadd.f32 %v3569_v52, %v7754_v63 }
 0x86d   : > { %v3518_v2 = vpop.f32.mrf.mxu1  ;;  %v3571_v45 = vpop.f32.mrf.mxu0  ;;  %4778 = vmatprep.subr.bf16.mxu1 %v6233_v19 }
 0x86e   : > { %v3654_v51 = vmul.f32 %v3622_v16, %v7758_v43  ;;  %v3656_v26 = vmul.f32 %v3624_v61, %v7761_v42  ;;  %4830 = vmatpush1.bf16.msra.mxu0 %v6228_v32  ;;  %v7780_v55 = vadd.f32 %v3518_v2, %v7741_v11  ;;  %v7783_v57 = vadd.f32 %v3571_v45, %v7744_v21  ;;  %v6251_v16 = vld [vmem:[%s6870_s28 + $0x2d4] ss:$8 sps:$4 sm:$0xff]   ;;  %v6246_v45 = vld [vmem:[%s6870_s28 + $0x3e0] ss:$8 sps:$4 sm:$0xff]  }
 0x86f   : > { %v3623_v0 = vmul.f32 %v7771_v36, %v7771_v36  ;;  %v3625_v35 = vmul.f32 %v7774_v24, %v7774_v24  ;;  %4831 = vmatprep.subr.bf16.mxu0 %v6236_v1  ;;  %v3520_v29 = vpop.f32.mrf.mxu1  ;;  %v3573_v9 = vpop.f32.mrf.mxu0 }
 0x870   : > { %v3686_v39 = vmul.f32 0.044715, %v3654_v51  ;;  %v3688_v58 = vmul.f32 0.044715, %v3656_v26  ;;  %v3630_v15 = vmul.f32 %v7780_v55, %v7780_v55  ;;  %4779 = vmatpush1.bf16.msra.mxu1 %v6231_v40  ;;  %v3632_v14 = vmul.f32 %v7783_v57, %v7783_v57 }
 0x871   : > { %v3655_v7 = vmul.f32 %v3623_v0, %v7771_v36  ;;  %v3657_v31 = vmul.f32 %v3625_v35, %v7774_v24  ;;  %v3524_v18 = vpop.f32.mrf.mxu1  ;;  %4780 = vmatprep.subr.bf16.mxu1 %v6239_v54  ;;  %v7803_v53 = vadd.f32 %v3520_v29, %v7751_v44  ;;  %v7809_v5 = vadd.f32 %v3573_v9, %v7754_v63  ;;  %v3577_v13 = vpop.f32.mrf.mxu0  ;;  %v6254_v0 = vld [vmem:[%s6870_s28 + $0x3d4] ss:$8 sps:$4 sm:$0xff]  }
 0x872   : > { %v3718_v50 = vadd.f32 %v3686_v39, %v7758_v43  ;;  %v3720_v23 = vadd.f32 %v3688_v58, %v7761_v42  ;;  %v3662_v22 = vmul.f32 %v3630_v15, %v7780_v55  ;;  %4832 = vmatpush1.bf16.msra.mxu0 %v6234_v60  ;;  %v3664_v56 = vmul.f32 %v3632_v14, %v7783_v57  ;;  %v6249_v39 = vld [vmem:[%s6870_s28 + $0x2d0] ss:$8 sps:$4 sm:$0xff]  }
 0x873   : > { %v3687_v27 = vmul.f32 0.044715, %v3655_v7  ;;  %v3689_v33 = vmul.f32 0.044715, %v3657_v31  ;;  %4833 = vmatprep.subr.bf16.mxu0 %v6242_v30  ;;  %v3631_v59 = vmul.f32 %v7803_v53, %v7803_v53  ;;  %v3633_v52 = vmul.f32 %v7809_v5, %v7809_v5  ;;  %v3526_v1 = vpop.f32.mrf.mxu1  ;;  %v3579_v60 = vpop.f32.mrf.mxu0  ;;  %v6257_v31 = vld [vmem:[%s6870_s28 + $0x2c4] ss:$8 sps:$4 sm:$0xff]  }
 0x874   : > { %v3750_v34 = vmul.f32 0.7978846, %v3718_v50  ;;  %v3752_v10 = vmul.f32 0.7978846, %v3720_v23  ;;  %v3694_v48 = vmul.f32 0.044715, %v3662_v22  ;;  %4781 = vmatpush2.bf16.msra.mxu1 %v6237_v25  ;;  %v7822_v2 = vadd.f32 %v3524_v18, %v7741_v11 }
 0x875   : > { %v3719_v19 = vadd.f32 %v3687_v27, %v7771_v36  ;;  %v3721_v32 = vadd.f32 %v3689_v33, %v7774_v24  ;;  %v3696_v49 = vmul.f32 0.044715, %v3664_v56  ;;  %4782 = vmatprep.subr.bf16.mxu1 %v6245_v6  ;;  %v3663_v40 = vmul.f32 %v3631_v59, %v7803_v53  ;;  %v3528_v7 = vpop.f32.mrf.mxu1  ;;  %v6252_v50 = vld [vmem:[%s6870_s28 + $0x3d0] ss:$8 sps:$4 sm:$0xff]   ;;  %v6260_v27 = vld [vmem:[%s6870_s28 + $0x3c4] ss:$8 sps:$4 sm:$0xff]  }
 0x876   : > { %6365 = vtanh.f32 %v3750_v34  ;;  %v3726_v61 = vadd.f32 %v3694_v48, %v7780_v55  ;;  %4834 = vmatpush2.bf16.msra.mxu0 %v6240_v28  ;;  %v3665_v9 = vmul.f32 %v3633_v52, %v7809_v5  ;;  %v3638_v30 = vmul.f32 %v7822_v2, %v7822_v2 }
 0x877   : > { %6367 = vtanh.f32 %v3752_v10  ;;  %v3751_v54 = vmul.f32 0.7978846, %v3719_v19  ;;  %v3753_v51 = vmul.f32 0.7978846, %v3721_v32  ;;  %v3728_v26 = vadd.f32 %v3696_v49, %v7783_v57  ;;  %4835 = vmatprep.subr.bf16.mxu0 %v6248_v62  ;;  %v6255_v62 = vld [vmem:[%s6870_s28 + $0x2c0] ss:$8 sps:$4 sm:$0xff]   ;;  %v3530_v19 = vpop.f32.mrf.mxu1 }
 0x878   : > { %v3758_v35 = vmul.f32 0.7978846, %v3726_v61  ;;  %v3695_v29 = vmul.f32 0.044715, %v3663_v40  ;;  %4783 = vmatpush2.bf16.msra.mxu1 %v6243_v12  ;;  %v7832_v15 = vadd.f32 %v3577_v13, %v7744_v21  ;;  %v7835_v25 = vadd.f32 %v3526_v1, %v7751_v44  ;;  %v3581_v12 = vpop.f32.mrf.mxu0  ;;  %v6263_v32 = vld [vmem:[%s6870_s28 + $0x2b4] ss:$8 sps:$4 sm:$0xff]  }
 0x879   : > { %6369 = vtanh.f32 %v3751_v54  ;;  %v3760_v58 = vmul.f32 0.7978846, %v3728_v26  ;;  %4784 = vmatprep.subr.bf16.mxu1 %v6251_v16  ;;  %v3697_v18 = vmul.f32 0.044715, %v3665_v9  ;;  %v3670_v6 = vmul.f32 %v3638_v30, %v7822_v2  ;;  %v6258_v16 = vld [vmem:[%s6870_s28 + $0x3c0] ss:$8 sps:$4 sm:$0xff]  }
 0x87a   : > { %6371 = vtanh.f32 %v3753_v51  ;;  %v3727_v14 = vadd.f32 %v3695_v29, %v7803_v53  ;;  %4836 = vmatpush2.bf16.msra.mxu0 %v6246_v45  ;;  %v3640_v23 = vmul.f32 %v7832_v15, %v7832_v15  ;;  %v3639_v22 = vmul.f32 %v7835_v25, %v7835_v25  ;;  %v3583_v54 = vpop.f32.mrf.mxu0  ;;  %v6266_v51 = vld [vmem:[%s6870_s28 + $0x3b4] ss:$8 sps:$4 sm:$0xff]   ;;  %v6269_v30 = vld [vmem:[%s6870_s28 + $0x2a4] ss:$8 sps:$4 sm:$0xff]  }
 0x87b   : > { %6373 = vtanh.f32 %v3758_v35  ;;  %v7846_v28 = vadd.f32 %v3579_v60, %v7754_v63  ;;  %4837 = vmatprep.subr.bf16.mxu0 %v6254_v0  ;;  %v3729_v56 = vadd.f32 %v3697_v18, %v7809_v5  ;;  %v3702_v13 = vmul.f32 0.044715, %v3670_v6  ;;  %v6261_v60 = vld [vmem:[%s6870_s28 + $0x2b0] ss:$8 sps:$4 sm:$0xff]  }
 0x87c   : > { %6375 = vtanh.f32 %v3760_v58  ;;  %v3759_v33 = vmul.f32 0.7978846, %v3727_v14  ;;  %4785 = vmatpush2.bf16.msra.mxu1 %v6249_v39  ;;  %v3672_v34 = vmul.f32 %v3640_v23, %v7832_v15  ;;  %v3671_v10 = vmul.f32 %v3639_v22, %v7835_v25  ;;  %v6272_v23 = vld [vmem:[%s6870_s28 + $0x3a4] ss:$8 sps:$4 sm:$0xff]  }
 0x87d   : > { %v3641_v48 = vmul.f32 %v7846_v28, %v7846_v28  ;;  %v7856_v59 = vadd.f32 %v3528_v7, %v7741_v11  ;;  %4786 = vmatprep.subr.bf16.mxu1 %v6257_v31  ;;  %v3761_v49 = vmul.f32 0.7978846, %v3729_v56  ;;  %v3734_v52 = vadd.f32 %v3702_v13, %v7822_v2  ;;  %v6264_v31 = vld [vmem:[%s6870_s28 + $0x3b0] ss:$8 sps:$4 sm:$0xff]   ;;  %v6267_v56 = vld [vmem:[%s6870_s28 + $0x2a0] ss:$8 sps:$4 sm:$0xff]  }
 0x87e   : > { %6377 = vtanh.f32 %v3759_v33  ;;  %v7861_v1 = vadd.f32 %v3581_v12, %v7744_v21  ;;  %4838 = vmatpush2.bf16.msra.mxu0 %v6252_v50  ;;  %v3704_v61 = vmul.f32 0.044715, %v3672_v34  ;;  %v3703_v40 = vmul.f32 0.044715, %v3671_v10 }
 0x87f   : > { %v3673_v11 = vmul.f32 %v3641_v48, %v7846_v28  ;;  %v3646_v45 = vmul.f32 %v7856_v59, %v7856_v59  ;;  %4839 = vmatprep.subr.bf16.mxu0 %v6260_v27  ;;  %6379 = vtanh.f32 %v3761_v49  ;;  %v7871_v21 = vadd.f32 %v3530_v19, %v7751_v44 }
 0x880   : > { %v3648_v26 = vmul.f32 %v7861_v1, %v7861_v1  ;;  %4787 = vmatpush2.bf16.msra.mxu1 %v6255_v62  ;;  %v3736_v0 = vadd.f32 %v3704_v61, %v7832_v15  ;;  %v3735_v35 = vadd.f32 %v3703_v40, %v7835_v25  ;;  %v3766_v39 = vmul.f32 0.7978846, %v3734_v52  ;;  %v6275_v62 = vld [vmem:[%s6870_s28 + $0x294] ss:$8 sps:$4 sm:$0xff]  }
 0x881   : > { %v3705_v29 = vmul.f32 0.044715, %v3673_v11  ;;  %v3678_v9 = vmul.f32 %v3646_v45, %v7856_v59  ;;  %4788 = vmatprep.subr.bf16.mxu1 %v6263_v32  ;;  %v3647_v7 = vmul.f32 %v7871_v21, %v7871_v21  ;;  %v7882_v44 = vadd.f32 %v3583_v54, %v7754_v63  ;;  %v6270_v32 = vld [vmem:[%s6870_s28 + $0x3a0] ss:$8 sps:$4 sm:$0xff]   ;;  %v6278_v40 = vld [vmem:[%s6870_s28 + $0x394] ss:$8 sps:$4 sm:$0xff]  }
 0x882   : > { %v3680_v58 = vmul.f32 %v3648_v26, %v7861_v1  ;;  %4840 = vmatpush2.bf16.msra.mxu0 %v6258_v16  ;;  %v3768_v18 = vmul.f32 0.7978846, %v3736_v0  ;;  %v3767_v12 = vmul.f32 0.7978846, %v3735_v35  ;;  %v3590_v10 = vmul.f32 0.5, %v7758_v43 }
 0x883   : > { %v6366_v14 = vpop.eup %6365  ;;  %v3737_v6 = vadd.f32 %v3705_v29, %v7846_v28  ;;  %v3710_v50 = vmul.f32 0.044715, %v3678_v9  ;;  %4841 = vmatprep.subr.bf16.mxu0 %v6266_v51  ;;  %v3679_v33 = vmul.f32 %v3647_v7, %v7871_v21  ;;  %v3649_v63 = vmul.f32 %v7882_v44, %v7882_v44  ;;  %v6273_v54 = vld [vmem:[%s6870_s28 + $0x290] ss:$8 sps:$4 sm:$0xff]   ;;  %v6281_v35 = vld [vmem:[%s6870_s28 + $0x284] ss:$8 sps:$4 sm:$0xff]  }
 0x884   : > { %v6368_v22 = vpop.eup %6367  ;;  %v3712_v27 = vmul.f32 0.044715, %v3680_v58  ;;  %4789 = vmatpush2.bf16.msra.mxu1 %v6261_v60  ;;  %6381 = vtanh.f32 %v3766_v39  ;;  %v3591_v51 = vmul.f32 0.5, %v7771_v36  ;;  %v3593_v29 = vmul.f32 0.5, %v7774_v24  ;;  %v6276_v39 = vld [vmem:[%s6870_s28 + $0x390] ss:$8 sps:$4 sm:$0xff]  }
 0x885   : > { %v3742_v13 = vadd.f32 %v3710_v50, %v7856_v59  ;;  %4790 = vmatprep.subr.bf16.mxu1 %v6269_v30  ;;  %v3711_v19 = vmul.f32 0.044715, %v3679_v33  ;;  %6383 = vtanh.f32 %v3768_v18  ;;  %v3769_v52 = vmul.f32 0.7978846, %v3737_v6  ;;  %v6284_v6 = vld [vmem:[%s6870_s28 + $0x384] ss:$8 sps:$4 sm:$0xff]  }
 0x886   : > { %v6370_v34 = vpop.eup %6369  ;;  %v3744_v48 = vadd.f32 %v3712_v27, %v7861_v1  ;;  %4842 = vmatpush2.bf16.msra.mxu0 %v6264_v31  ;;  %v3681_v61 = vmul.f32 %v3649_v63, %v7882_v44  ;;  %6385 = vtanh.f32 %v3767_v12  ;;  %v3598_v9 = vmul.f32 0.5, %v7780_v55  ;;  %v6279_v24 = vld [vmem:[%s6870_s28 + $0x280] ss:$8 sps:$4 sm:$0xff]  }
 0x887   : > { %v6372_v49 = vpop.eup %6371  ;;  %v3774_v16 = vmul.f32 0.7978846, %v3742_v13  ;;  %4843 = vmatprep.subr.bf16.mxu0 %v6272_v23  ;;  %v3743_v43 = vadd.f32 %v3711_v19, %v7871_v21  ;;  %v3815_v58 = vadd.f32 1.0, %v6370_v34  ;;  %v3814_v31 = vadd.f32 1.0, %v6366_v14 }
 0x888   : > { %v6374_v11 = vpop.eup %6373  ;;  %v3776_v45 = vmul.f32 0.7978846, %v3744_v48  ;;  %4791 = vmatpush2.bf16.msra.mxu1 %v6267_v56  ;;  %v3713_v0 = vmul.f32 0.044715, %v3681_v61  ;;  %v3599_v50 = vmul.f32 0.5, %v7803_v53  ;;  %v3817_v23 = vadd.f32 1.0, %v6372_v49 }
 0x889   : > { %v6376_v26 = vpop.eup %6375  ;;  %v3822_v60 = vadd.f32 1.0, %v6374_v11  ;;  %6387 = vtanh.f32 %v3774_v16  ;;  %4792 = vmatprep.subr.bf16.mxu1 %v6275_v62  ;;  %v3775_v30 = vmul.f32 0.7978846, %v3743_v43  ;;  %v3816_v27 = vadd.f32 1.0, %v6368_v22  ;;  %v6282_v56 = vld [vmem:[%s6870_s28 + $0x380] ss:$8 sps:$4 sm:$0xff]  }
 0x88a   : > { %6389 = vtanh.f32 %v3776_v45  ;;  %4844 = vmatpush2.bf16.msra.mxu0 %v6270_v32  ;;  %v3824_v36 = vadd.f32 1.0, %v6376_v26  ;;  %v3745_v18 = vadd.f32 %v3713_v0, %v7882_v44  ;;  %v3600_v63 = vmul.f32 0.5, %v7783_v57  ;;  %s8061_s28 = sld [smem:[#allocation30_spill]] (!%p5737_p1) }
 0x88b   : > { %v6378_v7 = vpop.eup %6377  ;;  %6391 = vtanh.f32 %v3769_v52  ;;  %4845 = vmatprep.subr.bf16.mxu0 %v6278_v40  ;;  %v3854_v33 = vmul.f32 %v3822_v60, %v3598_v9  ;;  %v3847_v13 = vmul.f32 %v3815_v58, %v3591_v51  ;;  %v3601_v34 = vmul.f32 0.5, %v7809_v5 }
 0x88c   : > { %6393 = vtanh.f32 %v3775_v30  ;;  %4793 = vmatpush2.bf16.msra.mxu1 %v6273_v54  ;;  %v3823_v55 = vadd.f32 1.0, %v6378_v7  ;;  %v6380_v12 = vpop.eup %6379  ;;  %v3777_v14 = vmul.f32 0.7978846, %v3745_v18  ;;  %v3846_v19 = vmul.f32 %v3814_v31, %v3590_v10 }
 0x88d   : > { %4794 = vmatprep.subr.bf16.mxu1 %v6281_v35  ;;  %v3825_v48 = vadd.f32 1.0, %v6380_v12  ;;  %v3592_v32 = vmul.f32 0.5, %v7761_v42  ;;  %v3856_v53 = vmul.f32 %v3824_v36, %v3600_v63  ;;  %v3849_v49 = vmul.f32 %v3817_v23, %v3593_v29 }
 0x88e   : > { %4846 = vmatpush2.bf16.msra.mxu0 %v6276_v39  ;;  %v3855_v62 = vmul.f32 %v3823_v55, %v3599_v50  ;;  %6395 = vtanh.f32 %v3777_v14  ;;  %v3878_v16 = vpack.c.bf16 %v3854_v33, %v3846_v19  ;;  %v3614_v60 = vmul.f32 0.5, %v7856_v59 }
 0x88f   : > { %4847 = vmatprep.subr.bf16.mxu0 %v6284_v6  ;;  %v3857_v52 = vmul.f32 %v3825_v48, %v3601_v34  ;;  %v3848_v57 = vmul.f32 %v3816_v27, %v3592_v32  ;;  %v3607_v35 = vmul.f32 0.5, %v7835_v25  ;;  %v3615_v29 = vmul.f32 0.5, %v7871_v21 }
 0x890   : > { %4795 = vmatpush2.bf16.msra.mxu1 %v6279_v24  ;;  %v3879_v22 = vpack.c.bf16 %v3855_v62, %v3847_v13  ;;  %v3606_v58 = vmul.f32 0.5, %v7822_v2  ;;  %v3616_v6 = vmul.f32 0.5, %v7861_v1  ;;  %v3609_v50 = vmul.f32 0.5, %v7846_v28 }
 0x891   : > { %v3881_v61 = vpack.c.bf16 %v3857_v52, %v3849_v49  ;;  %v6382_v40 = vpop.eup %6381  ;;  %v3880_v11 = vpack.c.bf16 %v3856_v53, %v3848_v57  ;;  %v3617_v59 = vmul.f32 0.5, %v7882_v44  ;;  %v3608_v21 = vmul.f32 0.5, %v7832_v15 }
 0x892   : > { %4848 = vmatpush2.bf16.msra.mxu0 %v6282_v56  ;;  %4796 = vmatprep.mubr.bf16.mxu1 %v3879_v22  ;;  %v6384_v5 = vpop.eup %6383  ;;  %v3830_v0 = vadd.f32 1.0, %v6382_v40 }
 0x893   : > { %4797 = vmatmul.mubr.bf16.vlgmr.msra.gmra.mxu1 %v3878_v16  ;;  %4849 = vmatprep.mubr.bf16.mxu0 %v3881_v61  ;;  %v6386_v10 = vpop.eup %6385  ;;  %v3832_v24 = vadd.f32 1.0, %v6384_v5 }
 0x894   : > { %v3831_v51 = vadd.f32 1.0, %v6386_v10  ;;  %v3862_v25 = vmul.f32 %v3830_v0, %v3606_v58 }
 0x895   : > { %4850 = vmatmul.mubr.bf16.vlgmr.msra.gmra.mxu0 %v3880_v11  ;;  %v3864_v63 = vmul.f32 %v3832_v24, %v3608_v21  ;;  %v4878_v11 = vld [vmem:[%s805_s3] sm:$0x3]  ;;  %s8060_s3 = sld [smem:[#allocation29_spill]] (!%p5737_p1) }
 0x896   : > { %v6388_v42 = vpop.eup %6387  ;;  %v3863_v36 = vmul.f32 %v3831_v51, %v3607_v35  ;;  %v4883_v51 = vrot.slane %v4878_v11, %v7017_v4  ;;  %v4887_v0 = vrot.slane %v4878_v11, %v7014_v3 }
 0x897   : > { %v6390_v45 = vpop.eup %6389  ;;  %v3838_v43 = vadd.f32 1.0, %v6388_v42 }
 0x898   : > { %v6392_v54 = vpop.eup %6391  ;;  %v3840_v30 = vadd.f32 1.0, %v6390_v45 }
 0x899   : > { %v6394_v26 = vpop.eup %6393  ;;  %v3833_v39 = vadd.f32 1.0, %v6392_v54  ;;  %v3870_v7 = vmul.f32 %v3838_v43, %v3614_v60 }
 0x89a   : > { %v3839_v9 = vadd.f32 1.0, %v6394_v26  ;;  %v3872_v12 = vmul.f32 %v3840_v30, %v3616_v6 }
 0x89b   : > { %v6396_v31 = vpop.eup %6395  ;;  %v3865_v27 = vmul.f32 %v3833_v39, %v3609_v50  ;;  %v3886_v2 = vpack.c.bf16 %v3870_v7, %v3862_v25 }
 0x89c   : > { %v3871_v18 = vmul.f32 %v3839_v9, %v3615_v29  ;;  %v3841_v55 = vadd.f32 1.0, %v6396_v31  ;;  %v3888_v56 = vpack.c.bf16 %v3872_v12, %v3864_v63 }
 0x89e   : > { %v3887_v23 = vpack.c.bf16 %v3871_v18, %v3863_v36  ;;  %v3873_v33 = vmul.f32 %v3841_v55, %v3617_v59 }
 0x8a0   : > { %4806 = vmatprep.mubr.bf16.mxu1 %v3887_v23  ;;  %v3889_v14 = vpack.c.bf16 %v3873_v33, %v3865_v27 }
 0x8a1   : > { %4807 = vmatmul.mubr.bf16.gmra.mxu1 %v3886_v2 }
 0x8a2   : > { %4859 = vmatprep.mubr.bf16.mxu0 %v3889_v14 }
 0x8a3   : > { %4860 = vmatmul.mubr.bf16.gmra.mxu0 %v3888_v56 }
 0x913   : > { %v4692_v1 = vpop.f32.mrf.mxu1 }
 0x914   : > { %v4745_v28 = vpop.f32.mrf.mxu0 }
 0x915   : > { %v4694_v13 = vpop.f32.mrf.mxu1  ;;  %v4746_v16 = vadd.f32 %v4745_v28, %v4692_v1 }
 0x916   : > { %v4747_v44 = vpop.f32.mrf.mxu0 }
 0x917   : > { %v4696_v62 = vpop.f32.mrf.mxu1  ;;  %v4748_v5 = vadd.f32 %v4747_v44, %v4694_v13 }
 0x918   : > { %v4749_v34 = vpop.f32.mrf.mxu0 }
 0x919   : > { %v4698_v48 = vpop.f32.mrf.mxu1  ;;  %v4750_v43 = vadd.f32 %v4749_v34, %v4696_v62 }
 0x91a   : > { %v4751_v15 = vpop.f32.mrf.mxu0 }
 0x91b   : > { %v4752_v29 = vadd.f32 %v4751_v15, %v4698_v48 }
 0x921   : > { %v4702_v19 = vpop.f32.mrf.mxu1 }
 0x923   : > { %v4755_v32 = vpop.f32.mrf.mxu0  ;;  %v4704_v53 = vpop.f32.mrf.mxu1 }
 0x924   : > { %v4756_v23 = vadd.f32 %v4755_v32, %v4702_v19 }
 0x925   : > { %v4757_v22 = vpop.f32.mrf.mxu0  ;;  %v4706_v49 = vpop.f32.mrf.mxu1 }
 0x927   : > { %v4759_v52 = vpop.f32.mrf.mxu0  ;;  %v4708_v57 = vpop.f32.mrf.mxu1 }
 0x928   : > { %v4760_v2 = vadd.f32 %v4759_v52, %v4706_v49 }
 0x929   : > { %v4761_v61 = vpop.f32.mrf.mxu0 }
 0x92a   : > { %v4762_v1 = vadd.f32 %v4761_v61, %v4708_v57 }
 0x953   : > { %v4798_v40 = vpop.f32.mrf.mxu1 }
 0x954   : > { %v4799_v10 = vadd.f32 %v4798_v40, %v4746_v16 }
 0x955   : > { %v4851_v42 = vpop.f32.mrf.mxu0  ;;  %v4800_v45 = vpop.f32.mrf.mxu1 }
 0x956   : > { %v4852_v54 = vadd.f32 %v4851_v42, %v4799_v10  ;;  %v4801_v26 = vadd.f32 %v4800_v45, %v4748_v5 }
 0x957   : > { %v4853_v60 = vpop.f32.mrf.mxu0  ;;  %v4802_v35 = vpop.f32.mrf.mxu1 }
 0x958   : > { %v4870_v9 = vadd.f32 %v4852_v54, %v7244_v20  ;;  %v4854_v30 = vadd.f32 %v4853_v60, %v4801_v26  ;;  %v4803_v39 = vadd.f32 %v4802_v35, %v4750_v43 }
 0x959   : > { %v4855_v58 = vpop.f32.mrf.mxu0  ;;  %v4804_v7 = vpop.f32.mrf.mxu1 }
 0x95a   : > { %v7929_v31 = vadd.f32 %v4883_v51, %v4870_v9  ;;  %v4871_v36 = vadd.f32 %v4854_v30, %v7246_v8  ;;  %v4856_v18 = vadd.f32 %v4855_v58, %v4803_v39  ;;  %v4805_v6 = vadd.f32 %v4804_v7, %v4752_v29 }
 0x95b   : > { %v4857_v24 = vpop.f32.mrf.mxu0  ;;  %v4758_v8 = vadd.f32 %v4757_v22, %v4704_v53 }
 0x95c   : > { %4898 = vst [vmem:[#allocation2 + $0x30] sm:$0xff] %v7929_v31  ;;  %v4891_v50 = vadd.f32 %v4887_v0, %v4871_v36  ;;  %v4872_v59 = vadd.f32 %v4856_v18, %v7250_v37  ;;  %v4858_v55 = vadd.f32 %v4857_v24, %v4805_v6 }
 0x95e   : > { %4899 = vst [vmem:[#allocation2] sm:$0xff] %v4891_v50  ;;  %v7934_v25 = vadd.f32 %v4883_v51, %v4872_v59  ;;  %v4873_v20 = vadd.f32 %v4858_v55, %v7252_v38 }
 0x960   : > { %4900 = vst [vmem:[#allocation2 + $0x18] sm:$0xff] %v7934_v25  ;;  %v4893_v21 = vadd.f32 %v4887_v0, %v4873_v20 }
 0x961   : > { %v4808_v12 = vpop.f32.mrf.mxu1 }
 0x962   : > { %4901 = vst [vmem:[#allocation2 + $0x10] sm:$0xff] %v4893_v21  ;;  %v4809_v27 = vadd.f32 %v4808_v12, %v4756_v23 }
 0x963   : > { %v4810_v33 = vpop.f32.mrf.mxu1  ;;  %v4861_v63 = vpop.f32.mrf.mxu0 }
 0x964   : > { %v4811_v14 = vadd.f32 %v4810_v33, %v4758_v8  ;;  %v4862_v56 = vadd.f32 %v4861_v63, %v4809_v27 }
 0x965   : > { %v4812_v37 = vpop.f32.mrf.mxu1  ;;  %v4863_v28 = vpop.f32.mrf.mxu0 }
 0x966   : > { %v4813_v13 = vadd.f32 %v4812_v37, %v4760_v2  ;;  %v4874_v44 = vadd.f32 %v4862_v56, %v7256_v41  ;;  %v4864_v38 = vadd.f32 %v4863_v28, %v4811_v14 }
 0x967   : > { %v4814_v62 = vpop.f32.mrf.mxu1  ;;  %v4865_v34 = vpop.f32.mrf.mxu0 }
 0x968   : > { %v4815_v48 = vadd.f32 %v4814_v62, %v4762_v1  ;;  %v4894_v15 = vadd.f32 %v4883_v51, %v4874_v44  ;;  %v4875_v19 = vadd.f32 %v4864_v38, %v7258_v17  ;;  %v4866_v32 = vadd.f32 %v4865_v34, %v4813_v13 }
 0x969   : > { %v4867_v53 = vpop.f32.mrf.mxu0 }
 0x96a   : > { %4902 = vst [vmem:[#allocation2 + $0x8] sm:$0xff] %v4894_v15  ;;  %v4895_v22 = vadd.f32 %v4887_v0, %v4875_v19  ;;  %v4876_v49 = vadd.f32 %v4866_v32, %v7262_v46  ;;  %v4868_v52 = vadd.f32 %v4867_v53, %v4815_v48 }
 0x96c   : > { %4903 = vst [vmem:[#allocation2 + $0x20] sm:$0xff] %v4895_v22  ;;  %v4896_v57 = vadd.f32 %v4883_v51, %v4876_v49  ;;  %v4877_v16 = vadd.f32 %v4868_v52, %v7264_v47  ;;  %4909 = sbr.rel (%p5737_p1) target bundleno = 2896 (0xb50), region = 104 }
 0x96e   : > { %4904 = vst [vmem:[#allocation2 + $0x28] sm:$0xff] %v4896_v57  ;;  %v4897_v41 = vadd.f32 %v4887_v0, %v4877_v16 }
 0x970   : > { %4905 = vst [vmem:[#allocation2 + $0x38] sm:$0xff] %v4897_v41 }
 0x971   : > { %v4918_v61 = vadd.f32 %v4895_v22, %v4894_v15  ;;  %v4912_v17 = vadd.f32 %v4891_v50, %v7929_v31  ;;  %v4921_v40 = vadd.f32 %v4897_v41, %v4896_v57  ;;  %v4915_v11 = vadd.f32 %v4893_v21, %v7934_v25  ;;  %v4910_v1 = vld [vmem:[%s8060_s3] sm:$0x3] }
 0x972   : > { %v4980_v28 = vrot.slane %v4910_v1, %v7017_v4  ;;  %v4984_v13 = vrot.slane %v4910_v1, %v7014_v3  ;;  %v4911_v38 = vld [vmem:[%s8061_s28] sm:$0x3]  ;;  %vm5068_vm4 = vcmask 1041409   ;;  %vm5074_vm5 = vcmask 1041408  }
 0x973   : > { %4919 = vadd.xlane.f32.xlu0 %v4918_v61  ;;  %4913 = vadd.xlane.f32.xlu1 %v4912_v17  ;;  %v4999_v32 = vrot.slane %v4911_v38, %v7017_v4  ;;  %v5003_v53 = vrot.slane %v4911_v38, %v7014_v3  ;;  %vm5080_vm6 = vcmask 1024  }
 0x977   : > { %4922 = vadd.xlane.f32.xlu0 %v4921_v40  ;;  %4916 = vadd.xlane.f32.xlu1 %v4915_v11 }
 0x9fc   : > { %v4920_v46 = vpop.xlane.xlu0 %4919  ;;  %v4914_v5 = vpop.xlane.xlu1 %4913 }
 0x9fd   : > { %v4926_v10 = vmul.f32 0.00390625, %v4920_v46  ;;  %v4924_v47 = vmul.f32 0.00390625, %v4914_v5 }
 0x9ff   : > { %v4932_v42 = vsub.f32 %v4894_v15, %v4926_v10  ;;  %v4933_v45 = vsub.f32 %v4895_v22, %v4926_v10  ;;  %v4928_v43 = vsub.f32 %v7929_v31, %v4924_v47  ;;  %v4929_v54 = vsub.f32 %v4891_v50, %v4924_v47 }
 0xa00   : > { %v4923_v51 = vpop.xlane.xlu0 %4922  ;;  %v4917_v26 = vpop.xlane.xlu1 %4916 }
 0xa01   : > { %v4927_v60 = vmul.f32 0.00390625, %v4923_v51  ;;  %v4925_v0 = vmul.f32 0.00390625, %v4917_v26  ;;  %v4940_v35 = vmul.f32 %v4932_v42, %v4932_v42  ;;  %v4941_v29 = vmul.f32 %v4933_v45, %v4933_v45 }
 0xa02   : > { %v4936_v9 = vmul.f32 %v4928_v43, %v4928_v43  ;;  %v4937_v30 = vmul.f32 %v4929_v54, %v4929_v54 }
 0xa03   : > { %v4934_v39 = vsub.f32 %v4896_v57, %v4927_v60  ;;  %v4935_v58 = vsub.f32 %v4897_v41, %v4927_v60  ;;  %v4930_v7 = vsub.f32 %v7934_v25, %v4925_v0  ;;  %v4931_v36 = vsub.f32 %v4893_v21, %v4925_v0 }
 0xa04   : > { %v4950_v18 = vadd.f32 %v4941_v29, %v4940_v35  ;;  %v4944_v31 = vadd.f32 %v4937_v30, %v4936_v9 }
 0xa05   : > { %v4942_v6 = vmul.f32 %v4934_v39, %v4934_v39  ;;  %v4943_v24 = vmul.f32 %v4935_v58, %v4935_v58  ;;  %v4938_v59 = vmul.f32 %v4930_v7, %v4930_v7  ;;  %v4939_v55 = vmul.f32 %v4931_v36, %v4931_v36 }
 0xa06   : > { %4951 = vadd.xlane.f32.xlu0 %v4950_v18 }
 0xa07   : > { %v4953_v50 = vadd.f32 %v4943_v24, %v4942_v6  ;;  %v4947_v20 = vadd.f32 %v4939_v55, %v4938_v59 }
 0xa09   : > { %4954 = vadd.xlane.f32.xlu1 %v4953_v50 }
 0xa0a   : > { %4945 = vadd.xlane.f32.xlu0 %v4944_v31 }
 0xa0d   : > { %4948 = vadd.xlane.f32.xlu1 %v4947_v20 }
 0xa8f   : > { %v4952_v23 = vpop.xlane.xlu0 %4951 }
 0xa90   : > { %v4958_v12 = vmul.f32 0.00390625, %v4952_v23  ;;  %v5047_v23 = vld [vmem:[%s8062_s17] sm:$0x3] }
 0xa92   : > { %v4962_v8 = vadd.f32 1e-05, %v4958_v12  ;;  %v4955_v27 = vpop.xlane.xlu1 %4954 }
 0xa93   : > { %v4946_v33 = vpop.xlane.xlu0 %4945  ;;  %v4959_v2 = vmul.f32 0.00390625, %v4955_v27 }
 0xa94   : > { %6405 = vrsqrt.f32 %v4962_v8  ;;  %v4956_v25 = vmul.f32 0.00390625, %v4946_v33 }
 0xa95   : > { %v4963_v21 = vadd.f32 1e-05, %v4959_v2  ;;  %v5052_v2 = vrot.slane %v5047_v23, %v7017_v4 }
 0xa96   : > { %v4960_v63 = vadd.f32 1e-05, %v4956_v25  ;;  %v4949_v14 = vpop.xlane.xlu1 %4948  ;;  %v5056_v25 = vrot.slane %v5047_v23, %v7014_v3 }
 0xa97   : > { %6407 = vrsqrt.f32 %v4963_v21  ;;  %v4957_v56 = vmul.f32 0.00390625, %v4949_v14 }
 0xa98   : > { %6409 = vrsqrt.f32 %v4960_v63 }
 0xa99   : > { %v4961_v37 = vadd.f32 1e-05, %v4957_v56 }
 0xa9b   : > { %6411 = vrsqrt.f32 %v4961_v37 }
 0xaa1   : > { %v6406_v44 = vpop.eup %6405 }
 0xaa2   : > { %v4972_v62 = vmul.f32 %v6406_v44, %v4932_v42  ;;  %v4973_v34 = vmul.f32 %v6406_v44, %v4933_v45 }
 0xaa4   : > { %v6408_v48 = vpop.eup %6407  ;;  %v4991_v15 = vmul.f32 %v4980_v28, %v4972_v62  ;;  %v4992_v19 = vmul.f32 %v4984_v13, %v4973_v34 }
 0xaa5   : > { %v6410_v22 = vpop.eup %6409  ;;  %v4974_v49 = vmul.f32 %v6408_v48, %v4934_v39  ;;  %v4975_v52 = vmul.f32 %v6408_v48, %v4935_v58 }
 0xaa6   : > { %v4968_v57 = vmul.f32 %v6410_v22, %v4928_v43  ;;  %v4969_v16 = vmul.f32 %v6410_v22, %v4929_v54  ;;  %v5010_v46 = vadd.f32 %v4999_v32, %v4991_v15  ;;  %v5011_v5 = vadd.f32 %v5003_v53, %v4992_v19 }
 0xaa7   : > { %v4993_v41 = vmul.f32 %v4980_v28, %v4974_v49  ;;  %v4994_v61 = vmul.f32 %v4984_v13, %v4975_v52 }
 0xaa8   : > { %v6412_v17 = vpop.eup %6411  ;;  %v4987_v40 = vmul.f32 %v4980_v28, %v4968_v57  ;;  %v4988_v11 = vmul.f32 %v4984_v13, %v4969_v16 }
 0xaa9   : > { %v4970_v10 = vmul.f32 %v6412_v17, %v4930_v7  ;;  %v4971_v47 = vmul.f32 %v6412_v17, %v4931_v36  ;;  %v5012_v42 = vadd.f32 %v4999_v32, %v4993_v41  ;;  %v5013_v45 = vadd.f32 %v5003_v53, %v4994_v61 }
 0xaaa   : > { %v5006_v35 = vadd.f32 %v4999_v32, %v4987_v40  ;;  %v5007_v29 = vadd.f32 %v5003_v53, %v4988_v11 }
 0xaab   : > { %v4989_v51 = vmul.f32 %v4980_v28, %v4970_v10  ;;  %v4990_v26 = vmul.f32 %v4984_v13, %v4971_v47  ;;  %v5028_v60 = vadd.f32 %v5012_v42, %v5010_v46  ;;  %v5035_v0 = vadd.f32 %v5013_v45, %v5011_v5 }
 0xaad   : > { %v5008_v9 = vadd.f32 %v4999_v32, %v4989_v51  ;;  %v5009_v43 = vadd.f32 %v5003_v53, %v4990_v26  ;;  %v5029_v54 = vrot.slane %v5028_v60, 4  ;;  %v5036_v30 = vrot.slane %v5035_v0, 4 }
 0xaaf   : > { %v5014_v39 = vadd.f32 %v5008_v9, %v5006_v35  ;;  %v5021_v58 = vadd.f32 %v5009_v43, %v5007_v29  ;;  %v5030_v18 = vadd.f32 %v5029_v54, %v5028_v60  ;;  %v5037_v6 = vadd.f32 %v5036_v30, %v5035_v0 }
 0xab1   : > { %v5015_v24 = vrot.slane %v5014_v39, 4  ;;  %v5022_v59 = vrot.slane %v5021_v58, 4  ;;  %v5031_v7 = vrot.slane %v5030_v18, 2  ;;  %v5038_v36 = vrot.slane %v5037_v6, 2 }
 0xab3   : > { %v5016_v55 = vadd.f32 %v5015_v24, %v5014_v39  ;;  %v5023_v31 = vadd.f32 %v5022_v59, %v5021_v58  ;;  %v5032_v50 = vadd.f32 %v5031_v7, %v5030_v18  ;;  %v5039_v20 = vadd.f32 %v5038_v36, %v5037_v6 }
 0xab5   : > { %v5017_v12 = vrot.slane %v5016_v55, 2  ;;  %v5024_v8 = vrot.slane %v5023_v31, 2  ;;  %v5033_v27 = vrot.slane %v5032_v50, 1  ;;  %v5040_v33 = vrot.slane %v5039_v20, 1 }
 0xab7   : > { %v5018_v21 = vadd.f32 %v5017_v12, %v5016_v55  ;;  %v5025_v63 = vadd.f32 %v5024_v8, %v5023_v31  ;;  %v5034_v14 = vadd.f32 %v5033_v27, %v5032_v50  ;;  %v5041_v56 = vadd.f32 %v5040_v33, %v5039_v20 }
 0xab9   : > { %v5019_v37 = vrot.slane %v5018_v21, 1  ;;  %v5026_v1 = vrot.slane %v5025_v63, 1  ;;  %v5045_v28 = vmul.f32 0.0625, %v5034_v14  ;;  %v5046_v13 = vmul.f32 0.0625, %v5041_v56 }
 0xabb   : > { %v5020_v44 = vadd.f32 %v5019_v37, %v5018_v21  ;;  %v5027_v38 = vadd.f32 %v5026_v1, %v5025_v63  ;;  %v5061_v62 = vmul.f32 %v5052_v2, %v5045_v28  ;;  %v5062_v34 = vmul.f32 %v5056_v25, %v5046_v13 }
 0xabd   : > { %v5043_v48 = vmul.f32 0.0625, %v5020_v44  ;;  %v5044_v15 = vmul.f32 0.0625, %v5027_v38  ;;  %v5067_v3 = vrot.slane %v5061_v62, 7  ;;  %v5070_v32 = vrot.slane %v5062_v34, 7 }
 0xabf   : > { %v5059_v4 = vmul.f32 %v5052_v2, %v5043_v48  ;;  %v5060_v19 = vmul.f32 %v5056_v25, %v5044_v15 }
 0xac1   : > { %v5069_v53 = vsel %vm5068_vm4, %v5067_v3, %v5059_v4  ;;  %v5071_v22 = vsel %vm5068_vm4, %v5070_v32, %v5060_v19 }
 0xac2   : > { %v5075_v49 = vsel %vm5074_vm5, %v5069_v53, 0.0  ;;  %v5076_v52 = vsel %vm5074_vm5, %v5071_v22, 0.0 }
 0xac3   : > { %v5077_v57 = vadd.f32 %v5076_v52, %v5075_v49 }
 0xac5   : > { %5078 = vadd.xlane.f32.xlu0 %v5077_v57 }
 0xb4e   : > { %v5079_v16 = vpop.xlane.xlu0 %5078 }
 0xb4f   : > { %5081 = vst.msk [vmem:[%s6866_s19] sm:$0x3] %vm5080_vm6, %v5079_v16 }
 0xb50 PF: > { %s8063_s7 = sld [smem:[#allocation14_spill]] }
 0xb51   : > { %s8064_s21 = sld [smem:[#allocation10_spill]] }
 0xb52   : > { %s8065_s22 = sld [smem:[#allocation11_spill]] }
 0xb53   : > { %s8066_s23 = sld [smem:[#allocation17_spill]] }
 0xb54   : > { %s8067_s24 = sld [smem:[#allocation12_spill]] }
 0xb55   : > { %s8068_s25 = sld [smem:[#allocation13_spill]] }
 0xb56   : > { %s32_s28 = sadd.s32 1, %s8063_s7   ;;  %s8069_s26 = sld [smem:[#allocation15_spill]] }
 0xb57   : > { %p29_p2 = scmp.ge.s32.totalorder %s32_s28, 6   ;;  %s8070_s27 = sld [smem:[#allocation16_spill]] }
 0xb59   :  { %31 = sbr.rel (!%p29_p2) target bundleno = 21 (0x15), region = 186 }
 0xb5e   :  { %5101 = vsyncpa [#allocation4], 1 }
 0xb5f   :  { %5103 = vsyncpa [#allocation4 + $0x1], 1 }
 0xb60   :  { %5104 = vsyncpa [#allocation6], 1 }
 0xb61   :  { %5106 = vsyncpa [#allocation6 + $0x1], 1 }

</bundles_post_ra>
